<compile_context>
chip_gen: v6e
topology: v6e:2x2x1
jax: 0.10.0
libtpu: 0.0.40
codegen_flags: <defaults>
</compile_context>

<pallas_src>
import functools
import math

import jax
import jax.numpy as jnp
from jax.experimental import pallas as pl
from jax.experimental.pallas import tpu as pltpu

# ------------------------- model config (small ViT) -------------------------
IMG = 32
PATCH = 16
CIN = 3
DIM = 64          # hidden dim
NHEAD = 4
DHEAD = DIM // NHEAD
MLP = 128
NLAYER = 2
NCLASS = 2
LN_EPS = 1e-6     # torchvision ViT uses LayerNorm(eps=1e-6)
CPP = CIN * PATCH * PATCH

NPATCH = (IMG // PATCH) ** 2      # 4 patches
S = NPATCH + 1                    # 5 real tokens (cls + patches)
SP = 8                            # tokens padded to one sublane tile

# Batch tile: TB*SP rows fill the MXU M dimension (1024 rows at TB=128) while
# per-step VMEM (patches ~1.5 MiB bf16 double-buffered + <1 MiB resident
# weights + activations) stays inside the default scoped VMEM of every
# generation (16 MiB v5e, 32 MiB v6e/v7x).  For B > TB_MAX the grid has >= 2
# programs, so v7x's two TensorCores both get work under "parallel".
TB_MAX = 128


# ----------------------------- kernel helpers --------------------------------

def _ln(x, g, b):
    mean = jnp.mean(x, axis=-1, keepdims=True)
    var = jnp.mean((x - mean) * (x - mean), axis=-1, keepdims=True)
    return (x - mean) * jax.lax.rsqrt(var + LN_EPS) * g + b


def _erf(x):
    # Abramowitz & Stegun 7.1.26 polynomial (|err| < 1.5e-7): matches torch's
    # exact-erf GELU to f32 noise using only guaranteed-lowerable primitives.
    ax = jnp.abs(x)
    t = 1.0 / (1.0 + 0.3275911 * ax)
    poly = t * (0.254829592 + t * (-0.284496736 + t * (1.421413741
             + t * (-1.453152027 + t * 1.061405429))))
    y = 1.0 - poly * jnp.exp(-ax * ax)
    return jnp.where(x >= 0.0, y, -y)


def _gelu_exact(x):
    # torch nn.GELU default: 0.5*x*(1+erf(x/sqrt(2)))
    return 0.5 * x * (1.0 + _erf(x * (1.0 / math.sqrt(2.0))))


# ------------------------------ fused kernel --------------------------------

def _vit_fused_kernel(
    patches_ref,            # [TB*SP, CPP] bf16 (row 0 / rows >=S per image are zero)
    conv_w_ref,             # [CPP, DIM]   bf16
    posb_ref,               # [TB*SP, DIM] f32  (pos emb + cls + conv bias, tiled)
    wa_ref,                 # [L, DIM, 3*DIM + DIM + MLP] bf16  (wqkv | wo | w1)
    w2_ref,                 # [L, MLP, DIM] bf16
    vec_ref,                # [L, 8, 3*DIM] f32 (ln1_g, ln1_b, bqkv, bo, ln2_g, ln2_b, b1, b2)
    lnf_ref,                # [2, DIM] f32 (gamma, beta)
    head_w_ref,             # [DIM, NCLASS] f32
    head_b_ref,             # [1, NCLASS]   f32
    out_ref,                # [TB, NCLASS]  f32
    *, tb,
):
    f32, bf16 = jnp.float32, jnp.bfloat16
    rows = tb * SP

    # ---- patch embedding (Conv2d k=16,s=16 as one big matmul over TB*SP rows).
    # posb folds conv bias + positional embedding + class token (the cls-slot
    # patch row is zero, so the matmul contributes 0 there).
    h = jnp.dot(patches_ref[...], conv_w_ref[...],
                preferred_element_type=f32) + posb_ref[...]            # [rows, DIM]

    # ---- mask for padded key tokens (token ids >= S are padding rows)
    key_ids = jax.lax.broadcasted_iota(jnp.int32, (1, 1, SP), 2)
    key_mask = jnp.where(key_ids < S, 0.0, -1e30).astype(f32)          # [1,1,SP]

    # ---- encoder layers (unrolled; packed weights resident in VMEM) ----
    for l in range(NLAYER):
        wa = wa_ref[l]                                                 # [DIM, 384] bf16
        vec = vec_ref[l]                                               # [8, 192]  f32
        ln1_g, ln1_b = vec[0:1, 0:DIM], vec[1:2, 0:DIM]
        bqkv = vec[2:3, :]
        bo = vec[3:4, 0:DIM]
        ln2_g, ln2_b = vec[4:5, 0:DIM], vec[5:6, 0:DIM]
        b1 = vec[6:7, 0:MLP]
        b2 = vec[7:8, 0:DIM]

        # --- multi-head self-attention block (pre-LN) ---
        y = _ln(h, ln1_g, ln1_b)
        qkv = jnp.dot(y.astype(bf16), wa[:, 0:3 * DIM],
                      preferred_element_type=f32) + bqkv               # [rows, 3*DIM]
        qkv3 = qkv.reshape(tb, SP, 3 * DIM)                            # free (SP == 8)
        wo = wa[:, 3 * DIM:4 * DIM]                                    # [DIM, DIM] bf16
        ao = None
        for hh in range(NHEAD):
            qh = qkv3[:, :, hh * DHEAD:(hh + 1) * DHEAD]
            kh = qkv3[:, :, DIM + hh * DHEAD:DIM + (hh + 1) * DHEAD]
            vh = qkv3[:, :, 2 * DIM + hh * DHEAD:2 * DIM + (hh + 1) * DHEAD]
            # TB-batched score / PV contractions (image batch on dim 0).
            s = jnp.einsum('bqd,bkd->bqk', qh, kh,
                           preferred_element_type=f32) + key_mask      # [tb,SP,SP]
            s = s - jnp.max(s, axis=-1, keepdims=True)
            p = jnp.exp(s)
            p = p / jnp.sum(p, axis=-1, keepdims=True)                 # exact softmax
            oh = jnp.einsum('bqk,bkd->bqd', p, vh,
                            preferred_element_type=f32)                # [tb,SP,DHEAD]
            # Fold head output through its slice of Wo (no lane concat).
            part = jnp.dot(oh.reshape(rows, DHEAD).astype(bf16),
                           wo[hh * DHEAD:(hh + 1) * DHEAD, :],
                           preferred_element_type=f32)                 # [rows, DIM]
            ao = part if ao is None else ao + part
        h = h + ao + bo                                                # residual

        # --- MLP block (pre-LN, exact GELU) ---
        y = _ln(h, ln2_g, ln2_b)
        y = jnp.dot(y.astype(bf16), wa[:, 4 * DIM:],
                    preferred_element_type=f32) + b1
        y = _gelu_exact(y)
        y = jnp.dot(y.astype(bf16), w2_ref[l],
                    preferred_element_type=f32) + b2
        h = h + y                                                      # residual

    # ---- final LN, class-token extract (mask + reduce, no sublane gather), head
    hf = _ln(h, lnf_ref[0:1, :], lnf_ref[1:2, :])
    tok_ids = jax.lax.broadcasted_iota(jnp.int32, (1, SP, 1), 1)
    cls_sel = (tok_ids == 0).astype(f32)                               # [1,SP,1]
    cls_tok = jnp.sum(hf.reshape(tb, SP, DIM) * cls_sel, axis=1)       # [tb, DIM]
    out_ref[...] = (jnp.dot(cls_tok, head_w_ref[...],
                            preferred_element_type=f32) + head_b_ref[...])


# ------------------------------ parameter init ------------------------------

def init_params(key):
    def nrm(k, shape, std=0.02):
        return (std * jax.random.normal(k, shape)).astype(jnp.float32)

    keys = jax.random.split(key, 8 + NLAYER)
    params = {
        "conv_w": nrm(keys[0], (CPP, DIM)),
        "conv_b": jnp.zeros((DIM,), jnp.float32),
        "cls": nrm(keys[1], (1, 1, DIM)),
        "pos": nrm(keys[2], (1, S, DIM)),
        "lnf_g": jnp.ones((DIM,), jnp.float32),
        "lnf_b": jnp.zeros((DIM,), jnp.float32),
        "head_w": nrm(keys[3], (DIM, NCLASS)),
        "head_b": jnp.zeros((NCLASS,), jnp.float32),
        "layers": [],
    }
    for l in range(NLAYER):
        lk = jax.random.split(keys[8 + l], 6)
        params["layers"].append({
            "ln1_g": jnp.ones((DIM,), jnp.float32),
            "ln1_b": jnp.zeros((DIM,), jnp.float32),
            "wq": nrm(lk[0], (DIM, DIM)), "bq": jnp.zeros((DIM,), jnp.float32),
            "wk": nrm(lk[1], (DIM, DIM)), "bk": jnp.zeros((DIM,), jnp.float32),
            "wv": nrm(lk[2], (DIM, DIM)), "bv": jnp.zeros((DIM,), jnp.float32),
            "wo": nrm(lk[3], (DIM, DIM)), "bo": jnp.zeros((DIM,), jnp.float32),
            "ln2_g": jnp.ones((DIM,), jnp.float32),
            "ln2_b": jnp.zeros((DIM,), jnp.float32),
            "w1": nrm(lk[4], (DIM, MLP)), "b1": jnp.zeros((MLP,), jnp.float32),
            "w2": nrm(lk[5], (MLP, DIM)), "b2": jnp.zeros((DIM,), jnp.float32),
        })
    return params


# ------------------------------- forward pass -------------------------------

def anchor_network_forward(x, params):
    """x: [B, 3, IMG, IMG] NCHW float32 -> logits [B, NCLASS]."""
    B, C, H, W = x.shape
    assert C == CIN and H == IMG and W == IMG
    nh = nw = IMG // PATCH

    TB = min(B, TB_MAX)
    nblk = pl.cdiv(B, TB)
    Bpad = nblk * TB

    # ---- patchify + pad tokens to SP and batch to Bpad (plain-JAX glue) ----
    patches = x.reshape(B, C, nh, PATCH, nw, PATCH)
    patches = patches.transpose(0, 2, 4, 1, 3, 5).reshape(B, NPATCH, CPP)
    pp = jnp.zeros((Bpad, SP, CPP), jnp.float32)
    pp = pp.at[:B, 1:1 + NPATCH, :].set(patches)
    patches_flat = pp.reshape(Bpad * SP, CPP).astype(jnp.bfloat16)

    # ---- fused additive term: positional emb + class token + conv bias ----
    pos = params["pos"].reshape(S, DIM)
    cls = params["cls"].reshape(DIM)
    posb = jnp.zeros((SP, DIM), jnp.float32)
    posb = posb.at[0].set(pos[0] + cls)
    posb = posb.at[1:1 + NPATCH].set(pos[1:] + params["conv_b"][None, :])
    posb_tiled = jnp.tile(posb, (TB, 1))                              # [TB*SP, DIM]

    # ---- pack per-layer params: matmul weights bf16 (MXU), vectors f32 ----
    scale = 1.0 / math.sqrt(DHEAD)          # 1/sqrt(d_head) folded into Q weight/bias
    layers = params["layers"]
    wa = jnp.stack([
        jnp.concatenate([lyr["wq"] * scale, lyr["wk"], lyr["wv"],
                         lyr["wo"], lyr["w1"]], axis=1)
        for lyr in layers]).astype(jnp.bfloat16)                      # [L, DIM, 384]
    w2 = jnp.stack([lyr["w2"] for lyr in layers]).astype(jnp.bfloat16)  # [L, MLP, DIM]

    def _row(v):
        return jnp.pad(v, (0, 3 * DIM - v.shape[0]))
    vecs = jnp.stack([
        jnp.stack([_row(lyr["ln1_g"]), _row(lyr["ln1_b"]),
                   jnp.concatenate([lyr["bq"] * scale, lyr["bk"], lyr["bv"]]),
                   _row(lyr["bo"]), _row(lyr["ln2_g"]), _row(lyr["ln2_b"]),
                   _row(lyr["b1"]), _row(lyr["b2"])])
        for lyr in layers]).astype(jnp.float32)                       # [L, 8, 192]

    conv_w = params["conv_w"].astype(jnp.bfloat16)
    lnf = jnp.stack([params["lnf_g"], params["lnf_b"]])               # [2, DIM]
    head_w = params["head_w"]
    head_b = params["head_b"][None, :]

    args = (patches_flat, conv_w, posb_tiled, wa, w2, vecs, lnf, head_w, head_b)

    # Per-tile block for patches; every other input is a full-array block with a
    # constant index_map -> fetched once and resident in VMEM across the grid.
    in_specs = [pl.BlockSpec((TB * SP, CPP), lambda b: (b, 0))]
    in_specs += [pl.BlockSpec(a.shape, lambda b, _n=a.ndim: (0,) * _n)
                 for a in args[1:]]

    out = pl.pallas_call(
        functools.partial(_vit_fused_kernel, tb=TB),
        grid=(nblk,),
        in_specs=in_specs,
        out_specs=pl.BlockSpec((TB, NCLASS), lambda b: (b, 0)),
        out_shape=jax.ShapeDtypeStruct((Bpad, NCLASS), jnp.float32),
        compiler_params=pltpu.CompilerParams(dimension_semantics=("parallel",)),
    )(*args)
    return out[:B]


# ----------------------------------- main ------------------------------------

if __name__ == "__main__":
    key = jax.random.PRNGKey(0)
    k_x, k_p = jax.random.split(key)
    x = jax.random.normal(k_x, (2, CIN, IMG, IMG), dtype=jnp.float32)
    params = init_params(k_p)

    logits = jax.jit(anchor_network_forward)(x, params)
    jax.block_until_ready(logits)
    assert logits.shape == (2, NCLASS) and logits.dtype == jnp.float32
    assert bool(jnp.all(jnp.isfinite(logits)))
    print("KERNEL_OK")
</pallas_src>

<mosaic_0001>
module attributes {stable_mosaic.version = 11 : i64} {
  func.func @_vit_fused_kernel(%arg0: i32, %arg1: memref<16x768xbf16, #tpu.memory_space<vmem>>, %arg2: memref<768x64xbf16, #tpu.memory_space<vmem>>, %arg3: memref<16x64xf32, #tpu.memory_space<vmem>>, %arg4: memref<2x64x384xbf16, #tpu.memory_space<vmem>>, %arg5: memref<2x128x64xbf16, #tpu.memory_space<vmem>>, %arg6: memref<2x8x192xf32, #tpu.memory_space<vmem>>, %arg7: memref<2x64xf32, #tpu.memory_space<vmem>>, %arg8: memref<64x2xf32, #tpu.memory_space<vmem>>, %arg9: memref<1x2xf32, #tpu.memory_space<vmem>>, %arg10: memref<2x2xf32, #tpu.memory_space<vmem>>) attributes {dimension_semantics = [#tpu.dimension_semantics<parallel>], iteration_bounds = array<i64: 1>, scalar_prefetch = 0 : i64, scratch_operands = 0 : i64, tpu.core_type = #tpu.core_type<tc>, window_params = [{transform_indices = @transform_0, window_bounds = array<i64: 16, 768>}, {pipeline_mode = #tpu.pipeline_mode<synchronous>, transform_indices = @transform_1, window_bounds = array<i64: 768, 64>}, {pipeline_mode = #tpu.pipeline_mode<synchronous>, transform_indices = @transform_2, window_bounds = array<i64: 16, 64>}, {pipeline_mode = #tpu.pipeline_mode<synchronous>, transform_indices = @transform_3, window_bounds = array<i64: 2, 64, 384>}, {pipeline_mode = #tpu.pipeline_mode<synchronous>, transform_indices = @transform_4, window_bounds = array<i64: 2, 128, 64>}, {pipeline_mode = #tpu.pipeline_mode<synchronous>, transform_indices = @transform_5, window_bounds = array<i64: 2, 8, 192>}, {pipeline_mode = #tpu.pipeline_mode<synchronous>, transform_indices = @transform_6, window_bounds = array<i64: 2, 64>}, {pipeline_mode = #tpu.pipeline_mode<synchronous>, transform_indices = @transform_7, window_bounds = array<i64: 64, 2>}, {pipeline_mode = #tpu.pipeline_mode<synchronous>, transform_indices = @transform_8, window_bounds = array<i64: 1, 2>}, {transform_indices = @transform_9, window_bounds = array<i64: 2, 2>}]} {
    %c0 = arith.constant 0 : index
    %c0_0 = arith.constant 0 : index
    %0 = vector.load %arg1[%c0, %c0_0] : memref<16x768xbf16, #tpu.memory_space<vmem>>, vector<16x768xbf16>
    %c0_1 = arith.constant 0 : index
    %c0_2 = arith.constant 0 : index
    %1 = vector.load %arg2[%c0_1, %c0_2] : memref<768x64xbf16, #tpu.memory_space<vmem>>, vector<768x64xbf16>
    %cst = arith.constant dense<0.000000e+00> : vector<16x64xf32>
    %2 = tpu.matmul %0, %1, %cst {dimension_numbers = #tpu.dot_dimension_numbers<[1], [0], [0], [1], [0, 0, 1, 1], [], []>} : vector<16x768xbf16>, vector<768x64xbf16>, vector<16x64xf32> -> vector<16x64xf32>
    %c0_3 = arith.constant 0 : index
    %c0_4 = arith.constant 0 : index
    %3 = vector.load %arg3[%c0_3, %c0_4] : memref<16x64xf32, #tpu.memory_space<vmem>>, vector<16x64xf32>
    %4 = arith.addf %2, %3 : vector<16x64xf32>
    %5 = tpu.iota {dimensions = array<i32: 2>} : vector<1x1x8xi32>
    %c5_i32 = arith.constant 5 : i32
    %6 = vector.broadcast %c5_i32 : i32 to vector<1x1x8xi32>
    %7 = arith.cmpi slt, %5, %6 : vector<1x1x8xi32>
    %cst_5 = arith.constant 0.000000e+00 : f32
    %cst_6 = arith.constant -1.000000e+30 : f32
    %8 = vector.broadcast %cst_5 : f32 to vector<1x1x8xf32>
    %9 = vector.broadcast %cst_6 : f32 to vector<1x1x8xf32>
    %10 = arith.select %7, %8, %9 : vector<1x1x8xi1>, vector<1x1x8xf32>
    %c0_7 = arith.constant 0 : index
    %c0_8 = arith.constant 0 : index
    %c0_9 = arith.constant 0 : index
    %11 = vector.load %arg4[%c0_7, %c0_8, %c0_9] : memref<2x64x384xbf16, #tpu.memory_space<vmem>>, vector<1x64x384xbf16>
    %12 = vector.shape_cast %11 : vector<1x64x384xbf16> to vector<64x384xbf16>
    %c0_10 = arith.constant 0 : index
    %c0_11 = arith.constant 0 : index
    %c0_12 = arith.constant 0 : index
    %13 = vector.load %arg6[%c0_10, %c0_11, %c0_12] : memref<2x8x192xf32, #tpu.memory_space<vmem>>, vector<1x8x192xf32>
    %14 = vector.shape_cast %13 : vector<1x8x192xf32> to vector<8x192xf32>
    %15 = vector.extract_strided_slice %14 {offsets = [0, 0], sizes = [1, 64], strides = [1, 1]} : vector<8x192xf32> to vector<1x64xf32>
    %16 = vector.extract_strided_slice %14 {offsets = [1, 0], sizes = [1, 64], strides = [1, 1]} : vector<8x192xf32> to vector<1x64xf32>
    %17 = vector.extract_strided_slice %14 {offsets = [2, 0], sizes = [1, 192], strides = [1, 1]} : vector<8x192xf32> to vector<1x192xf32>
    %18 = vector.extract_strided_slice %14 {offsets = [3, 0], sizes = [1, 64], strides = [1, 1]} : vector<8x192xf32> to vector<1x64xf32>
    %19 = vector.extract_strided_slice %14 {offsets = [4, 0], sizes = [1, 64], strides = [1, 1]} : vector<8x192xf32> to vector<1x64xf32>
    %20 = vector.extract_strided_slice %14 {offsets = [5, 0], sizes = [1, 64], strides = [1, 1]} : vector<8x192xf32> to vector<1x64xf32>
    %21 = vector.extract_strided_slice %14 {offsets = [6, 0], sizes = [1, 128], strides = [1, 1]} : vector<8x192xf32> to vector<1x128xf32>
    %22 = vector.extract_strided_slice %14 {offsets = [7, 0], sizes = [1, 64], strides = [1, 1]} : vector<8x192xf32> to vector<1x64xf32>
    %cst_13 = arith.constant dense<0.000000e+00> : vector<16xf32>
    %23 = vector.multi_reduction <add>, %4, %cst_13 [1] : vector<16x64xf32> to vector<16xf32>
    %24 = vector.shape_cast %23 : vector<16xf32> to vector<16x1xf32>
    %cst_14 = arith.constant 6.400000e+01 : f32
    %25 = vector.broadcast %cst_14 : f32 to vector<16x1xf32>
    %26 = arith.divf %24, %25 : vector<16x1xf32>
    %27 = vector.broadcast %26 : vector<16x1xf32> to vector<16x64xf32>
    %28 = arith.subf %4, %27 : vector<16x64xf32>
    %29 = vector.broadcast %26 : vector<16x1xf32> to vector<16x64xf32>
    %30 = arith.subf %4, %29 : vector<16x64xf32>
    %31 = arith.mulf %28, %30 : vector<16x64xf32>
    %cst_15 = arith.constant dense<0.000000e+00> : vector<16xf32>
    %32 = vector.multi_reduction <add>, %31, %cst_15 [1] : vector<16x64xf32> to vector<16xf32>
    %33 = vector.shape_cast %32 : vector<16xf32> to vector<16x1xf32>
    %cst_16 = arith.constant 6.400000e+01 : f32
    %34 = vector.broadcast %cst_16 : f32 to vector<16x1xf32>
    %35 = arith.divf %33, %34 : vector<16x1xf32>
    %36 = vector.broadcast %26 : vector<16x1xf32> to vector<16x64xf32>
    %37 = arith.subf %4, %36 : vector<16x64xf32>
    %cst_17 = arith.constant 9.99999997E-7 : f32
    %38 = vector.broadcast %cst_17 : f32 to vector<16x1xf32>
    %39 = arith.addf %35, %38 : vector<16x1xf32>
    %40 = math.rsqrt %39 : vector<16x1xf32>
    %41 = vector.broadcast %40 : vector<16x1xf32> to vector<16x64xf32>
    %42 = arith.mulf %37, %41 : vector<16x64xf32>
    %43 = vector.broadcast %15 : vector<1x64xf32> to vector<16x64xf32>
    %44 = arith.mulf %42, %43 : vector<16x64xf32>
    %45 = vector.broadcast %16 : vector<1x64xf32> to vector<16x64xf32>
    %46 = arith.addf %44, %45 : vector<16x64xf32>
    %47 = arith.truncf %46 : vector<16x64xf32> to vector<16x64xbf16>
    %48 = vector.extract_strided_slice %12 {offsets = [0, 0], sizes = [64, 192], strides = [1, 1]} : vector<64x384xbf16> to vector<64x192xbf16>
    %cst_18 = arith.constant dense<0.000000e+00> : vector<16x192xf32>
    %49 = tpu.matmul %47, %48, %cst_18 {dimension_numbers = #tpu.dot_dimension_numbers<[1], [0], [0], [1], [0, 0, 1, 1], [], []>} : vector<16x64xbf16>, vector<64x192xbf16>, vector<16x192xf32> -> vector<16x192xf32>
    %50 = vector.broadcast %17 : vector<1x192xf32> to vector<16x192xf32>
    %51 = arith.addf %49, %50 : vector<16x192xf32>
    %52 = vector.shape_cast %51 : vector<16x192xf32> to vector<2x8x192xf32>
    %53 = vector.extract_strided_slice %12 {offsets = [0, 192], sizes = [64, 64], strides = [1, 1]} : vector<64x384xbf16> to vector<64x64xbf16>
    %54 = vector.extract_strided_slice %52 {offsets = [0, 0, 0], sizes = [2, 8, 16], strides = [1, 1, 1]} : vector<2x8x192xf32> to vector<2x8x16xf32>
    %55 = vector.extract_strided_slice %52 {offsets = [0, 0, 64], sizes = [2, 8, 16], strides = [1, 1, 1]} : vector<2x8x192xf32> to vector<2x8x16xf32>
    %56 = vector.extract_strided_slice %52 {offsets = [0, 0, 128], sizes = [2, 8, 16], strides = [1, 1, 1]} : vector<2x8x192xf32> to vector<2x8x16xf32>
    "tpu.trace_start"() <{level = 10 : i32, message = "bqd,bkd->bqk"}> : () -> ()
    %cst_19 = arith.constant dense<0.000000e+00> : vector<2x8x8xf32>
    %57 = tpu.matmul %54, %55, %cst_19 {dimension_numbers = #tpu.dot_dimension_numbers<[2], [2], [1], [1], [0, 0, 0, 1, 1, 1], [0], [0]>} : vector<2x8x16xf32>, vector<2x8x16xf32>, vector<2x8x8xf32> -> vector<2x8x8xf32>
    "tpu.trace_stop"() : () -> ()
    %58 = vector.broadcast %10 : vector<1x1x8xf32> to vector<2x8x8xf32>
    %59 = arith.addf %57, %58 : vector<2x8x8xf32>
    %cst_20 = arith.constant dense<0xFF800000> : vector<2x8xf32>
    %60 = vector.multi_reduction <maximumf>, %59, %cst_20 [2] : vector<2x8x8xf32> to vector<2x8xf32>
    %61 = vector.shape_cast %60 : vector<2x8xf32> to vector<2x8x1xf32>
    %62 = vector.broadcast %61 : vector<2x8x1xf32> to vector<2x8x8xf32>
    %63 = arith.subf %59, %62 : vector<2x8x8xf32>
    %64 = math.exp %63 : vector<2x8x8xf32>
    %cst_21 = arith.constant dense<0.000000e+00> : vector<2x8xf32>
    %65 = vector.multi_reduction <add>, %64, %cst_21 [2] : vector<2x8x8xf32> to vector<2x8xf32>
    %66 = vector.shape_cast %65 : vector<2x8xf32> to vector<2x8x1xf32>
    %67 = vector.broadcast %66 : vector<2x8x1xf32> to vector<2x8x8xf32>
    %68 = arith.divf %64, %67 : vector<2x8x8xf32>
    "tpu.trace_start"() <{level = 10 : i32, message = "bqk,bkd->bqd"}> : () -> ()
    %cst_22 = arith.constant dense<0.000000e+00> : vector<2x8x16xf32>
    %69 = tpu.matmul %68, %56, %cst_22 {dimension_numbers = #tpu.dot_dimension_numbers<[2], [1], [1], [2], [0, 0, 0, 1, 1, 2], [0], [0]>} : vector<2x8x8xf32>, vector<2x8x16xf32>, vector<2x8x16xf32> -> vector<2x8x16xf32>
    "tpu.trace_stop"() : () -> ()
    %70 = vector.shape_cast %69 : vector<2x8x16xf32> to vector<16x16xf32>
    %71 = arith.truncf %70 : vector<16x16xf32> to vector<16x16xbf16>
    %72 = vector.extract_strided_slice %53 {offsets = [0, 0], sizes = [16, 64], strides = [1, 1]} : vector<64x64xbf16> to vector<16x64xbf16>
    %cst_23 = arith.constant dense<0.000000e+00> : vector<16x64xf32>
    %73 = tpu.matmul %71, %72, %cst_23 {dimension_numbers = #tpu.dot_dimension_numbers<[1], [0], [0], [1], [0, 0, 1, 1], [], []>} : vector<16x16xbf16>, vector<16x64xbf16>, vector<16x64xf32> -> vector<16x64xf32>
    %74 = vector.extract_strided_slice %52 {offsets = [0, 0, 16], sizes = [2, 8, 16], strides = [1, 1, 1]} : vector<2x8x192xf32> to vector<2x8x16xf32>
    %75 = vector.extract_strided_slice %52 {offsets = [0, 0, 80], sizes = [2, 8, 16], strides = [1, 1, 1]} : vector<2x8x192xf32> to vector<2x8x16xf32>
    %76 = vector.extract_strided_slice %52 {offsets = [0, 0, 144], sizes = [2, 8, 16], strides = [1, 1, 1]} : vector<2x8x192xf32> to vector<2x8x16xf32>
    "tpu.trace_start"() <{level = 10 : i32, message = "bqd,bkd->bqk"}> : () -> ()
    %cst_24 = arith.constant dense<0.000000e+00> : vector<2x8x8xf32>
    %77 = tpu.matmul %74, %75, %cst_24 {dimension_numbers = #tpu.dot_dimension_numbers<[2], [2], [1], [1], [0, 0, 0, 1, 1, 1], [0], [0]>} : vector<2x8x16xf32>, vector<2x8x16xf32>, vector<2x8x8xf32> -> vector<2x8x8xf32>
    "tpu.trace_stop"() : () -> ()
    %78 = vector.broadcast %10 : vector<1x1x8xf32> to vector<2x8x8xf32>
    %79 = arith.addf %77, %78 : vector<2x8x8xf32>
    %cst_25 = arith.constant dense<0xFF800000> : vector<2x8xf32>
    %80 = vector.multi_reduction <maximumf>, %79, %cst_25 [2] : vector<2x8x8xf32> to vector<2x8xf32>
    %81 = vector.shape_cast %80 : vector<2x8xf32> to vector<2x8x1xf32>
    %82 = vector.broadcast %81 : vector<2x8x1xf32> to vector<2x8x8xf32>
    %83 = arith.subf %79, %82 : vector<2x8x8xf32>
    %84 = math.exp %83 : vector<2x8x8xf32>
    %cst_26 = arith.constant dense<0.000000e+00> : vector<2x8xf32>
    %85 = vector.multi_reduction <add>, %84, %cst_26 [2] : vector<2x8x8xf32> to vector<2x8xf32>
    %86 = vector.shape_cast %85 : vector<2x8xf32> to vector<2x8x1xf32>
    %87 = vector.broadcast %86 : vector<2x8x1xf32> to vector<2x8x8xf32>
    %88 = arith.divf %84, %87 : vector<2x8x8xf32>
    "tpu.trace_start"() <{level = 10 : i32, message = "bqk,bkd->bqd"}> : () -> ()
    %cst_27 = arith.constant dense<0.000000e+00> : vector<2x8x16xf32>
    %89 = tpu.matmul %88, %76, %cst_27 {dimension_numbers = #tpu.dot_dimension_numbers<[2], [1], [1], [2], [0, 0, 0, 1, 1, 2], [0], [0]>} : vector<2x8x8xf32>, vector<2x8x16xf32>, vector<2x8x16xf32> -> vector<2x8x16xf32>
    "tpu.trace_stop"() : () -> ()
    %90 = vector.shape_cast %89 : vector<2x8x16xf32> to vector<16x16xf32>
    %91 = arith.truncf %90 : vector<16x16xf32> to vector<16x16xbf16>
    %92 = vector.extract_strided_slice %53 {offsets = [16, 0], sizes = [16, 64], strides = [1, 1]} : vector<64x64xbf16> to vector<16x64xbf16>
    %cst_28 = arith.constant dense<0.000000e+00> : vector<16x64xf32>
    %93 = tpu.matmul %91, %92, %cst_28 {dimension_numbers = #tpu.dot_dimension_numbers<[1], [0], [0], [1], [0, 0, 1, 1], [], []>} : vector<16x16xbf16>, vector<16x64xbf16>, vector<16x64xf32> -> vector<16x64xf32>
    %94 = arith.addf %73, %93 : vector<16x64xf32>
    %95 = vector.extract_strided_slice %52 {offsets = [0, 0, 32], sizes = [2, 8, 16], strides = [1, 1, 1]} : vector<2x8x192xf32> to vector<2x8x16xf32>
    %96 = vector.extract_strided_slice %52 {offsets = [0, 0, 96], sizes = [2, 8, 16], strides = [1, 1, 1]} : vector<2x8x192xf32> to vector<2x8x16xf32>
    %97 = vector.extract_strided_slice %52 {offsets = [0, 0, 160], sizes = [2, 8, 16], strides = [1, 1, 1]} : vector<2x8x192xf32> to vector<2x8x16xf32>
    "tpu.trace_start"() <{level = 10 : i32, message = "bqd,bkd->bqk"}> : () -> ()
    %cst_29 = arith.constant dense<0.000000e+00> : vector<2x8x8xf32>
    %98 = tpu.matmul %95, %96, %cst_29 {dimension_numbers = #tpu.dot_dimension_numbers<[2], [2], [1], [1], [0, 0, 0, 1, 1, 1], [0], [0]>} : vector<2x8x16xf32>, vector<2x8x16xf32>, vector<2x8x8xf32> -> vector<2x8x8xf32>
    "tpu.trace_stop"() : () -> ()
    %99 = vector.broadcast %10 : vector<1x1x8xf32> to vector<2x8x8xf32>
    %100 = arith.addf %98, %99 : vector<2x8x8xf32>
    %cst_30 = arith.constant dense<0xFF800000> : vector<2x8xf32>
    %101 = vector.multi_reduction <maximumf>, %100, %cst_30 [2] : vector<2x8x8xf32> to vector<2x8xf32>
    %102 = vector.shape_cast %101 : vector<2x8xf32> to vector<2x8x1xf32>
    %103 = vector.broadcast %102 : vector<2x8x1xf32> to vector<2x8x8xf32>
    %104 = arith.subf %100, %103 : vector<2x8x8xf32>
    %105 = math.exp %104 : vector<2x8x8xf32>
    %cst_31 = arith.constant dense<0.000000e+00> : vector<2x8xf32>
    %106 = vector.multi_reduction <add>, %105, %cst_31 [2] : vector<2x8x8xf32> to vector<2x8xf32>
    %107 = vector.shape_cast %106 : vector<2x8xf32> to vector<2x8x1xf32>
    %108 = vector.broadcast %107 : vector<2x8x1xf32> to vector<2x8x8xf32>
    %109 = arith.divf %105, %108 : vector<2x8x8xf32>
    "tpu.trace_start"() <{level = 10 : i32, message = "bqk,bkd->bqd"}> : () -> ()
    %cst_32 = arith.constant dense<0.000000e+00> : vector<2x8x16xf32>
    %110 = tpu.matmul %109, %97, %cst_32 {dimension_numbers = #tpu.dot_dimension_numbers<[2], [1], [1], [2], [0, 0, 0, 1, 1, 2], [0], [0]>} : vector<2x8x8xf32>, vector<2x8x16xf32>, vector<2x8x16xf32> -> vector<2x8x16xf32>
    "tpu.trace_stop"() : () -> ()
    %111 = vector.shape_cast %110 : vector<2x8x16xf32> to vector<16x16xf32>
    %112 = arith.truncf %111 : vector<16x16xf32> to vector<16x16xbf16>
    %113 = vector.extract_strided_slice %53 {offsets = [32, 0], sizes = [16, 64], strides = [1, 1]} : vector<64x64xbf16> to vector<16x64xbf16>
    %cst_33 = arith.constant dense<0.000000e+00> : vector<16x64xf32>
    %114 = tpu.matmul %112, %113, %cst_33 {dimension_numbers = #tpu.dot_dimension_numbers<[1], [0], [0], [1], [0, 0, 1, 1], [], []>} : vector<16x16xbf16>, vector<16x64xbf16>, vector<16x64xf32> -> vector<16x64xf32>
    %115 = arith.addf %94, %114 : vector<16x64xf32>
    %116 = vector.extract_strided_slice %52 {offsets = [0, 0, 48], sizes = [2, 8, 16], strides = [1, 1, 1]} : vector<2x8x192xf32> to vector<2x8x16xf32>
    %117 = vector.extract_strided_slice %52 {offsets = [0, 0, 112], sizes = [2, 8, 16], strides = [1, 1, 1]} : vector<2x8x192xf32> to vector<2x8x16xf32>
    %118 = vector.extract_strided_slice %52 {offsets = [0, 0, 176], sizes = [2, 8, 16], strides = [1, 1, 1]} : vector<2x8x192xf32> to vector<2x8x16xf32>
    "tpu.trace_start"() <{level = 10 : i32, message = "bqd,bkd->bqk"}> : () -> ()
    %cst_34 = arith.constant dense<0.000000e+00> : vector<2x8x8xf32>
    %119 = tpu.matmul %116, %117, %cst_34 {dimension_numbers = #tpu.dot_dimension_numbers<[2], [2], [1], [1], [0, 0, 0, 1, 1, 1], [0], [0]>} : vector<2x8x16xf32>, vector<2x8x16xf32>, vector<2x8x8xf32> -> vector<2x8x8xf32>
    "tpu.trace_stop"() : () -> ()
    %120 = vector.broadcast %10 : vector<1x1x8xf32> to vector<2x8x8xf32>
    %121 = arith.addf %119, %120 : vector<2x8x8xf32>
    %cst_35 = arith.constant dense<0xFF800000> : vector<2x8xf32>
    %122 = vector.multi_reduction <maximumf>, %121, %cst_35 [2] : vector<2x8x8xf32> to vector<2x8xf32>
    %123 = vector.shape_cast %122 : vector<2x8xf32> to vector<2x8x1xf32>
    %124 = vector.broadcast %123 : vector<2x8x1xf32> to vector<2x8x8xf32>
    %125 = arith.subf %121, %124 : vector<2x8x8xf32>
    %126 = math.exp %125 : vector<2x8x8xf32>
    %cst_36 = arith.constant dense<0.000000e+00> : vector<2x8xf32>
    %127 = vector.multi_reduction <add>, %126, %cst_36 [2] : vector<2x8x8xf32> to vector<2x8xf32>
    %128 = vector.shape_cast %127 : vector<2x8xf32> to vector<2x8x1xf32>
    %129 = vector.broadcast %128 : vector<2x8x1xf32> to vector<2x8x8xf32>
    %130 = arith.divf %126, %129 : vector<2x8x8xf32>
    "tpu.trace_start"() <{level = 10 : i32, message = "bqk,bkd->bqd"}> : () -> ()
    %cst_37 = arith.constant dense<0.000000e+00> : vector<2x8x16xf32>
    %131 = tpu.matmul %130, %118, %cst_37 {dimension_numbers = #tpu.dot_dimension_numbers<[2], [1], [1], [2], [0, 0, 0, 1, 1, 2], [0], [0]>} : vector<2x8x8xf32>, vector<2x8x16xf32>, vector<2x8x16xf32> -> vector<2x8x16xf32>
    "tpu.trace_stop"() : () -> ()
    %132 = vector.shape_cast %131 : vector<2x8x16xf32> to vector<16x16xf32>
    %133 = arith.truncf %132 : vector<16x16xf32> to vector<16x16xbf16>
    %134 = vector.extract_strided_slice %53 {offsets = [48, 0], sizes = [16, 64], strides = [1, 1]} : vector<64x64xbf16> to vector<16x64xbf16>
    %cst_38 = arith.constant dense<0.000000e+00> : vector<16x64xf32>
    %135 = tpu.matmul %133, %134, %cst_38 {dimension_numbers = #tpu.dot_dimension_numbers<[1], [0], [0], [1], [0, 0, 1, 1], [], []>} : vector<16x16xbf16>, vector<16x64xbf16>, vector<16x64xf32> -> vector<16x64xf32>
    %136 = arith.addf %115, %135 : vector<16x64xf32>
    %137 = arith.addf %4, %136 : vector<16x64xf32>
    %138 = vector.broadcast %18 : vector<1x64xf32> to vector<16x64xf32>
    %139 = arith.addf %137, %138 : vector<16x64xf32>
    %cst_39 = arith.constant dense<0.000000e+00> : vector<16xf32>
    %140 = vector.multi_reduction <add>, %139, %cst_39 [1] : vector<16x64xf32> to vector<16xf32>
    %141 = vector.shape_cast %140 : vector<16xf32> to vector<16x1xf32>
    %cst_40 = arith.constant 6.400000e+01 : f32
    %142 = vector.broadcast %cst_40 : f32 to vector<16x1xf32>
    %143 = arith.divf %141, %142 : vector<16x1xf32>
    %144 = vector.broadcast %143 : vector<16x1xf32> to vector<16x64xf32>
    %145 = arith.subf %139, %144 : vector<16x64xf32>
    %146 = vector.broadcast %143 : vector<16x1xf32> to vector<16x64xf32>
    %147 = arith.subf %139, %146 : vector<16x64xf32>
    %148 = arith.mulf %145, %147 : vector<16x64xf32>
    %cst_41 = arith.constant dense<0.000000e+00> : vector<16xf32>
    %149 = vector.multi_reduction <add>, %148, %cst_41 [1] : vector<16x64xf32> to vector<16xf32>
    %150 = vector.shape_cast %149 : vector<16xf32> to vector<16x1xf32>
    %cst_42 = arith.constant 6.400000e+01 : f32
    %151 = vector.broadcast %cst_42 : f32 to vector<16x1xf32>
    %152 = arith.divf %150, %151 : vector<16x1xf32>
    %153 = vector.broadcast %143 : vector<16x1xf32> to vector<16x64xf32>
    %154 = arith.subf %139, %153 : vector<16x64xf32>
    %cst_43 = arith.constant 9.99999997E-7 : f32
    %155 = vector.broadcast %cst_43 : f32 to vector<16x1xf32>
    %156 = arith.addf %152, %155 : vector<16x1xf32>
    %157 = math.rsqrt %156 : vector<16x1xf32>
    %158 = vector.broadcast %157 : vector<16x1xf32> to vector<16x64xf32>
    %159 = arith.mulf %154, %158 : vector<16x64xf32>
    %160 = vector.broadcast %19 : vector<1x64xf32> to vector<16x64xf32>
    %161 = arith.mulf %159, %160 : vector<16x64xf32>
    %162 = vector.broadcast %20 : vector<1x64xf32> to vector<16x64xf32>
    %163 = arith.addf %161, %162 : vector<16x64xf32>
    %164 = arith.truncf %163 : vector<16x64xf32> to vector<16x64xbf16>
    %165 = vector.extract_strided_slice %12 {offsets = [0, 256], sizes = [64, 128], strides = [1, 1]} : vector<64x384xbf16> to vector<64x128xbf16>
    %cst_44 = arith.constant dense<0.000000e+00> : vector<16x128xf32>
    %166 = tpu.matmul %164, %165, %cst_44 {dimension_numbers = #tpu.dot_dimension_numbers<[1], [0], [0], [1], [0, 0, 1, 1], [], []>} : vector<16x64xbf16>, vector<64x128xbf16>, vector<16x128xf32> -> vector<16x128xf32>
    %167 = vector.broadcast %21 : vector<1x128xf32> to vector<16x128xf32>
    %168 = arith.addf %166, %167 : vector<16x128xf32>
    %cst_45 = arith.constant 5.000000e-01 : f32
    %169 = vector.broadcast %cst_45 : f32 to vector<16x128xf32>
    %170 = arith.mulf %169, %168 : vector<16x128xf32>
    %cst_46 = arith.constant 0.707106769 : f32
    %171 = vector.broadcast %cst_46 : f32 to vector<16x128xf32>
    %172 = arith.mulf %168, %171 : vector<16x128xf32>
    %173 = math.absf %172 : vector<16x128xf32>
    %cst_47 = arith.constant 0.327591091 : f32
    %174 = vector.broadcast %cst_47 : f32 to vector<16x128xf32>
    %175 = arith.mulf %174, %173 : vector<16x128xf32>
    %cst_48 = arith.constant 1.000000e+00 : f32
    %176 = vector.broadcast %cst_48 : f32 to vector<16x128xf32>
    %177 = arith.addf %176, %175 : vector<16x128xf32>
    %cst_49 = arith.constant 1.000000e+00 : f32
    %178 = vector.broadcast %cst_49 : f32 to vector<16x128xf32>
    %179 = arith.divf %178, %177 : vector<16x128xf32>
    %cst_50 = arith.constant 1.06140542 : f32
    %180 = vector.broadcast %cst_50 : f32 to vector<16x128xf32>
    %181 = arith.mulf %179, %180 : vector<16x128xf32>
    %cst_51 = arith.constant -1.45315206 : f32
    %182 = vector.broadcast %cst_51 : f32 to vector<16x128xf32>
    %183 = arith.addf %182, %181 : vector<16x128xf32>
    %184 = arith.mulf %179, %183 : vector<16x128xf32>
    %cst_52 = arith.constant 1.42141378 : f32
    %185 = vector.broadcast %cst_52 : f32 to vector<16x128xf32>
    %186 = arith.addf %185, %184 : vector<16x128xf32>
    %187 = arith.mulf %179, %186 : vector<16x128xf32>
    %cst_53 = arith.constant -0.284496725 : f32
    %188 = vector.broadcast %cst_53 : f32 to vector<16x128xf32>
    %189 = arith.addf %188, %187 : vector<16x128xf32>
    %190 = arith.mulf %179, %189 : vector<16x128xf32>
    %cst_54 = arith.constant 0.254829586 : f32
    %191 = vector.broadcast %cst_54 : f32 to vector<16x128xf32>
    %192 = arith.addf %191, %190 : vector<16x128xf32>
    %193 = arith.mulf %179, %192 : vector<16x128xf32>
    %cst_55 = arith.constant 0.000000e+00 : f32
    %194 = vector.broadcast %cst_55 : f32 to vector<16x128xf32>
    %195 = arith.subf %194, %173 : vector<16x128xf32>
    %196 = arith.mulf %195, %173 : vector<16x128xf32>
    %197 = math.exp %196 : vector<16x128xf32>
    %198 = arith.mulf %193, %197 : vector<16x128xf32>
    %cst_56 = arith.constant 1.000000e+00 : f32
    %199 = vector.broadcast %cst_56 : f32 to vector<16x128xf32>
    %200 = arith.subf %199, %198 : vector<16x128xf32>
    %cst_57 = arith.constant 0.000000e+00 : f32
    %201 = vector.broadcast %cst_57 : f32 to vector<16x128xf32>
    %202 = arith.cmpf oge, %172, %201 : vector<16x128xf32>
    %cst_58 = arith.constant 0.000000e+00 : f32
    %203 = vector.broadcast %cst_58 : f32 to vector<16x128xf32>
    %204 = arith.subf %203, %200 : vector<16x128xf32>
    %205 = arith.select %202, %200, %204 : vector<16x128xi1>, vector<16x128xf32>
    %cst_59 = arith.constant 1.000000e+00 : f32
    %206 = vector.broadcast %cst_59 : f32 to vector<16x128xf32>
    %207 = arith.addf %206, %205 : vector<16x128xf32>
    %208 = arith.mulf %170, %207 : vector<16x128xf32>
    %209 = arith.truncf %208 : vector<16x128xf32> to vector<16x128xbf16>
    %c0_60 = arith.constant 0 : index
    %c0_61 = arith.constant 0 : index
    %c0_62 = arith.constant 0 : index
    %210 = vector.load %arg5[%c0_60, %c0_61, %c0_62] : memref<2x128x64xbf16, #tpu.memory_space<vmem>>, vector<1x128x64xbf16>
    %211 = vector.shape_cast %210 : vector<1x128x64xbf16> to vector<128x64xbf16>
    %cst_63 = arith.constant dense<0.000000e+00> : vector<16x64xf32>
    %212 = tpu.matmul %209, %211, %cst_63 {dimension_numbers = #tpu.dot_dimension_numbers<[1], [0], [0], [1], [0, 0, 1, 1], [], []>} : vector<16x128xbf16>, vector<128x64xbf16>, vector<16x64xf32> -> vector<16x64xf32>
    %213 = vector.broadcast %22 : vector<1x64xf32> to vector<16x64xf32>
    %214 = arith.addf %212, %213 : vector<16x64xf32>
    %215 = arith.addf %139, %214 : vector<16x64xf32>
    %c1 = arith.constant 1 : index
    %c0_64 = arith.constant 0 : index
    %c0_65 = arith.constant 0 : index
    %216 = vector.load %arg4[%c1, %c0_64, %c0_65] : memref<2x64x384xbf16, #tpu.memory_space<vmem>>, vector<1x64x384xbf16>
    %217 = vector.shape_cast %216 : vector<1x64x384xbf16> to vector<64x384xbf16>
    %c1_66 = arith.constant 1 : index
    %c0_67 = arith.constant 0 : index
    %c0_68 = arith.constant 0 : index
    %218 = vector.load %arg6[%c1_66, %c0_67, %c0_68] : memref<2x8x192xf32, #tpu.memory_space<vmem>>, vector<1x8x192xf32>
    %219 = vector.shape_cast %218 : vector<1x8x192xf32> to vector<8x192xf32>
    %220 = vector.extract_strided_slice %219 {offsets = [0, 0], sizes = [1, 64], strides = [1, 1]} : vector<8x192xf32> to vector<1x64xf32>
    %221 = vector.extract_strided_slice %219 {offsets = [1, 0], sizes = [1, 64], strides = [1, 1]} : vector<8x192xf32> to vector<1x64xf32>
    %222 = vector.extract_strided_slice %219 {offsets = [2, 0], sizes = [1, 192], strides = [1, 1]} : vector<8x192xf32> to vector<1x192xf32>
    %223 = vector.extract_strided_slice %219 {offsets = [3, 0], sizes = [1, 64], strides = [1, 1]} : vector<8x192xf32> to vector<1x64xf32>
    %224 = vector.extract_strided_slice %219 {offsets = [4, 0], sizes = [1, 64], strides = [1, 1]} : vector<8x192xf32> to vector<1x64xf32>
    %225 = vector.extract_strided_slice %219 {offsets = [5, 0], sizes = [1, 64], strides = [1, 1]} : vector<8x192xf32> to vector<1x64xf32>
    %226 = vector.extract_strided_slice %219 {offsets = [6, 0], sizes = [1, 128], strides = [1, 1]} : vector<8x192xf32> to vector<1x128xf32>
    %227 = vector.extract_strided_slice %219 {offsets = [7, 0], sizes = [1, 64], strides = [1, 1]} : vector<8x192xf32> to vector<1x64xf32>
    %cst_69 = arith.constant dense<0.000000e+00> : vector<16xf32>
    %228 = vector.multi_reduction <add>, %215, %cst_69 [1] : vector<16x64xf32> to vector<16xf32>
    %229 = vector.shape_cast %228 : vector<16xf32> to vector<16x1xf32>
    %cst_70 = arith.constant 6.400000e+01 : f32
    %230 = vector.broadcast %cst_70 : f32 to vector<16x1xf32>
    %231 = arith.divf %229, %230 : vector<16x1xf32>
    %232 = vector.broadcast %231 : vector<16x1xf32> to vector<16x64xf32>
    %233 = arith.subf %215, %232 : vector<16x64xf32>
    %234 = vector.broadcast %231 : vector<16x1xf32> to vector<16x64xf32>
    %235 = arith.subf %215, %234 : vector<16x64xf32>
    %236 = arith.mulf %233, %235 : vector<16x64xf32>
    %cst_71 = arith.constant dense<0.000000e+00> : vector<16xf32>
    %237 = vector.multi_reduction <add>, %236, %cst_71 [1] : vector<16x64xf32> to vector<16xf32>
    %238 = vector.shape_cast %237 : vector<16xf32> to vector<16x1xf32>
    %cst_72 = arith.constant 6.400000e+01 : f32
    %239 = vector.broadcast %cst_72 : f32 to vector<16x1xf32>
    %240 = arith.divf %238, %239 : vector<16x1xf32>
    %241 = vector.broadcast %231 : vector<16x1xf32> to vector<16x64xf32>
    %242 = arith.subf %215, %241 : vector<16x64xf32>
    %cst_73 = arith.constant 9.99999997E-7 : f32
    %243 = vector.broadcast %cst_73 : f32 to vector<16x1xf32>
    %244 = arith.addf %240, %243 : vector<16x1xf32>
    %245 = math.rsqrt %244 : vector<16x1xf32>
    %246 = vector.broadcast %245 : vector<16x1xf32> to vector<16x64xf32>
    %247 = arith.mulf %242, %246 : vector<16x64xf32>
    %248 = vector.broadcast %220 : vector<1x64xf32> to vector<16x64xf32>
    %249 = arith.mulf %247, %248 : vector<16x64xf32>
    %250 = vector.broadcast %221 : vector<1x64xf32> to vector<16x64xf32>
    %251 = arith.addf %249, %250 : vector<16x64xf32>
    %252 = arith.truncf %251 : vector<16x64xf32> to vector<16x64xbf16>
    %253 = vector.extract_strided_slice %217 {offsets = [0, 0], sizes = [64, 192], strides = [1, 1]} : vector<64x384xbf16> to vector<64x192xbf16>
    %cst_74 = arith.constant dense<0.000000e+00> : vector<16x192xf32>
    %254 = tpu.matmul %252, %253, %cst_74 {dimension_numbers = #tpu.dot_dimension_numbers<[1], [0], [0], [1], [0, 0, 1, 1], [], []>} : vector<16x64xbf16>, vector<64x192xbf16>, vector<16x192xf32> -> vector<16x192xf32>
    %255 = vector.broadcast %222 : vector<1x192xf32> to vector<16x192xf32>
    %256 = arith.addf %254, %255 : vector<16x192xf32>
    %257 = vector.shape_cast %256 : vector<16x192xf32> to vector<2x8x192xf32>
    %258 = vector.extract_strided_slice %217 {offsets = [0, 192], sizes = [64, 64], strides = [1, 1]} : vector<64x384xbf16> to vector<64x64xbf16>
    %259 = vector.extract_strided_slice %257 {offsets = [0, 0, 0], sizes = [2, 8, 16], strides = [1, 1, 1]} : vector<2x8x192xf32> to vector<2x8x16xf32>
    %260 = vector.extract_strided_slice %257 {offsets = [0, 0, 64], sizes = [2, 8, 16], strides = [1, 1, 1]} : vector<2x8x192xf32> to vector<2x8x16xf32>
    %261 = vector.extract_strided_slice %257 {offsets = [0, 0, 128], sizes = [2, 8, 16], strides = [1, 1, 1]} : vector<2x8x192xf32> to vector<2x8x16xf32>
    "tpu.trace_start"() <{level = 10 : i32, message = "bqd,bkd->bqk"}> : () -> ()
    %cst_75 = arith.constant dense<0.000000e+00> : vector<2x8x8xf32>
    %262 = tpu.matmul %259, %260, %cst_75 {dimension_numbers = #tpu.dot_dimension_numbers<[2], [2], [1], [1], [0, 0, 0, 1, 1, 1], [0], [0]>} : vector<2x8x16xf32>, vector<2x8x16xf32>, vector<2x8x8xf32> -> vector<2x8x8xf32>
    "tpu.trace_stop"() : () -> ()
    %263 = vector.broadcast %10 : vector<1x1x8xf32> to vector<2x8x8xf32>
    %264 = arith.addf %262, %263 : vector<2x8x8xf32>
    %cst_76 = arith.constant dense<0xFF800000> : vector<2x8xf32>
    %265 = vector.multi_reduction <maximumf>, %264, %cst_76 [2] : vector<2x8x8xf32> to vector<2x8xf32>
    %266 = vector.shape_cast %265 : vector<2x8xf32> to vector<2x8x1xf32>
    %267 = vector.broadcast %266 : vector<2x8x1xf32> to vector<2x8x8xf32>
    %268 = arith.subf %264, %267 : vector<2x8x8xf32>
    %269 = math.exp %268 : vector<2x8x8xf32>
    %cst_77 = arith.constant dense<0.000000e+00> : vector<2x8xf32>
    %270 = vector.multi_reduction <add>, %269, %cst_77 [2] : vector<2x8x8xf32> to vector<2x8xf32>
    %271 = vector.shape_cast %270 : vector<2x8xf32> to vector<2x8x1xf32>
    %272 = vector.broadcast %271 : vector<2x8x1xf32> to vector<2x8x8xf32>
    %273 = arith.divf %269, %272 : vector<2x8x8xf32>
    "tpu.trace_start"() <{level = 10 : i32, message = "bqk,bkd->bqd"}> : () -> ()
    %cst_78 = arith.constant dense<0.000000e+00> : vector<2x8x16xf32>
    %274 = tpu.matmul %273, %261, %cst_78 {dimension_numbers = #tpu.dot_dimension_numbers<[2], [1], [1], [2], [0, 0, 0, 1, 1, 2], [0], [0]>} : vector<2x8x8xf32>, vector<2x8x16xf32>, vector<2x8x16xf32> -> vector<2x8x16xf32>
    "tpu.trace_stop"() : () -> ()
    %275 = vector.shape_cast %274 : vector<2x8x16xf32> to vector<16x16xf32>
    %276 = arith.truncf %275 : vector<16x16xf32> to vector<16x16xbf16>
    %277 = vector.extract_strided_slice %258 {offsets = [0, 0], sizes = [16, 64], strides = [1, 1]} : vector<64x64xbf16> to vector<16x64xbf16>
    %cst_79 = arith.constant dense<0.000000e+00> : vector<16x64xf32>
    %278 = tpu.matmul %276, %277, %cst_79 {dimension_numbers = #tpu.dot_dimension_numbers<[1], [0], [0], [1], [0, 0, 1, 1], [], []>} : vector<16x16xbf16>, vector<16x64xbf16>, vector<16x64xf32> -> vector<16x64xf32>
    %279 = vector.extract_strided_slice %257 {offsets = [0, 0, 16], sizes = [2, 8, 16], strides = [1, 1, 1]} : vector<2x8x192xf32> to vector<2x8x16xf32>
    %280 = vector.extract_strided_slice %257 {offsets = [0, 0, 80], sizes = [2, 8, 16], strides = [1, 1, 1]} : vector<2x8x192xf32> to vector<2x8x16xf32>
    %281 = vector.extract_strided_slice %257 {offsets = [0, 0, 144], sizes = [2, 8, 16], strides = [1, 1, 1]} : vector<2x8x192xf32> to vector<2x8x16xf32>
    "tpu.trace_start"() <{level = 10 : i32, message = "bqd,bkd->bqk"}> : () -> ()
    %cst_80 = arith.constant dense<0.000000e+00> : vector<2x8x8xf32>
    %282 = tpu.matmul %279, %280, %cst_80 {dimension_numbers = #tpu.dot_dimension_numbers<[2], [2], [1], [1], [0, 0, 0, 1, 1, 1], [0], [0]>} : vector<2x8x16xf32>, vector<2x8x16xf32>, vector<2x8x8xf32> -> vector<2x8x8xf32>
    "tpu.trace_stop"() : () -> ()
    %283 = vector.broadcast %10 : vector<1x1x8xf32> to vector<2x8x8xf32>
    %284 = arith.addf %282, %283 : vector<2x8x8xf32>
    %cst_81 = arith.constant dense<0xFF800000> : vector<2x8xf32>
    %285 = vector.multi_reduction <maximumf>, %284, %cst_81 [2] : vector<2x8x8xf32> to vector<2x8xf32>
    %286 = vector.shape_cast %285 : vector<2x8xf32> to vector<2x8x1xf32>
    %287 = vector.broadcast %286 : vector<2x8x1xf32> to vector<2x8x8xf32>
    %288 = arith.subf %284, %287 : vector<2x8x8xf32>
    %289 = math.exp %288 : vector<2x8x8xf32>
    %cst_82 = arith.constant dense<0.000000e+00> : vector<2x8xf32>
    %290 = vector.multi_reduction <add>, %289, %cst_82 [2] : vector<2x8x8xf32> to vector<2x8xf32>
    %291 = vector.shape_cast %290 : vector<2x8xf32> to vector<2x8x1xf32>
    %292 = vector.broadcast %291 : vector<2x8x1xf32> to vector<2x8x8xf32>
    %293 = arith.divf %289, %292 : vector<2x8x8xf32>
    "tpu.trace_start"() <{level = 10 : i32, message = "bqk,bkd->bqd"}> : () -> ()
    %cst_83 = arith.constant dense<0.000000e+00> : vector<2x8x16xf32>
    %294 = tpu.matmul %293, %281, %cst_83 {dimension_numbers = #tpu.dot_dimension_numbers<[2], [1], [1], [2], [0, 0, 0, 1, 1, 2], [0], [0]>} : vector<2x8x8xf32>, vector<2x8x16xf32>, vector<2x8x16xf32> -> vector<2x8x16xf32>
    "tpu.trace_stop"() : () -> ()
    %295 = vector.shape_cast %294 : vector<2x8x16xf32> to vector<16x16xf32>
    %296 = arith.truncf %295 : vector<16x16xf32> to vector<16x16xbf16>
    %297 = vector.extract_strided_slice %258 {offsets = [16, 0], sizes = [16, 64], strides = [1, 1]} : vector<64x64xbf16> to vector<16x64xbf16>
    %cst_84 = arith.constant dense<0.000000e+00> : vector<16x64xf32>
    %298 = tpu.matmul %296, %297, %cst_84 {dimension_numbers = #tpu.dot_dimension_numbers<[1], [0], [0], [1], [0, 0, 1, 1], [], []>} : vector<16x16xbf16>, vector<16x64xbf16>, vector<16x64xf32> -> vector<16x64xf32>
    %299 = arith.addf %278, %298 : vector<16x64xf32>
    %300 = vector.extract_strided_slice %257 {offsets = [0, 0, 32], sizes = [2, 8, 16], strides = [1, 1, 1]} : vector<2x8x192xf32> to vector<2x8x16xf32>
    %301 = vector.extract_strided_slice %257 {offsets = [0, 0, 96], sizes = [2, 8, 16], strides = [1, 1, 1]} : vector<2x8x192xf32> to vector<2x8x16xf32>
    %302 = vector.extract_strided_slice %257 {offsets = [0, 0, 160], sizes = [2, 8, 16], strides = [1, 1, 1]} : vector<2x8x192xf32> to vector<2x8x16xf32>
    "tpu.trace_start"() <{level = 10 : i32, message = "bqd,bkd->bqk"}> : () -> ()
    %cst_85 = arith.constant dense<0.000000e+00> : vector<2x8x8xf32>
    %303 = tpu.matmul %300, %301, %cst_85 {dimension_numbers = #tpu.dot_dimension_numbers<[2], [2], [1], [1], [0, 0, 0, 1, 1, 1], [0], [0]>} : vector<2x8x16xf32>, vector<2x8x16xf32>, vector<2x8x8xf32> -> vector<2x8x8xf32>
    "tpu.trace_stop"() : () -> ()
    %304 = vector.broadcast %10 : vector<1x1x8xf32> to vector<2x8x8xf32>
    %305 = arith.addf %303, %304 : vector<2x8x8xf32>
    %cst_86 = arith.constant dense<0xFF800000> : vector<2x8xf32>
    %306 = vector.multi_reduction <maximumf>, %305, %cst_86 [2] : vector<2x8x8xf32> to vector<2x8xf32>
    %307 = vector.shape_cast %306 : vector<2x8xf32> to vector<2x8x1xf32>
    %308 = vector.broadcast %307 : vector<2x8x1xf32> to vector<2x8x8xf32>
    %309 = arith.subf %305, %308 : vector<2x8x8xf32>
    %310 = math.exp %309 : vector<2x8x8xf32>
    %cst_87 = arith.constant dense<0.000000e+00> : vector<2x8xf32>
    %311 = vector.multi_reduction <add>, %310, %cst_87 [2] : vector<2x8x8xf32> to vector<2x8xf32>
    %312 = vector.shape_cast %311 : vector<2x8xf32> to vector<2x8x1xf32>
    %313 = vector.broadcast %312 : vector<2x8x1xf32> to vector<2x8x8xf32>
    %314 = arith.divf %310, %313 : vector<2x8x8xf32>
    "tpu.trace_start"() <{level = 10 : i32, message = "bqk,bkd->bqd"}> : () -> ()
    %cst_88 = arith.constant dense<0.000000e+00> : vector<2x8x16xf32>
    %315 = tpu.matmul %314, %302, %cst_88 {dimension_numbers = #tpu.dot_dimension_numbers<[2], [1], [1], [2], [0, 0, 0, 1, 1, 2], [0], [0]>} : vector<2x8x8xf32>, vector<2x8x16xf32>, vector<2x8x16xf32> -> vector<2x8x16xf32>
    "tpu.trace_stop"() : () -> ()
    %316 = vector.shape_cast %315 : vector<2x8x16xf32> to vector<16x16xf32>
    %317 = arith.truncf %316 : vector<16x16xf32> to vector<16x16xbf16>
    %318 = vector.extract_strided_slice %258 {offsets = [32, 0], sizes = [16, 64], strides = [1, 1]} : vector<64x64xbf16> to vector<16x64xbf16>
    %cst_89 = arith.constant dense<0.000000e+00> : vector<16x64xf32>
    %319 = tpu.matmul %317, %318, %cst_89 {dimension_numbers = #tpu.dot_dimension_numbers<[1], [0], [0], [1], [0, 0, 1, 1], [], []>} : vector<16x16xbf16>, vector<16x64xbf16>, vector<16x64xf32> -> vector<16x64xf32>
    %320 = arith.addf %299, %319 : vector<16x64xf32>
    %321 = vector.extract_strided_slice %257 {offsets = [0, 0, 48], sizes = [2, 8, 16], strides = [1, 1, 1]} : vector<2x8x192xf32> to vector<2x8x16xf32>
    %322 = vector.extract_strided_slice %257 {offsets = [0, 0, 112], sizes = [2, 8, 16], strides = [1, 1, 1]} : vector<2x8x192xf32> to vector<2x8x16xf32>
    %323 = vector.extract_strided_slice %257 {offsets = [0, 0, 176], sizes = [2, 8, 16], strides = [1, 1, 1]} : vector<2x8x192xf32> to vector<2x8x16xf32>
    "tpu.trace_start"() <{level = 10 : i32, message = "bqd,bkd->bqk"}> : () -> ()
    %cst_90 = arith.constant dense<0.000000e+00> : vector<2x8x8xf32>
    %324 = tpu.matmul %321, %322, %cst_90 {dimension_numbers = #tpu.dot_dimension_numbers<[2], [2], [1], [1], [0, 0, 0, 1, 1, 1], [0], [0]>} : vector<2x8x16xf32>, vector<2x8x16xf32>, vector<2x8x8xf32> -> vector<2x8x8xf32>
    "tpu.trace_stop"() : () -> ()
    %325 = vector.broadcast %10 : vector<1x1x8xf32> to vector<2x8x8xf32>
    %326 = arith.addf %324, %325 : vector<2x8x8xf32>
    %cst_91 = arith.constant dense<0xFF800000> : vector<2x8xf32>
    %327 = vector.multi_reduction <maximumf>, %326, %cst_91 [2] : vector<2x8x8xf32> to vector<2x8xf32>
    %328 = vector.shape_cast %327 : vector<2x8xf32> to vector<2x8x1xf32>
    %329 = vector.broadcast %328 : vector<2x8x1xf32> to vector<2x8x8xf32>
    %330 = arith.subf %326, %329 : vector<2x8x8xf32>
    %331 = math.exp %330 : vector<2x8x8xf32>
    %cst_92 = arith.constant dense<0.000000e+00> : vector<2x8xf32>
    %332 = vector.multi_reduction <add>, %331, %cst_92 [2] : vector<2x8x8xf32> to vector<2x8xf32>
    %333 = vector.shape_cast %332 : vector<2x8xf32> to vector<2x8x1xf32>
    %334 = vector.broadcast %333 : vector<2x8x1xf32> to vector<2x8x8xf32>
    %335 = arith.divf %331, %334 : vector<2x8x8xf32>
    "tpu.trace_start"() <{level = 10 : i32, message = "bqk,bkd->bqd"}> : () -> ()
    %cst_93 = arith.constant dense<0.000000e+00> : vector<2x8x16xf32>
    %336 = tpu.matmul %335, %323, %cst_93 {dimension_numbers = #tpu.dot_dimension_numbers<[2], [1], [1], [2], [0, 0, 0, 1, 1, 2], [0], [0]>} : vector<2x8x8xf32>, vector<2x8x16xf32>, vector<2x8x16xf32> -> vector<2x8x16xf32>
    "tpu.trace_stop"() : () -> ()
    %337 = vector.shape_cast %336 : vector<2x8x16xf32> to vector<16x16xf32>
    %338 = arith.truncf %337 : vector<16x16xf32> to vector<16x16xbf16>
    %339 = vector.extract_strided_slice %258 {offsets = [48, 0], sizes = [16, 64], strides = [1, 1]} : vector<64x64xbf16> to vector<16x64xbf16>
    %cst_94 = arith.constant dense<0.000000e+00> : vector<16x64xf32>
    %340 = tpu.matmul %338, %339, %cst_94 {dimension_numbers = #tpu.dot_dimension_numbers<[1], [0], [0], [1], [0, 0, 1, 1], [], []>} : vector<16x16xbf16>, vector<16x64xbf16>, vector<16x64xf32> -> vector<16x64xf32>
    %341 = arith.addf %320, %340 : vector<16x64xf32>
    %342 = arith.addf %215, %341 : vector<16x64xf32>
    %343 = vector.broadcast %223 : vector<1x64xf32> to vector<16x64xf32>
    %344 = arith.addf %342, %343 : vector<16x64xf32>
    %cst_95 = arith.constant dense<0.000000e+00> : vector<16xf32>
    %345 = vector.multi_reduction <add>, %344, %cst_95 [1] : vector<16x64xf32> to vector<16xf32>
    %346 = vector.shape_cast %345 : vector<16xf32> to vector<16x1xf32>
    %cst_96 = arith.constant 6.400000e+01 : f32
    %347 = vector.broadcast %cst_96 : f32 to vector<16x1xf32>
    %348 = arith.divf %346, %347 : vector<16x1xf32>
    %349 = vector.broadcast %348 : vector<16x1xf32> to vector<16x64xf32>
    %350 = arith.subf %344, %349 : vector<16x64xf32>
    %351 = vector.broadcast %348 : vector<16x1xf32> to vector<16x64xf32>
    %352 = arith.subf %344, %351 : vector<16x64xf32>
    %353 = arith.mulf %350, %352 : vector<16x64xf32>
    %cst_97 = arith.constant dense<0.000000e+00> : vector<16xf32>
    %354 = vector.multi_reduction <add>, %353, %cst_97 [1] : vector<16x64xf32> to vector<16xf32>
    %355 = vector.shape_cast %354 : vector<16xf32> to vector<16x1xf32>
    %cst_98 = arith.constant 6.400000e+01 : f32
    %356 = vector.broadcast %cst_98 : f32 to vector<16x1xf32>
    %357 = arith.divf %355, %356 : vector<16x1xf32>
    %358 = vector.broadcast %348 : vector<16x1xf32> to vector<16x64xf32>
    %359 = arith.subf %344, %358 : vector<16x64xf32>
    %cst_99 = arith.constant 9.99999997E-7 : f32
    %360 = vector.broadcast %cst_99 : f32 to vector<16x1xf32>
    %361 = arith.addf %357, %360 : vector<16x1xf32>
    %362 = math.rsqrt %361 : vector<16x1xf32>
    %363 = vector.broadcast %362 : vector<16x1xf32> to vector<16x64xf32>
    %364 = arith.mulf %359, %363 : vector<16x64xf32>
    %365 = vector.broadcast %224 : vector<1x64xf32> to vector<16x64xf32>
    %366 = arith.mulf %364, %365 : vector<16x64xf32>
    %367 = vector.broadcast %225 : vector<1x64xf32> to vector<16x64xf32>
    %368 = arith.addf %366, %367 : vector<16x64xf32>
    %369 = arith.truncf %368 : vector<16x64xf32> to vector<16x64xbf16>
    %370 = vector.extract_strided_slice %217 {offsets = [0, 256], sizes = [64, 128], strides = [1, 1]} : vector<64x384xbf16> to vector<64x128xbf16>
    %cst_100 = arith.constant dense<0.000000e+00> : vector<16x128xf32>
    %371 = tpu.matmul %369, %370, %cst_100 {dimension_numbers = #tpu.dot_dimension_numbers<[1], [0], [0], [1], [0, 0, 1, 1], [], []>} : vector<16x64xbf16>, vector<64x128xbf16>, vector<16x128xf32> -> vector<16x128xf32>
    %372 = vector.broadcast %226 : vector<1x128xf32> to vector<16x128xf32>
    %373 = arith.addf %371, %372 : vector<16x128xf32>
    %cst_101 = arith.constant 5.000000e-01 : f32
    %374 = vector.broadcast %cst_101 : f32 to vector<16x128xf32>
    %375 = arith.mulf %374, %373 : vector<16x128xf32>
    %cst_102 = arith.constant 0.707106769 : f32
    %376 = vector.broadcast %cst_102 : f32 to vector<16x128xf32>
    %377 = arith.mulf %373, %376 : vector<16x128xf32>
    %378 = math.absf %377 : vector<16x128xf32>
    %cst_103 = arith.constant 0.327591091 : f32
    %379 = vector.broadcast %cst_103 : f32 to vector<16x128xf32>
    %380 = arith.mulf %379, %378 : vector<16x128xf32>
    %cst_104 = arith.constant 1.000000e+00 : f32
    %381 = vector.broadcast %cst_104 : f32 to vector<16x128xf32>
    %382 = arith.addf %381, %380 : vector<16x128xf32>
    %cst_105 = arith.constant 1.000000e+00 : f32
    %383 = vector.broadcast %cst_105 : f32 to vector<16x128xf32>
    %384 = arith.divf %383, %382 : vector<16x128xf32>
    %cst_106 = arith.constant 1.06140542 : f32
    %385 = vector.broadcast %cst_106 : f32 to vector<16x128xf32>
    %386 = arith.mulf %384, %385 : vector<16x128xf32>
    %cst_107 = arith.constant -1.45315206 : f32
    %387 = vector.broadcast %cst_107 : f32 to vector<16x128xf32>
    %388 = arith.addf %387, %386 : vector<16x128xf32>
    %389 = arith.mulf %384, %388 : vector<16x128xf32>
    %cst_108 = arith.constant 1.42141378 : f32
    %390 = vector.broadcast %cst_108 : f32 to vector<16x128xf32>
    %391 = arith.addf %390, %389 : vector<16x128xf32>
    %392 = arith.mulf %384, %391 : vector<16x128xf32>
    %cst_109 = arith.constant -0.284496725 : f32
    %393 = vector.broadcast %cst_109 : f32 to vector<16x128xf32>
    %394 = arith.addf %393, %392 : vector<16x128xf32>
    %395 = arith.mulf %384, %394 : vector<16x128xf32>
    %cst_110 = arith.constant 0.254829586 : f32
    %396 = vector.broadcast %cst_110 : f32 to vector<16x128xf32>
    %397 = arith.addf %396, %395 : vector<16x128xf32>
    %398 = arith.mulf %384, %397 : vector<16x128xf32>
    %cst_111 = arith.constant 0.000000e+00 : f32
    %399 = vector.broadcast %cst_111 : f32 to vector<16x128xf32>
    %400 = arith.subf %399, %378 : vector<16x128xf32>
    %401 = arith.mulf %400, %378 : vector<16x128xf32>
    %402 = math.exp %401 : vector<16x128xf32>
    %403 = arith.mulf %398, %402 : vector<16x128xf32>
    %cst_112 = arith.constant 1.000000e+00 : f32
    %404 = vector.broadcast %cst_112 : f32 to vector<16x128xf32>
    %405 = arith.subf %404, %403 : vector<16x128xf32>
    %cst_113 = arith.constant 0.000000e+00 : f32
    %406 = vector.broadcast %cst_113 : f32 to vector<16x128xf32>
    %407 = arith.cmpf oge, %377, %406 : vector<16x128xf32>
    %cst_114 = arith.constant 0.000000e+00 : f32
    %408 = vector.broadcast %cst_114 : f32 to vector<16x128xf32>
    %409 = arith.subf %408, %405 : vector<16x128xf32>
    %410 = arith.select %407, %405, %409 : vector<16x128xi1>, vector<16x128xf32>
    %cst_115 = arith.constant 1.000000e+00 : f32
    %411 = vector.broadcast %cst_115 : f32 to vector<16x128xf32>
    %412 = arith.addf %411, %410 : vector<16x128xf32>
    %413 = arith.mulf %375, %412 : vector<16x128xf32>
    %414 = arith.truncf %413 : vector<16x128xf32> to vector<16x128xbf16>
    %c1_116 = arith.constant 1 : index
    %c0_117 = arith.constant 0 : index
    %c0_118 = arith.constant 0 : index
    %415 = vector.load %arg5[%c1_116, %c0_117, %c0_118] : memref<2x128x64xbf16, #tpu.memory_space<vmem>>, vector<1x128x64xbf16>
    %416 = vector.shape_cast %415 : vector<1x128x64xbf16> to vector<128x64xbf16>
    %cst_119 = arith.constant dense<0.000000e+00> : vector<16x64xf32>
    %417 = tpu.matmul %414, %416, %cst_119 {dimension_numbers = #tpu.dot_dimension_numbers<[1], [0], [0], [1], [0, 0, 1, 1], [], []>} : vector<16x128xbf16>, vector<128x64xbf16>, vector<16x64xf32> -> vector<16x64xf32>
    %418 = vector.broadcast %227 : vector<1x64xf32> to vector<16x64xf32>
    %419 = arith.addf %417, %418 : vector<16x64xf32>
    %420 = arith.addf %344, %419 : vector<16x64xf32>
    %c0_120 = arith.constant 0 : index
    %c0_121 = arith.constant 0 : index
    %421 = vector.load %arg7[%c0_120, %c0_121] : memref<2x64xf32, #tpu.memory_space<vmem>>, vector<1x64xf32>
    %c1_122 = arith.constant 1 : index
    %c0_123 = arith.constant 0 : index
    %422 = vector.load %arg7[%c1_122, %c0_123] : memref<2x64xf32, #tpu.memory_space<vmem>>, vector<1x64xf32>
    %cst_124 = arith.constant dense<0.000000e+00> : vector<16xf32>
    %423 = vector.multi_reduction <add>, %420, %cst_124 [1] : vector<16x64xf32> to vector<16xf32>
    %424 = vector.shape_cast %423 : vector<16xf32> to vector<16x1xf32>
    %cst_125 = arith.constant 6.400000e+01 : f32
    %425 = vector.broadcast %cst_125 : f32 to vector<16x1xf32>
    %426 = arith.divf %424, %425 : vector<16x1xf32>
    %427 = vector.broadcast %426 : vector<16x1xf32> to vector<16x64xf32>
    %428 = arith.subf %420, %427 : vector<16x64xf32>
    %429 = vector.broadcast %426 : vector<16x1xf32> to vector<16x64xf32>
    %430 = arith.subf %420, %429 : vector<16x64xf32>
    %431 = arith.mulf %428, %430 : vector<16x64xf32>
    %cst_126 = arith.constant dense<0.000000e+00> : vector<16xf32>
    %432 = vector.multi_reduction <add>, %431, %cst_126 [1] : vector<16x64xf32> to vector<16xf32>
    %433 = vector.shape_cast %432 : vector<16xf32> to vector<16x1xf32>
    %cst_127 = arith.constant 6.400000e+01 : f32
    %434 = vector.broadcast %cst_127 : f32 to vector<16x1xf32>
    %435 = arith.divf %433, %434 : vector<16x1xf32>
    %436 = vector.broadcast %426 : vector<16x1xf32> to vector<16x64xf32>
    %437 = arith.subf %420, %436 : vector<16x64xf32>
    %cst_128 = arith.constant 9.99999997E-7 : f32
    %438 = vector.broadcast %cst_128 : f32 to vector<16x1xf32>
    %439 = arith.addf %435, %438 : vector<16x1xf32>
    %440 = math.rsqrt %439 : vector<16x1xf32>
    %441 = vector.broadcast %440 : vector<16x1xf32> to vector<16x64xf32>
    %442 = arith.mulf %437, %441 : vector<16x64xf32>
    %443 = vector.broadcast %421 : vector<1x64xf32> to vector<16x64xf32>
    %444 = arith.mulf %442, %443 : vector<16x64xf32>
    %445 = vector.broadcast %422 : vector<1x64xf32> to vector<16x64xf32>
    %446 = arith.addf %444, %445 : vector<16x64xf32>
    %447 = tpu.iota {dimensions = array<i32: 1>} : vector<1x8x1xi32>
    %c0_i32 = arith.constant 0 : i32
    %448 = vector.broadcast %c0_i32 : i32 to vector<1x8x1xi32>
    %449 = arith.cmpi eq, %447, %448 : vector<1x8x1xi32>
    %450 = arith.extui %449 : vector<1x8x1xi1> to vector<1x8x1xi32>
    %451 = arith.sitofp %450 : vector<1x8x1xi32> to vector<1x8x1xf32>
    %452 = vector.shape_cast %446 : vector<16x64xf32> to vector<2x8x64xf32>
    %453 = vector.broadcast %451 : vector<1x8x1xf32> to vector<2x8x64xf32>
    %454 = arith.mulf %452, %453 : vector<2x8x64xf32>
    %cst_129 = arith.constant dense<0.000000e+00> : vector<2x64xf32>
    %455 = vector.multi_reduction <add>, %454, %cst_129 [1] : vector<2x8x64xf32> to vector<2x64xf32>
    %c0_130 = arith.constant 0 : index
    %c0_131 = arith.constant 0 : index
    %456 = vector.load %arg8[%c0_130, %c0_131] : memref<64x2xf32, #tpu.memory_space<vmem>>, vector<64x2xf32>
    %cst_132 = arith.constant dense<0.000000e+00> : vector<2x2xf32>
    %457 = tpu.matmul %455, %456, %cst_132 {dimension_numbers = #tpu.dot_dimension_numbers<[1], [0], [0], [1], [0, 0, 1, 1], [], []>} : vector<2x64xf32>, vector<64x2xf32>, vector<2x2xf32> -> vector<2x2xf32>
    %c0_133 = arith.constant 0 : index
    %c0_134 = arith.constant 0 : index
    %458 = vector.load %arg9[%c0_133, %c0_134] : memref<1x2xf32, #tpu.memory_space<vmem>>, vector<1x2xf32>
    %459 = vector.broadcast %458 : vector<1x2xf32> to vector<2x2xf32>
    %460 = arith.addf %457, %459 : vector<2x2xf32>
    %c0_135 = arith.constant 0 : index
    %c0_136 = arith.constant 0 : index
    %461 = vector.load %arg10[%c0_135, %c0_136] : memref<2x2xf32, #tpu.memory_space<vmem>>, vector<2x2xf32>
    tpu.vector_store %arg10[%c0_135, %c0_136], %460 {strides = array<i32>} : memref<2x2xf32, #tpu.memory_space<vmem>>, vector<2x2xf32>,
    return
  }
  func.func @transform_0(%arg0: i32) -> (i32, i32) {
    %c0_i32 = arith.constant 0 : i32
    %c0_i32_0 = arith.constant 0 : i32
    return %arg0, %c0_i32 : i32, i32
  }
  func.func @transform_1(%arg0: i32) -> (i32, i32) {
    %c0_i32 = arith.constant 0 : i32
    %c0_i32_0 = arith.constant 0 : i32
    %c0_i32_1 = arith.constant 0 : i32
    return %c0_i32, %c0_i32_0 : i32, i32
  }
  func.func @transform_2(%arg0: i32) -> (i32, i32) {
    %c0_i32 = arith.constant 0 : i32
    %c0_i32_0 = arith.constant 0 : i32
    %c0_i32_1 = arith.constant 0 : i32
    return %c0_i32, %c0_i32_0 : i32, i32
  }
  func.func @transform_3(%arg0: i32) -> (i32, i32, i32) {
    %c0_i32 = arith.constant 0 : i32
    %c0_i32_0 = arith.constant 0 : i32
    %c0_i32_1 = arith.constant 0 : i32
    %c0_i32_2 = arith.constant 0 : i32
    return %c0_i32, %c0_i32_0, %c0_i32_1 : i32, i32, i32
  }
  func.func @transform_4(%arg0: i32) -> (i32, i32, i32) {
    %c0_i32 = arith.constant 0 : i32
    %c0_i32_0 = arith.constant 0 : i32
    %c0_i32_1 = arith.constant 0 : i32
    %c0_i32_2 = arith.constant 0 : i32
    return %c0_i32, %c0_i32_0, %c0_i32_1 : i32, i32, i32
  }
  func.func @transform_5(%arg0: i32) -> (i32, i32, i32) {
    %c0_i32 = arith.constant 0 : i32
    %c0_i32_0 = arith.constant 0 : i32
    %c0_i32_1 = arith.constant 0 : i32
    %c0_i32_2 = arith.constant 0 : i32
    return %c0_i32, %c0_i32_0, %c0_i32_1 : i32, i32, i32
  }
  func.func @transform_6(%arg0: i32) -> (i32, i32) {
    %c0_i32 = arith.constant 0 : i32
    %c0_i32_0 = arith.constant 0 : i32
    %c0_i32_1 = arith.constant 0 : i32
    return %c0_i32, %c0_i32_0 : i32, i32
  }
  func.func @transform_7(%arg0: i32) -> (i32, i32) {
    %c0_i32 = arith.constant 0 : i32
    %c0_i32_0 = arith.constant 0 : i32
    %c0_i32_1 = arith.constant 0 : i32
    return %c0_i32, %c0_i32_0 : i32, i32
  }
  func.func @transform_8(%arg0: i32) -> (i32, i32) {
    %c0_i32 = arith.constant 0 : i32
    %c0_i32_0 = arith.constant 0 : i32
    %c0_i32_1 = arith.constant 0 : i32
    return %c0_i32, %c0_i32_0 : i32, i32
  }
  func.func @transform_9(%arg0: i32) -> (i32, i32) {
    %c0_i32 = arith.constant 0 : i32
    %c0_i32_0 = arith.constant 0 : i32
    return %arg0, %c0_i32 : i32, i32
  }
}

</mosaic_0001>

<bundles_post_ra>
// kernel: anchor_network_forward.1
= control target key start
LH: loop header
LB: loop body
LE: loop exit
PB: predicated region body
PF: predicated region fallthrough
CT: control target
= control target key end

     0   :  { %s6528_s0 = inlined_call_operand.vmem [shape: bf16[16,768], index: 0, kind: input, shape index: {}]   ;;  %s6529_s1 = inlined_call_operand.vmem [shape: bf16[768,64], index: 1, kind: input, shape index: {}]   ;;  %s6530_s2 = inlined_call_operand.vmem [shape: f32[16,64], index: 2, kind: input, shape index: {}]   ;;  %s6531_s3 = inlined_call_operand.vmem [shape: bf16[2,64,384], index: 3, kind: input, shape index: {}]   ;;  %s6532_s4 = inlined_call_operand.vmem [shape: bf16[2,128,64], index: 4, kind: input, shape index: {}]   ;;  %s6533_s5 = inlined_call_operand.vmem [shape: f32[2,8,192], index: 5, kind: input, shape index: {}]   ;;  %s6534_s6 = inlined_call_operand.vmem [shape: f32[2,64], index: 6, kind: input, shape index: {}]   ;;  %s6535_s7 = inlined_call_operand.vmem [shape: f32[64,2], index: 7, kind: input, shape index: {}]   ;;  %s6536_s8 = inlined_call_operand.vmem [shape: f32[1,2], index: 8, kind: input, shape index: {}]   ;;  %s6537_s9 = inlined_call_operand.hbm [shape: f32[2,2], index: 9, kind: output, shape index: {}]  }
   0x1   :  { %v5329_v0 = vld [vmem:[%s6529_s1 + $0x78] sm:$0xff]   ;;  %v5333_v4 = vld [vmem:[%s6529_s1 + $0x70] sm:$0xff]   ;;  %v5337_v8 = vld [vmem:[%s6529_s1 + $0x68] sm:$0xff]  }
   0x2   :  { %v5330_v1 = vld [vmem:[%s6529_s1 + $0x38] sm:$0xff]   ;;  %4843 = vmatprep.subr.bf16.mxu0 %v5329_v0  ;;  %v5334_v5 = vld [vmem:[%s6529_s1 + $0x30] sm:$0xff]   ;;  %v5338_v9 = vld [vmem:[%s6529_s1 + $0x28] sm:$0xff]  }
   0x3   :  { %v5331_v2 = vld [vmem:[%s6529_s1 + $0xf8] sm:$0xff]   ;;  %4844 = vmatpush3.bf16.msra.mxu0 %v5330_v1  ;;  %v5335_v6 = vld [vmem:[%s6529_s1 + $0xf0] sm:$0xff]   ;;  %v5339_v10 = vld [vmem:[%s6529_s1 + $0xe8] sm:$0xff]  }
   0x4   :  { %v5332_v3 = vld [vmem:[%s6529_s1 + $0xb8] sm:$0xff]   ;;  %4865 = vmatprep.subr.bf16.mxu1 %v5331_v2  ;;  %4845 = vmatprep.subr.bf16.mxu0 %v5333_v4  ;;  %v5336_v7 = vld [vmem:[%s6529_s1 + $0xb0] sm:$0xff]   ;;  %v5340_v11 = vld [vmem:[%s6529_s1 + $0xa8] sm:$0xff]  }
   0x5   :  { %4866 = vmatpush3.bf16.msra.mxu1 %v5332_v3  ;;  %v5341_v12 = vld [vmem:[%s6529_s1 + $0x60] sm:$0xff]   ;;  %v5345_v16 = vld [vmem:[%s6529_s1 + $0x58] sm:$0xff]   ;;  %v5349_v20 = vld [vmem:[%s6529_s1 + $0x50] sm:$0xff]  }
   0x6   :  { %4867 = vmatprep.subr.bf16.mxu1 %v5335_v6  ;;  %v5342_v13 = vld [vmem:[%s6529_s1 + $0x20] sm:$0xff]   ;;  %v5346_v17 = vld [vmem:[%s6529_s1 + $0x18] sm:$0xff]   ;;  %v5350_v21 = vld [vmem:[%s6529_s1 + $0x10] sm:$0xff]  }
   0x7   :  { %4846 = vmatpush3.bf16.msra.mxu0 %v5334_v5  ;;  %v5343_v14 = vld [vmem:[%s6529_s1 + $0xe0] sm:$0xff]   ;;  %v5347_v18 = vld [vmem:[%s6529_s1 + $0xd8] sm:$0xff]   ;;  %v5351_v22 = vld [vmem:[%s6529_s1 + $0xd0] sm:$0xff]  }
   0x8   :  { %4847 = vmatprep.subr.bf16.mxu0 %v5337_v8  ;;  %v5344_v15 = vld [vmem:[%s6529_s1 + $0xa0] sm:$0xff]   ;;  %v5348_v19 = vld [vmem:[%s6529_s1 + $0x98] sm:$0xff]   ;;  %v5352_v23 = vld [vmem:[%s6529_s1 + $0x90] sm:$0xff]  }
   0x9   :  { %4868 = vmatpush3.bf16.msra.mxu1 %v5336_v7  ;;  %v5353_v24 = vld [vmem:[%s6529_s1 + $0x48] sm:$0xff]   ;;  %v5357_v28 = vld [vmem:[%s6529_s1 + $0x40] sm:$0xff]   ;;  %v5364_v34 = vld [vmem:[%s6529_s1 + $0x178] sm:$0xff]  }
   0xa   :  { %4869 = vmatprep.subr.bf16.mxu1 %v5339_v10  ;;  %v5354_v25 = vld [vmem:[%s6529_s1 + $0x8] sm:$0xff]   ;;  %v5358_v29 = vld [vmem:[%s6529_s1] sm:$0xff]   ;;  %v5368_v37 = vld [vmem:[%s6529_s1 + $0x138] sm:$0xff]  }
   0xb   :  { %4848 = vmatpush3.bf16.msra.mxu0 %v5338_v9  ;;  %v5355_v26 = vld [vmem:[%s6529_s1 + $0xc8] sm:$0xff]   ;;  %v5359_v30 = vld [vmem:[%s6529_s1 + $0xc0] sm:$0xff]   ;;  %v5369_v38 = vld [vmem:[%s6529_s1 + $0x170] sm:$0xff]  }
   0xc   :  { %4849 = vmatprep.subr.bf16.mxu0 %v5341_v12  ;;  %v5356_v27 = vld [vmem:[%s6529_s1 + $0x88] sm:$0xff]   ;;  %v5360_v31 = vld [vmem:[%s6528_s0] ss:$24 sps:$4 sm:$0xff]   ;;  %v5362_v32 = vld [vmem:[%s6528_s0 + $0x4] ss:$24 sps:$4 sm:$0xff]  }
   0xd   :  { %4870 = vmatpush3.bf16.msra.mxu1 %v5340_v11  ;;  %v5363_v33 = vld [vmem:[%s6529_s1 + $0x80] sm:$0xff]   ;;  %488 = vmatprep.mubr.bf16.mxu0 %v5362_v32  ;;  %v5370_v39 = vld [vmem:[%s6529_s1 + $0x130] sm:$0xff]   ;;  %v5371_v40 = vld [vmem:[%s6529_s1 + $0x168] sm:$0xff]  }
   0xe   :  { %4871 = vmatprep.subr.bf16.mxu1 %v5343_v14  ;;  %v5365_v35 = vld [vmem:[%s6528_s0 + $0x8] ss:$24 sps:$4 sm:$0xff]   ;;  %v5367_v36 = vld [vmem:[%s6528_s0 + $0xc] ss:$24 sps:$4 sm:$0xff]   ;;  %v5375_v44 = vld [vmem:[%s6529_s1 + $0x158] sm:$0xff]  }
   0xf   :  { %4850 = vmatpush3.bf16.msra.mxu0 %v5342_v13  ;;  %529 = vmatprep.mubr.bf16.mxu1 %v5367_v36  ;;  %v5372_v41 = vld [vmem:[%s6529_s1 + $0x128] sm:$0xff]   ;;  %v5373_v42 = vld [vmem:[%s6529_s1 + $0x160] sm:$0xff]   ;;  %v5376_v45 = vld [vmem:[%s6529_s1 + $0x118] sm:$0xff]  }
  0x10   :  { %4851 = vmatprep.subr.bf16.mxu0 %v5345_v16  ;;  %v5374_v43 = vld [vmem:[%s6529_s1 + $0x120] sm:$0xff]   ;;  %v5377_v46 = vld [vmem:[%s6529_s1 + $0x150] sm:$0xff]   ;;  %v5379_v49 = vld [vmem:[%s6529_s1 + $0x148] sm:$0xff]  }
  0x11   :  { %4872 = vmatpush3.bf16.msra.mxu1 %v5344_v15  ;;  %v5385_v47 = vld [vmem:[%s6528_s0 + $0x14] ss:$24 sps:$4 sm:$0xff]   ;;  %v5381_v51 = vld [vmem:[%s6529_s1 + $0x140] sm:$0xff]   ;;  %v5383_v53 = vld [vmem:[%s6528_s0 + $0x10] ss:$24 sps:$4 sm:$0xff]  }
  0x12   :  { %4873 = vmatprep.subr.bf16.mxu1 %v5347_v18  ;;  %v5378_v48 = vld [vmem:[%s6529_s1 + $0x110] sm:$0xff]   ;;  %v5380_v50 = vld [vmem:[%s6529_s1 + $0x108] sm:$0xff]   ;;  %v5382_v52 = vld [vmem:[%s6529_s1 + $0x100] sm:$0xff]  }
  0x13   :  { %4852 = vmatpush3.bf16.msra.mxu0 %v5346_v17 }
  0x14   :  { %4853 = vmatprep.subr.bf16.mxu0 %v5349_v20 }
  0x15   :  { %4874 = vmatpush3.bf16.msra.mxu1 %v5348_v19 }
  0x16   :  { %4875 = vmatprep.subr.bf16.mxu1 %v5351_v22 }
  0x17   :  { %4854 = vmatpush3.bf16.msra.mxu0 %v5350_v21 }
  0x18   :  { %4855 = vmatprep.subr.bf16.mxu0 %v5353_v24 }
  0x19   :  { %4876 = vmatpush3.bf16.msra.mxu1 %v5352_v23 }
  0x1a   :  { %4877 = vmatprep.subr.bf16.mxu1 %v5355_v26 }
  0x1b   :  { %4856 = vmatpush3.bf16.msra.mxu0 %v5354_v25 }
  0x1c   :  { %4857 = vmatprep.subr.bf16.mxu0 %v5357_v28 }
  0x1d   :  { %4878 = vmatpush3.bf16.msra.mxu1 %v5356_v27 }
  0x1e   :  { %4879 = vmatprep.subr.bf16.mxu1 %v5359_v30 }
  0x1f   :  { %4858 = vmatpush3.bf16.msra.mxu0 %v5358_v29 }
  0x20   :  { %4887 = vmatprep.subr.bf16.mxu0 %v5364_v34 }
  0x21   :  { %4880 = vmatpush3.bf16.msra.mxu1 %v5363_v33 }
  0x22   :  { %489 = vmatmul.mubr.bf16.vlgmr.msra.gmra.mxu0 %v5360_v31 }
  0x23   :  { %4888 = vmatpush3.bf16.msra.mxu0 %v5368_v37  ;;  %570 = vmatprep.mubr.bf16.mxu0 %v5385_v47 }
  0x24   :  { %530 = vmatmul.mubr.bf16.vlgmr.msra.gmra.mxu1 %v5365_v35  ;;  %4889 = vmatprep.subr.bf16.mxu0 %v5369_v38 }
  0x27   :  { %4890 = vmatpush3.bf16.msra.mxu0 %v5370_v39 }
  0x28   :  { %4891 = vmatprep.subr.bf16.mxu0 %v5371_v40 }
  0x2b   :  { %4892 = vmatpush3.bf16.msra.mxu0 %v5372_v41 }
  0x2c   :  { %4893 = vmatprep.subr.bf16.mxu0 %v5373_v42 }
  0x2f   :  { %4894 = vmatpush3.bf16.msra.mxu0 %v5374_v43 }
  0x30   :  { %4895 = vmatprep.subr.bf16.mxu0 %v5375_v44 }
  0x33   :  { %4896 = vmatpush3.bf16.msra.mxu0 %v5376_v45 }
  0x34   :  { %4897 = vmatprep.subr.bf16.mxu0 %v5377_v46 }
  0x37   :  { %4898 = vmatpush3.bf16.msra.mxu0 %v5378_v48 }
  0x38   :  { %4899 = vmatprep.subr.bf16.mxu0 %v5379_v49 }
  0x3b   :  { %4900 = vmatpush3.bf16.msra.mxu0 %v5380_v50 }
  0x3c   :  { %4901 = vmatprep.subr.bf16.mxu0 %v5381_v51 }
  0x3f   :  { %4902 = vmatpush3.bf16.msra.mxu0 %v5382_v52 }
  0x42   :  { %571 = vmatmul.mubr.bf16.vlgmr.msra.gmra.mxu0 %v5383_v53 }
  0x43   :  { %14 = vsyncpa [#allocation3], 0  ;;  %v136_v60 = vld [vmem:[%s6530_s2] sm:$0xff]  ;;  %v137_v2 = vld [vmem:[%s6530_s2 + $0x8] sm:$0xff]  ;;  %vm601_vm0 = vcmask 523264   ;;  %v5556_v36 = vmov 0   ;;  %v579_v43 = vlaneseq }
  0x44   :  { %v5801_v28 = vld [vmem:[%s6531_s3 + $0x4c] ss:$12 sps:$4 sm:$0xff]   ;;  %v5386_v29 = vld [vmem:[%s6531_s3 + $0x48] ss:$12 sps:$4 sm:$0xff]   ;;  %v5389_v31 = vld [vmem:[%s6531_s3 + $0x30] ss:$12 sps:$4 sm:$0xff]   ;;  %725 = vmatprep.mubr.bf16.mxu1 %v5556_v36 }
  0x45   :  { %701 = vmatprep.subr.bf16.mxu1 %v5801_v28  ;;  %v5810_v30 = vld [vmem:[%s6531_s3 + $0x34] ss:$12 sps:$4 sm:$0xff]   ;;  %v5819_v32 = vld [vmem:[%s6531_s3 + $0x1c] ss:$12 sps:$4 sm:$0xff]   ;;  %v5392_v33 = vld [vmem:[%s6531_s3 + $0x18] ss:$12 sps:$4 sm:$0xff]  }
  0x46   :  { %702 = vmatpush1.bf16.msra.mxu1 %v5386_v29  ;;  %v5828_v34 = vld [vmem:[%s6531_s3 + $0x4] ss:$12 sps:$4 sm:$0xff]   ;;  %v5395_v35 = vld [vmem:[%s6531_s3] ss:$12 sps:$4 sm:$0xff]   ;;  %v5835_v44 = vshrl.u32 %v579_v43, 7  ;;  %vm5558_vm1 = vmmov 0  }
  0x47   :  { %703 = vmatprep.subr.bf16.mxu1 %v5810_v30  ;;  %v5841_v46 = vld [vmem:[%s6533_s5] sm:$0xff]  ;;  %s5559_s10 = smov 64   ;;  %vm739_vm2 = vcmask 130048   ;;  %vm891_vm4 = vcmask 64512   ;;  %s5561_s13 = smov 48   ;;  %vm4560_vm10 = vcmask 1041409  }
  0x48   :  { %v631_v45 = vsub.s32 0, %v5835_v44  ;;  %v637_v50 = vsub.s32 1, %v5835_v44  ;;  %s5562_s1 = smov 112   ;;  %s5563_s0 = smov 32   ;;  %vm4524_vm9 = vcmp.eq.s32.totalorder %v5835_v44, 0  ;;  %vm4634_vm11 = vcmask 9216  }
  0x49   :  { %s5564_s2 = smov 96   ;;  %s5565_s14 = smov 16  }
  0x4a   :  { %704 = vmatpush1.bf16.msra.mxu1 %v5389_v31  ;;  %v632_v49 = vrot.slane %v5841_v46, %v631_v45  ;;  %s5566_s15 = smov 80   ;;  %s5567_s17 = smov [#allocation2]  }
  0x4b   :  { %705 = vmatprep.subr.bf16.mxu1 %v5819_v32  ;;  %s4642_s18 = sshll.u32 %s5567_s17, 4  ;;  %s4643_s18 = int_to_ptr.vmem [resolvable:$true] %s4642_s18 }
  0x4c   :  { %s5534_s19 = scalar_lea.vmem %s4643_s18, 32  ;;  %p5539_p1 = scmp.lt.s32.totalorder %s4643_s18, %s4643_s18 }
  0x4d   :  { %p5535_p0 = scmp.ne.s32.totalorder %s4643_s18, %s5534_s19  ;;  %p5540_p2 = scmp.lt.s32.totalorder %s5534_s19, %s5534_s19 }
  0x4e   :  { %706 = vmatpush1.bf16.msra.mxu1 %v5392_v33 }
  0x4f   :  { %707 = vmatprep.subr.bf16.mxu1 %v5828_v34  ;;  %p5541_p3 = por %p5540_p2, %p5539_p1 }
  0x51   :  { %p5542_p4 = pnand %p5541_p3, %p5535_p0 }
  0x52   :  { %708 = vmatpush1.bf16.msra.mxu1 %v5395_v35 }
  0xe2   :  { %v4859_v54 = vpop.f32.mrf.mxu0 }
  0xe4   :  { %v4860_v55 = vpop.f32.mrf.mxu0  ;;  %v4881_v56 = vpop.f32.mrf.mxu1 }
  0xe5   :  { %v4861_v59 = vadd.f32 %v4860_v55, %v4859_v54  ;;  %v638_v54 = vrot.slane %v5841_v46, %v637_v50 }
  0xe6   :  { %v4862_v57 = vpop.f32.mrf.mxu0  ;;  %v4882_v58 = vpop.f32.mrf.mxu1 }
  0xe7   :  { %v491_v63 = vadd.f32 %v4861_v59, %v136_v60  ;;  %v4883_v0 = vadd.f32 %v4882_v58, %v4881_v56  ;;  %v5557_v59 = vmov 0.0   ;;  %v5858_v60 = vsub.s32 2, %v5835_v44 }
  0xe8   :  { %v4863_v61 = vpop.f32.mrf.mxu0  ;;  %v4884_v62 = vpop.f32.mrf.mxu1  ;;  %5026 = vmatprep.subr.mxu1 %v5557_v59  ;;  %5046 = vmatprep.subr.mxu0 %v5557_v59 }
  0xe9   :  { %v4864_v1 = vadd.f32 %v4863_v61, %v4862_v57  ;;  %v532_v6 = vadd.f32 %v4883_v0, %v491_v63  ;;  %5048 = vmatprep.mubr.msk.f32.mxu0 %vm5558_vm1, %v5557_v59  ;;  %v645_v61 = vrot.slane %v5841_v46, %v5858_v60 }
  0xea   :  { %v4885_v3 = vpop.f32.mrf.mxu1 }
  0xeb   :  { %v494_v7 = vadd.f32 %v4864_v1, %v137_v2  ;;  %v4886_v8 = vadd.f32 %v4885_v3, %v4884_v62  ;;  %v600_v3 = vld [vmem:[%s6533_s5 + $0x8] sm:$0xff] }
  0xed   :  { %v535_v13 = vadd.f32 %v4886_v8, %v494_v7  ;;  %v580_v8 = vand.u32 127, %v579_v43 }
  0xef   :  { %vm581_vm3 = vcmp.lt.s32.totalorder %v580_v8, 5 }
 0x102   :  { %v4903_v4 = vpop.f32.mrf.mxu0 }
 0x104   :  { %v4904_v5 = vpop.f32.mrf.mxu0 }
 0x105   :  { %v4905_v9 = vadd.f32 %v4904_v5, %v4903_v4  ;;  %v649_v5 = vrot.slane %v600_v3, %v5858_v60 }
 0x106   :  { %v4906_v10 = vpop.f32.mrf.mxu0 }
 0x107   :  { %v5786_v11 = vadd.f32 %v4905_v9, %v532_v6  ;;  %v5560_v9 = vmov -1e+30  }
 0x108   :  { %v4907_v12 = vpop.f32.mrf.mxu0 }
 0x109   :  { %v4908_v14 = vadd.f32 %v4907_v12, %v4906_v10  ;;  %v602_v15 = vsel %vm601_vm0, %v5786_v11, 0.0  ;;  %v5890_v10 = vsel %vm581_vm3, 0.0, %v5560_v9 }
 0x10a   :  { %603 = vadd.xlane.f32.xlu0 %v602_v15 }
 0x10b   :  { %v5790_v16 = vadd.f32 %v4908_v14, %v535_v13 }
 0x10d   :  { %v605_v17 = vsel %vm601_vm0, %v5790_v16, 0.0 }
 0x10e   :  { %606 = vadd.xlane.f32.xlu0 %v605_v17 }
 0x193   :  { %v604_v18 = vpop.xlane.xlu0 %603 }
 0x194   :  { %v609_v19 = vmul.f32 0.015625, %v604_v18 }
 0x196   :  { %v611_v20 = vsub.f32 %v5786_v11, %v609_v19 }
 0x197   :  { %v607_v21 = vpop.xlane.xlu0 %606 }
 0x198   :  { %v610_v22 = vmul.f32 0.015625, %v607_v21  ;;  %v613_v23 = vmul.f32 %v611_v20, %v611_v20 }
 0x19a   :  { %v612_v24 = vsub.f32 %v5790_v16, %v610_v22  ;;  %v615_v25 = vsel %vm601_vm0, %v613_v23, 0.0 }
 0x19b   :  { %616 = vadd.xlane.f32.xlu1 %v615_v25 }
 0x19c   :  { %v614_v26 = vmul.f32 %v612_v24, %v612_v24 }
 0x19e   :  { %v618_v27 = vsel %vm601_vm0, %v614_v26, 0.0 }
 0x19f   :  { %619 = vadd.xlane.f32.xlu1 %v618_v27 }
 0x224   :  { %v617_v37 = vpop.xlane.xlu1 %616 }
 0x225   :  { %v621_v38 = vmul.f32 0.015625, %v617_v37 }
 0x227   :  { %v623_v39 = vadd.f32 1e-06, %v621_v38 }
 0x228   :  { %v620_v40 = vpop.xlane.xlu1 %619 }
 0x229   :  { %5434 = vrsqrt.f32 %v623_v39  ;;  %v622_v41 = vmul.f32 0.015625, %v620_v40 }
 0x22b   :  { %v624_v42 = vadd.f32 1e-06, %v622_v41 }
 0x22d   :  { %5436 = vrsqrt.f32 %v624_v42 }
 0x236   :  { %v5435_v47 = vpop.eup %5434 }
 0x237   :  { %v627_v48 = vmul.f32 %v5435_v47, %v611_v20 }
 0x239   :  { %v633_v53 = vmul.f32 %v632_v49, %v627_v48 }
 0x23a   :  { %v5437_v51 = vpop.eup %5436 }
 0x23b   :  { %v628_v52 = vmul.f32 %v5437_v51, %v612_v24  ;;  %v639_v56 = vadd.f32 %v638_v54, %v633_v53 }
 0x23d   :  { %v634_v55 = vmul.f32 %v632_v49, %v628_v52 }
 0x23f   :  { %v640_v57 = vadd.f32 %v638_v54, %v634_v55 }
 0x241   :  { %v641_v58 = vpack.c.bf16 %v640_v57, %v639_v56 }
 0x243   :  { %4712 = vmatmul.mubr.msk.bf16.vlgmr.msra.gmra.mxu1 %vm601_vm0, %v641_v58 }
 0x244   :  { %5028 = vmatprep.mubr.msk.f32.mxu1 %vm5558_vm1, %v5557_v59 }
 0x303   :  { %v727_v62 = vpop.f32.mrf.mxu1 }
 0x304   :  { %v5862_v63 = vadd.f32 %v727_v62, %v645_v61 }
 0x305   :  { %v729_v0 = vpop.f32.mrf.mxu1 }
 0x306   :  { %737 = vrot.lane.b32.xlu0 %v5862_v63, %s5559_s10  ;;  %v5882_v7 = vadd.f32 %v729_v0, %v649_v5 }
 0x307   :  { %v731_v1 = vpop.f32.mrf.mxu1 }
 0x308   :  { %v5866_v2 = vadd.f32 %v731_v1, %v645_v61 }
 0x309   :  { %v733_v12 = vpop.f32.mrf.mxu1 }
 0x30a   :  { %815 = vrot.lane.b32.xlu1 %v5866_v2, %s5559_s10  ;;  %v5911_v47 = vadd.f32 %v733_v12, %v649_v5 }
 0x378   :  { %v738_v4 = vpop.permute.xlu0 %737 }
 0x379   :  { %5027 = vmatpush3.xpose.msk.msra.mxu1 %vm739_vm2, %v738_v4 }
 0x37a   :  { %5031 = vmatprep.subr.mxu1 %v5557_v59 }
 0x37c   :  { %v816_v6 = vpop.permute.xlu1 %815  ;;  %5029 = vmatmul.mubr.msk.f32.vlgmr.msra.gmra.mxu1 %vm739_vm2, %v5862_v63 }
 0x37d   :  { %5032 = vmatpush3.xpose.msk.msra.mxu1 %vm739_vm2, %v816_v6  ;;  %5033 = vmatprep.mubr.msk.f32.mxu1 %vm5558_vm1, %v5557_v59 }
 0x37e   :  { %5036 = vmatprep.subr.mxu1 %v5557_v59 }
 0x380   :  { %5034 = vmatmul.mubr.msk.f32.vlgmr.msra.gmra.mxu1 %vm739_vm2, %v5866_v2 }
 0x381   :  { %5037 = vmatpush3.msra.mxu1 %v5882_v7  ;;  %5038 = vmatprep.mubr.msk.f32.mxu1 %vm5558_vm1, %v5557_v59 }
 0x382   :  { %5041 = vmatprep.subr.mxu1 %v5557_v59 }
 0x43c   :  { %v810_v13 = vpop.f32.mrf.mxu1 }
 0x43d   :  { %v811_v14 = vadd.f32 %v810_v13, %v5890_v10 }
 0x43e   :  { %v5030_v15 = vpop.f32.mrf.mxu1 }
 0x43f   :  { %v892_v17 = vsel %vm891_vm4, %v811_v14, -inf }
 0x440   :  { %893 = vmax.xlane.f32.xlu1 %v892_v17  ;;  %v887_v18 = vpop.f32.mrf.mxu1 }
 0x441   :  { %v888_v19 = vadd.f32 %v887_v18, %v5890_v10 }
 0x442   :  { %v5035_v20 = vpop.f32.mrf.mxu1 }
 0x443   :  { %v895_v21 = vsel %vm891_vm4, %v888_v19, -inf }
 0x444   :  { %896 = vmax.xlane.f32.xlu0 %v895_v21 }
 0x451   :  { %1141 = vrot.lane.b32.xlu1 %v5866_v2, %s5561_s13 }
 0x455   :  { %1061 = vrot.lane.b32.xlu1 %v5862_v63, %s5562_s1 }
 0x4c9   :  { %v894_v22 = vpop.xlane.xlu1 %893 }
 0x4ca   :  { %v898_v23 = vsub.f32 %v811_v14, %v894_v22 }
 0x4cc   :  { %v900_v24 = vmul.f32 1.442695, %v898_v23 }
 0x4cd   :  { %v897_v25 = vpop.xlane.xlu0 %896  ;;  %v1142_v37 = vpop.permute.xlu1 %1141 }
 0x4ce   :  { %5438 = vpow2.f32 %v900_v24  ;;  %v899_v26 = vsub.f32 %v888_v19, %v897_v25 }
 0x4d0   :  { %v902_v27 = vmul.f32 1.442695, %v899_v26 }
 0x4d1   :  { %v1062_v38 = vpop.permute.xlu1 %1061 }
 0x4d2   :  { %5440 = vpow2.f32 %v902_v27 }
 0x4db   :  { %v5439_v29 = vpop.eup %5438 }
 0x4dc   :  { %v904_v31 = vsel %vm891_vm4, %v5439_v29, 0.0 }
 0x4dd   :  { %905 = vadd.xlane.f32.xlu0 %v904_v31 }
 0x4df   :  { %v5441_v33 = vpop.eup %5440 }
 0x4e0   :  { %v907_v35 = vsel %vm891_vm4, %v5441_v33, 0.0 }
 0x4e1   :  { %908 = vadd.xlane.f32.xlu1 %v907_v35 }
 0x4f2   :  { %1139 = vrot.lane.b32.xlu1 %v5866_v2, %s5562_s1 }
 0x4f3   :  { %1063 = vrot.lane.b32.xlu0 %v5862_v63, %s5561_s13 }
 0x566   :  { %v906_v39 = vpop.xlane.xlu0 %905 }
 0x567   :  { %5442 = vrcp.f32 %v906_v39 }
 0x56a   :  { %v909_v40 = vpop.xlane.xlu1 %908  ;;  %v1064_v41 = vpop.permute.xlu0 %1063 }
 0x56b   :  { %5444 = vrcp.f32 %v909_v40  ;;  %5047 = vmatpush3.xpose.msk.msra.mxu0 %vm739_vm2, %v1064_v41 }
 0x56c   :  { %5056 = vmatprep.subr.mxu0 %v5557_v59 }
 0x56e   :  { %5049 = vmatmul.mubr.msk.f32.vlgmr.msra.gmra.mxu0 %vm739_vm2, %v1062_v38  ;;  %v1140_v51 = vpop.permute.xlu1 %1139 }
 0x56f   :  { %5058 = vmatprep.mubr.msk.f32.mxu0 %vm5558_vm1, %v5557_v59 }
 0x574   :  { %v5443_v42 = vpop.eup %5442 }
 0x575   :  { %v911_v43 = vmul.f32 %v5443_v42, %v5439_v29 }
 0x577   :  { %5039 = vmatmul.mubr.msk.f32.vlgmr.msra.gmra.mxu1 %vm891_vm4, %v911_v43 }
 0x578   :  { %v5445_v48 = vpop.eup %5444  ;;  %5042 = vmatpush3.msra.mxu1 %v5911_v47  ;;  %5043 = vmatprep.mubr.msk.f32.mxu1 %vm5558_vm1, %v5557_v59 }
 0x579   :  { %5051 = vmatprep.subr.mxu1 %v5557_v59  ;;  %v913_v49 = vmul.f32 %v5445_v48, %v5441_v33 }
 0x57b   :  { %5044 = vmatmul.mubr.msk.f32.vlgmr.msra.gmra.mxu1 %vm891_vm4, %v913_v49 }
 0x57c   :  { %5052 = vmatpush3.xpose.msk.msra.mxu1 %vm739_vm2, %v1142_v37  ;;  %5053 = vmatprep.mubr.msk.f32.mxu1 %vm5558_vm1, %v5557_v59 }
 0x57d   :  { %5061 = vmatprep.subr.mxu1 %v5557_v59 }
 0x57f   :  { %5054 = vmatmul.mubr.msk.f32.vlgmr.msra.gmra.mxu1 %vm739_vm2, %v1140_v51 }
 0x580   :  { %5063 = vmatprep.mubr.msk.f32.mxu1 %vm5558_vm1, %v5557_v59 }
 0x62e   :  { %v1135_v52 = vpop.f32.mrf.mxu0 }
 0x62f   :  { %v1136_v53 = vadd.f32 %v1135_v52, %v5890_v10 }
 0x630   :  { %v5050_v54 = vpop.f32.mrf.mxu0 }
 0x631   :  { %v1217_v55 = vsel %vm891_vm4, %v1136_v53, -inf }
 0x632   :  { %1218 = vmax.xlane.f32.xlu0 %v1217_v55 }
 0x637   :  { %v983_v56 = vpop.f32.mrf.mxu1 }
 0x639   :  { %v5040_v57 = vpop.f32.mrf.mxu1 }
 0x63b   :  { %v1056_v58 = vpop.f32.mrf.mxu1 }
 0x63c   :  { %v1060_v61 = vpack.c.bf16 %v1056_v58, %v983_v56 }
 0x63d   :  { %v5045_v62 = vpop.f32.mrf.mxu1 }
 0x63f   :  { %v1213_v0 = vpop.f32.mrf.mxu1 }
 0x640   :  { %v1214_v1 = vadd.f32 %v1213_v0, %v5890_v10 }
 0x641   :  { %v5055_v3 = vpop.f32.mrf.mxu1 }
 0x642   :  { %v1220_v4 = vsel %vm891_vm4, %v1214_v1, -inf }
 0x643   :  { %1221 = vmax.xlane.f32.xlu1 %v1220_v4 }
 0x654   :  { %1317 = vrot.lane.b32.xlu1 %v5911_v47, %s5562_s1 }
 0x658   :  { %1441 = vrot.lane.b32.xlu1 %v5828_v34, %s5559_s10 }
 0x65c   :  { %1568 = vrot.lane.b32.xlu1 %v5866_v2, %s5563_s0 }
 0x660   :  { %1394 = vrot.lane.b32.xlu1 %v5819_v32, %s5559_s10 }
 0x664   :  { %1488 = vrot.lane.b32.xlu1 %v5862_v63, %s5564_s2 }
 0x668   :  { %1870 = vrot.lane.b32.xlu1 %v5862_v63, %s5565_s14 }
 0x6bb   :  { %v1219_v5 = vpop.xlane.xlu0 %1218 }
 0x6bc   :  { %v1223_v6 = vsub.f32 %v1136_v53, %v1219_v5 }
 0x6be   :  { %v1225_v8 = vmul.f32 1.442695, %v1223_v6 }
 0x6c0   :  { %5446 = vpow2.f32 %v1225_v8 }
 0x6cc   :  { %v1222_v34 = vpop.xlane.xlu1 %1221 }
 0x6cd   :  { %v5447_v9 = vpop.eup %5446  ;;  %v1224_v12 = vsub.f32 %v1214_v1, %v1222_v34 }
 0x6ce   :  { %v1229_v13 = vsel %vm891_vm4, %v5447_v9, 0.0 }
 0x6cf   :  { %v1227_v14 = vmul.f32 1.442695, %v1224_v12  ;;  %1230 = vadd.xlane.f32.xlu0 %v1229_v13 }
 0x6d0   :  { %v1318_v32 = vpop.permute.xlu1 %1317 }
 0x6d1   :  { %5448 = vpow2.f32 %v1227_v14  ;;  %5062 = vmatpush3.msra.mxu1 %v1318_v32 }
 0x6d2   :  { %5072 = vmatprep.subr.bf16.mxu1 %v5557_v59 }
 0x6d4   :  { %v1442_v19 = vpop.permute.xlu1 %1441 }
 0x6d8   :  { %v1569_v20 = vpop.permute.xlu1 %1568 }
 0x6dc   :  { %v1395_v25 = vpop.permute.xlu1 %1394 }
 0x6de   :  { %v5449_v15 = vpop.eup %5448 }
 0x6df   :  { %v1232_v17 = vsel %vm891_vm4, %v5449_v15, 0.0 }
 0x6e0   :  { %1233 = vadd.xlane.f32.xlu0 %v1232_v17  ;;  %v1489_v43 = vpop.permute.xlu1 %1488 }
 0x6e4   :  { %v1871_v8 = vpop.permute.xlu1 %1870 }
 0x6f6   :  { %1240 = vrot.lane.b32.xlu0 %v5882_v7, %s5562_s1 }
 0x6fa   :  { %1566 = vrot.lane.b32.xlu0 %v5866_v2, %s5564_s2 }
 0x6fe   :  { %1490 = vrot.lane.b32.xlu0 %v5862_v63, %s5563_s0 }
 0x758   :  { %v1231_v18 = vpop.xlane.xlu0 %1230 }
 0x759   :  { %5450 = vrcp.f32 %v1231_v18 }
 0x766   :  { %v5451_v22 = vpop.eup %5450 }
 0x767   :  { %v1236_v24 = vmul.f32 %v5451_v22, %v5447_v9 }
 0x769   :  { %v1234_v21 = vpop.xlane.xlu0 %1233 }
 0x76a   :  { %5452 = vrcp.f32 %v1234_v21 }
 0x76d   :  { %v1241_v23 = vpop.permute.xlu0 %1240 }
 0x76e   :  { %5057 = vmatpush3.msra.mxu0 %v1241_v23 }
 0x76f   :  { %5059 = vmatmul.mubr.msk.f32.vlgmr.msra.gmra.mxu0 %vm891_vm4, %v1236_v24  ;;  %5066 = vmatprep.subr.bf16.mxu0 %v5557_v59 }
 0x770   :  { %5067 = vmatpush3.bf16.msra.mxu0 %v1395_v25  ;;  %5068 = vmatprep.mubr.msk.bf16.mxu0 %vm5558_vm1, %v5557_v59 }
 0x771   :  { %5078 = vmatprep.subr.mxu0 %v5557_v59  ;;  %v1567_v29 = vpop.permute.xlu0 %1566 }
 0x775   :  { %v1491_v39 = vpop.permute.xlu0 %1490 }
 0x777   :  { %v5453_v26 = vpop.eup %5452 }
 0x778   :  { %v1238_v27 = vmul.f32 %v5453_v26, %v5449_v15 }
 0x77a   :  { %5064 = vmatmul.mubr.msk.f32.vlgmr.msra.gmra.mxu1 %vm891_vm4, %v1238_v27 }
 0x77b   :  { %5073 = vmatpush3.bf16.msra.mxu1 %v1442_v19  ;;  %5074 = vmatprep.mubr.msk.bf16.mxu1 %vm5558_vm1, %v5557_v59 }
 0x77c   :  { %5083 = vmatprep.subr.mxu1 %v5557_v59 }
 0x77e   :  { %5075 = vmatmul.mubr.msk.bf16.vlgmr.msra.gmra.mxu1 %vm739_vm2, %v1060_v61 }
 0x77f   :  { %5084 = vmatpush3.xpose.msk.msra.mxu1 %vm739_vm2, %v1569_v20  ;;  %5085 = vmatprep.mubr.msk.f32.mxu1 %vm5558_vm1, %v5557_v59 }
 0x780   :  { %5093 = vmatprep.subr.mxu1 %v5557_v59 }
 0x786   :  { %5086 = vmatmul.mubr.msk.f32.vlgmr.msra.gmra.mxu1 %vm739_vm2, %v1567_v29 }
 0x787   :  { %5095 = vmatprep.mubr.msk.f32.mxu1 %vm5558_vm1, %v5557_v59 }
 0x82f   :  { %v1312_v31 = vpop.f32.mrf.mxu0 }
 0x831   :  { %v5060_v33 = vpop.f32.mrf.mxu0 }
 0x83a   :  { %v1389_v35 = vpop.f32.mrf.mxu1 }
 0x83b   :  { %v1393_v37 = vpack.c.bf16 %v1389_v35, %v1312_v31 }
 0x83c   :  { %v5065_v38 = vpop.f32.mrf.mxu1 }
 0x83d   :  { %5069 = vmatmul.mubr.msk.bf16.vlgmr.msra.gmra.mxu0 %vm739_vm2, %v1393_v37 }
 0x83e   :  { %5079 = vmatpush3.xpose.msk.msra.mxu0 %vm739_vm2, %v1491_v39  ;;  %v5970_v40 = vpop.f32.mrf.mxu1  ;;  %5080 = vmatprep.mubr.msk.f32.mxu0 %vm5558_vm1, %v5557_v59 }
 0x83f   :  { %5088 = vmatprep.subr.mxu0 %v5557_v59 }
 0x840   :  { %v5076_v41 = vpop.f32.mrf.mxu1 }
 0x842   :  { %v5975_v42 = vpop.f32.mrf.mxu1 }
 0x844   :  { %v5077_v48 = vpop.f32.mrf.mxu1 }
 0x845   :  { %5081 = vmatmul.mubr.msk.f32.vlgmr.msra.gmra.mxu0 %vm739_vm2, %v1489_v43 }
 0x846   :  { %v1640_v49 = vpop.f32.mrf.mxu1  ;;  %5090 = vmatprep.mubr.msk.f32.mxu0 %vm5558_vm1, %v5557_v59 }
 0x847   :  { %v1641_v51 = vadd.f32 %v1640_v49, %v5890_v10 }
 0x848   :  { %v5087_v52 = vpop.f32.mrf.mxu1 }
 0x849   :  { %v1647_v53 = vsel %vm891_vm4, %v1641_v51, -inf }
 0x84a   :  { %1648 = vmax.xlane.f32.xlu0 %v1647_v53 }
 0x860   :  { %1742 = vrot.lane.b32.xlu0 %v5911_v47, %s5564_s2 }
 0x864   :  { %1868 = vrot.lane.b32.xlu0 %v5862_v63, %s5566_s15 }
 0x868   :  { %1946 = vrot.lane.b32.xlu0 %v5866_v2, %s5566_s15 }
 0x8d3   :  { %v1649_v54 = vpop.xlane.xlu0 %1648 }
 0x8d4   :  { %v1651_v55 = vsub.f32 %v1641_v51, %v1649_v54 }
 0x8d6   :  { %v1654_v56 = vmul.f32 1.442695, %v1651_v55 }
 0x8d7   :  { %v1743_v57 = vpop.permute.xlu0 %1742 }
 0x8d8   :  { %5454 = vpow2.f32 %v1654_v56  ;;  %5094 = vmatpush3.msra.mxu1 %v1743_v57 }
 0x8d9   :  { %5104 = vmatprep.subr.mxu1 %v5557_v59 }
 0x8e5   :  { %v5455_v58 = vpop.eup %5454 }
 0x8e6   :  { %v1659_v61 = vsel %vm891_vm4, %v5455_v58, 0.0 }
 0x8e7   :  { %1660 = vadd.xlane.f32.xlu1 %v1659_v61 }
 0x8f8   :  { %1948 = vrot.lane.b32.xlu1 %v5866_v2, %s5565_s14  ;;  %v1869_v2 = vpop.permute.xlu0 %1868 }
 0x8fc   :  { %v1947_v14 = vpop.permute.xlu0 %1946 }
 0x8fd   :  { %v5992_v62 = vpop.f32.mrf.mxu0 }
 0x8ff   :  { %v5070_v63 = vpop.f32.mrf.mxu0 }
 0x901   :  { %v5994_v0 = vpop.f32.mrf.mxu0 }
 0x903   :  { %v5071_v1 = vpop.f32.mrf.mxu0 }
 0x905   :  { %v1562_v3 = vpop.f32.mrf.mxu0 }
 0x906   :  { %v1563_v5 = vadd.f32 %v1562_v3, %v5890_v10 }
 0x907   :  { %v5082_v4 = vpop.f32.mrf.mxu0 }
 0x908   :  { %v1644_v6 = vsel %vm891_vm4, %v1563_v5, -inf }
 0x91c   :  { %1645 = vmax.xlane.f32.xlu1 %v1644_v6  ;;  %v1482_v6 = vadd.f32 %v5970_v40, %v5992_v62  ;;  %v2252_v40 = vsub.s32 3, %v5835_v44 }
 0x970   :  { %v1661_v34 = vpop.xlane.xlu1 %1660 }
 0x971   :  { %5456 = vrcp.f32 %v1661_v34 }
 0x974   :  { %v1949_v13 = vpop.permute.xlu1 %1948 }
 0x97e   :  { %v5457_v9 = vpop.eup %5456 }
 0x97f   :  { %v1665_v12 = vmul.f32 %v5457_v9, %v5455_v58 }
 0x981   :  { %5096 = vmatmul.mubr.msk.f32.vlgmr.msra.gmra.mxu1 %vm891_vm4, %v1665_v12  ;;  %v1485_v12 = vadd.f32 %v5975_v42, %v5994_v0  ;;  %v2253_v42 = vrot.slane %v5841_v46, %v2252_v40 }
 0x982   :  { %5105 = vmatpush3.xpose.msk.msra.mxu1 %vm739_vm2, %v1871_v8  ;;  %5106 = vmatprep.mubr.msk.f32.mxu1 %vm5558_vm1, %v5557_v59 }
 0x983   :  { %5109 = vmatprep.subr.mxu1 %v5557_v59 }
 0x985   :  { %5107 = vmatmul.mubr.msk.f32.vlgmr.msra.gmra.mxu1 %vm739_vm2, %v1869_v2 }
 0x986   :  { %5110 = vmatpush3.xpose.msk.msra.mxu1 %vm739_vm2, %v1949_v13  ;;  %5111 = vmatprep.mubr.msk.f32.mxu1 %vm5558_vm1, %v5557_v59 }
 0x987   :  { %5119 = vmatprep.subr.mxu1 %v5557_v59 }
 0x989   :  { %5112 = vmatmul.mubr.msk.f32.vlgmr.msra.gmra.mxu1 %vm739_vm2, %v1947_v14 }
 0x98a   :  { %5121 = vmatprep.mubr.msk.f32.mxu1 %vm5558_vm1, %v5557_v59 }
 0x9a5   :  { %v1646_v32 = vpop.xlane.xlu1 %1645 }
 0x9a6   :  { %v1650_v15 = vsub.f32 %v1563_v5, %v1646_v32 }
 0x9a8   :  { %v1652_v17 = vmul.f32 1.442695, %v1650_v15 }
 0x9aa   :  { %5458 = vpow2.f32 %v1652_v17 }
 0x9b7   :  { %v5459_v18 = vpop.eup %5458 }
 0x9b8   :  { %v1656_v19 = vsel %vm891_vm4, %v5459_v18, 0.0 }
 0x9b9   :  { %1657 = vadd.xlane.f32.xlu0 %v1656_v19 }
 0x9cf   :  { %1666 = vrot.lane.b32.xlu0 %v5882_v7, %s5564_s2 }
 0x9d3   :  { %2046 = vrot.lane.b32.xlu0 %v5882_v7, %s5566_s15 }
 0x9d7   :  { %2122 = vrot.lane.b32.xlu0 %v5911_v47, %s5566_s15 }
 0x9db   :  { %2199 = vrot.lane.b32.xlu0 %v5801_v28, %s5559_s10 }
 0xa41   :  { %v1814_v20 = vpop.f32.mrf.mxu1 }
 0xa42   :  { %v1658_v21 = vpop.xlane.xlu0 %1657 }
 0xa43   :  { %5460 = vrcp.f32 %v1658_v21  ;;  %v5097_v22 = vpop.f32.mrf.mxu1 }
 0xa45   :  { %v1942_v23 = vpop.f32.mrf.mxu1 }
 0xa46   :  { %v1943_v24 = vadd.f32 %v1942_v23, %v5890_v10  ;;  %v1667_v25 = vpop.permute.xlu0 %1666 }
 0xa47   :  { %5089 = vmatpush3.msra.mxu0 %v1667_v25  ;;  %v5108_v26 = vpop.f32.mrf.mxu1 }
 0xa48   :  { %v2024_v27 = vsel %vm891_vm4, %v1943_v24, -inf  ;;  %5098 = vmatprep.subr.bf16.mxu0 %v5557_v59 }
 0xa49   :  { %2025 = vmax.xlane.f32.xlu1 %v2024_v27  ;;  %v2020_v7 = vpop.f32.mrf.mxu1 }
 0xa4a   :  { %v2021_v47 = vadd.f32 %v2020_v7, %v5890_v10  ;;  %v2047_v29 = vpop.permute.xlu0 %2046 }
 0xa4b   :  { %v5113_v28 = vpop.f32.mrf.mxu1 }
 0xa4c   :  { %v2027_v31 = vsel %vm891_vm4, %v2021_v47, -inf }
 0xa4d   :  { %2028 = vmax.xlane.f32.xlu1 %v2027_v31 }
 0xa4e   :  { %v2123_v33 = vpop.permute.xlu0 %2122 }
 0xa4f   :  { %5120 = vmatpush3.msra.mxu1 %v2123_v33 }
 0xa50   :  { %v5461_v35 = vpop.eup %5460  ;;  %5130 = vmatprep.subr.bf16.mxu1 %v5557_v59 }
 0xa51   :  { %v1663_v37 = vmul.f32 %v5461_v35, %v5459_v18 }
 0xa52   :  { %v2200_v5 = vpop.permute.xlu0 %2199 }
 0xa53   :  { %5091 = vmatmul.mubr.msk.f32.vlgmr.msra.gmra.mxu0 %vm891_vm4, %v1663_v37 }
 0xa54   :  { %5100 = vmatprep.mubr.msk.bf16.mxu0 %vm5558_vm1, %v5557_v59 }
 0xad2   :  { %v2026_v38 = vpop.xlane.xlu1 %2025 }
 0xad3   :  { %v2030_v39 = vsub.f32 %v1943_v24, %v2026_v38 }
 0xad5   :  { %v2032_v41 = vmul.f32 1.442695, %v2030_v39 }
 0xad6   :  { %v2029_v43 = vpop.xlane.xlu1 %2028 }
 0xad7   :  { %5462 = vpow2.f32 %v2032_v41  ;;  %v2031_v48 = vsub.f32 %v2021_v47, %v2029_v43  ;;  %v5398_v41 = vld [vmem:[%s6531_s3 + $0x50] ss:$12 sps:$4 sm:$0xff]   ;;  %v5399_v43 = vld [vmem:[%s6531_s3 + $0x38] ss:$12 sps:$4 sm:$0xff]  }
 0xad9   :  { %v2034_v49 = vmul.f32 1.442695, %v2031_v48  ;;  %v5400_v48 = vld [vmem:[%s6531_s3 + $0x20] ss:$12 sps:$4 sm:$0xff]  }
 0xadb   :  { %5464 = vpow2.f32 %v2034_v49  ;;  %v5401_v49 = vld [vmem:[%s6531_s3 + $0x8] ss:$12 sps:$4 sm:$0xff]  }
 0xae4   :  { %v5463_v51 = vpop.eup %5462 }
 0xae5   :  { %v2036_v52 = vsel %vm891_vm4, %v5463_v51, 0.0 }
 0xae6   :  { %2037 = vadd.xlane.f32.xlu1 %v2036_v52 }
 0xae8   :  { %v5465_v53 = vpop.eup %5464 }
 0xae9   :  { %v2039_v54 = vsel %vm891_vm4, %v5465_v53, 0.0 }
 0xaea   :  { %2040 = vadd.xlane.f32.xlu1 %v2039_v54 }
 0xafb   :  { %1819 = vrot.lane.b32.xlu1 %v5810_v30, %s5559_s10 }
 0xb13   :  { %v1738_v55 = vpop.f32.mrf.mxu0 }
 0xb14   :  { %v1818_v63 = vpack.c.bf16 %v1814_v20, %v1738_v55 }
 0xb15   :  { %v5092_v56 = vpop.f32.mrf.mxu0 }
 0xb6f   :  { %v2038_v57 = vpop.xlane.xlu1 %2037 }
 0xb70   :  { %5466 = vrcp.f32 %v2038_v57  ;;  %v2284_v57 = vsub.s32 4, %v5835_v44 }
 0xb73   :  { %v2041_v58 = vpop.xlane.xlu1 %2040 }
 0xb74   :  { %5468 = vrcp.f32 %v2041_v58 }
 0xb77   :  { %v1820_v61 = vpop.permute.xlu1 %1819 }
 0xb78   :  { %5099 = vmatpush3.bf16.msra.mxu0 %v1820_v61 }
 0xb79   :  { %5114 = vmatprep.subr.mxu0 %v5557_v59 }
 0xb7b   :  { %5101 = vmatmul.mubr.msk.bf16.vlgmr.msra.gmra.mxu0 %vm739_vm2, %v1818_v63  ;;  %v2285_v63 = vrot.slane %v5841_v46, %v2284_v57 }
 0xb7c   :  { %5115 = vmatpush3.msra.mxu0 %v2047_v29  ;;  %5116 = vmatprep.mubr.msk.f32.mxu0 %vm5558_vm1, %v5557_v59 }
 0xb7d   :  { %5124 = vmatprep.subr.bf16.mxu0 %v5557_v59  ;;  %v5467_v30 = vpop.eup %5466 }
 0xb7e   :  { %v2043_v3 = vmul.f32 %v5467_v30, %v5463_v51  ;;  %v2290_v30 = vsub.s32 5, %v5835_v44 }
 0xb81   :  { %v5469_v1 = vpop.eup %5468 }
 0xb82   :  { %v2045_v4 = vmul.f32 %v5469_v1, %v5465_v53 }
 0xb83   :  { %5117 = vmatmul.mubr.msk.f32.vlgmr.msra.gmra.mxu0 %vm891_vm4, %v2043_v3 }
 0xb84   :  { %5122 = vmatmul.mubr.msk.f32.vlgmr.msra.gmra.mxu1 %vm891_vm4, %v2045_v4  ;;  %5126 = vmatprep.mubr.msk.bf16.mxu0 %vm5558_vm1, %v5557_v59 }
 0xb85   :  { %5138 = vmatprep.mubr.msk.bf16.mxu1 %vm5558_vm1, %v5557_v59  ;;  %5125 = vmatpush3.bf16.msra.mxu0 %v2200_v5  ;;  %v2291_v5 = vrot.slane %v5841_v46, %v2290_v30 }
 0xb86   :  { %5142 = vmatprep.subr.bf16.mxu0 %v5557_v59  ;;  %5131 = vmatpush3.bf16.msra.mxu1 %v5398_v41 }
 0xb87   :  { %5132 = vmatprep.subr.bf16.mxu1 %v5557_v59 }
 0xb8a   :  { %5133 = vmatpush3.bf16.msra.mxu1 %v5399_v43 }
 0xb8b   :  { %5134 = vmatprep.subr.bf16.mxu1 %v5557_v59 }
 0xb8e   :  { %5135 = vmatpush3.bf16.msra.mxu1 %v5400_v48 }
 0xb8f   :  { %5136 = vmatprep.subr.bf16.mxu1 %v5557_v59 }
 0xb92   :  { %5137 = vmatpush3.bf16.msra.mxu1 %v5401_v49 }
 0xc3b   :  { %v1859_v8 = vpop.f32.mrf.mxu0 }
 0xc3c   :  { %v1866_v34 = vadd.f32 %v1859_v8, %v1482_v6 }
 0xc3d   :  { %v5102_v9 = vpop.f32.mrf.mxu0 }
 0xc3f   :  { %v1862_v2 = vpop.f32.mrf.mxu0 }
 0xc40   :  { %v1867_v13 = vadd.f32 %v1862_v2, %v1485_v12  ;;  %v5402_v12 = vld [vmem:[%s6532_s4 + $0x38] sm:$0xff]   ;;  %v5403_v2 = vld [vmem:[%s6532_s4 + $0x30] sm:$0xff]  }
 0xc41   :  { %v5103_v14 = vpop.f32.mrf.mxu0 }
 0xc42   :  { %v5406_v14 = vld [vmem:[%s6532_s4 + $0x18] sm:$0xff]  }
 0xc43   :  { %v2118_v32 = vpop.f32.mrf.mxu0 }
 0xc44   :  { %v2194_v15 = vpop.f32.mrf.mxu1 }
 0xc45   :  { %v2198_v17 = vpack.c.bf16 %v2194_v15, %v2118_v32  ;;  %v5118_v18 = vpop.f32.mrf.mxu0  ;;  %v5407_v32 = vld [vmem:[%s6532_s4 + $0x10] sm:$0xff]   ;;  %v5408_v15 = vld [vmem:[%s6532_s4 + $0x8] sm:$0xff]  }
 0xc46   :  { %v5123_v19 = vpop.f32.mrf.mxu1  ;;  %v2297_v18 = vsub.s32 6, %v5835_v44 }
 0xc47   :  { %5127 = vmatmul.mubr.msk.bf16.vlgmr.msra.gmra.mxu0 %vm739_vm2, %v2198_v17  ;;  %v5409_v17 = vld [vmem:[%s6532_s4] sm:$0xff]  }
 0xc48   :  { %5158 = vmatprep.mubr.msk.bf16.mxu0 %vm5558_vm1, %v5557_v59  ;;  %5143 = vmatpush3.bf16.msra.mxu0 %v5402_v12  ;;  %v2298_v19 = vrot.slane %v5841_v46, %v2297_v18 }
 0xc49   :  { %5144 = vmatprep.subr.bf16.mxu0 %v5557_v59 }
 0xc4c   :  { %5145 = vmatpush3.bf16.msra.mxu0 %v5403_v2 }
 0xc4d   :  { %5146 = vmatprep.subr.bf16.mxu0 %v5557_v59 }
 0xd07   :  { %v2239_v62 = vpop.f32.mrf.mxu0 }
 0xd08   :  { %v2246_v20 = vadd.f32 %v2239_v62, %v1866_v34 }
 0xd09   :  { %v5128_v0 = vpop.f32.mrf.mxu0 }
 0xd0a   :  { %v2248_v21 = vadd.f32 %v2246_v20, %v5786_v11 }
 0xd0b   :  { %v2242_v22 = vpop.f32.mrf.mxu0 }
 0xd0c   :  { %v6057_v23 = vadd.f32 %v2253_v42, %v2248_v21  ;;  %v2247_v24 = vadd.f32 %v2242_v22, %v1867_v13  ;;  %v5404_v13 = vld [vmem:[%s6532_s4 + $0x28] sm:$0xff]  }
 0xd0d   :  { %v5129_v25 = vpop.f32.mrf.mxu0  ;;  %5147 = vmatpush3.bf16.msra.mxu0 %v5404_v13 }
 0xd0e   :  { %v2249_v26 = vadd.f32 %v2247_v24, %v5790_v16  ;;  %v2256_v27 = vsel %vm601_vm0, %v6057_v23, 0.0  ;;  %5148 = vmatprep.subr.bf16.mxu0 %v5557_v59 }
 0xd0f   :  { %2257 = vadd.xlane.f32.xlu0 %v2256_v27 }
 0xd10   :  { %v6062_v7 = vadd.f32 %v2253_v42, %v2249_v26 }
 0xd12   :  { %v2259_v47 = vsel %vm601_vm0, %v6062_v7, 0.0 }
 0xd13   :  { %2260 = vadd.xlane.f32.xlu1 %v2259_v47 }
 0xd98   :  { %v2258_v29 = vpop.xlane.xlu0 %2257 }
 0xd99   :  { %v2262_v28 = vmul.f32 0.015625, %v2258_v29 }
 0xd9b   :  { %v2264_v11 = vsub.f32 %v6057_v23, %v2262_v28 }
 0xd9c   :  { %v2261_v31 = vpop.xlane.xlu1 %2260 }
 0xd9d   :  { %v2263_v33 = vmul.f32 0.015625, %v2261_v31  ;;  %v2266_v35 = vmul.f32 %v2264_v11, %v2264_v11 }
 0xd9f   :  { %v2265_v37 = vsub.f32 %v6062_v7, %v2263_v33  ;;  %v2268_v16 = vsel %vm601_vm0, %v2266_v35, 0.0 }
 0xda0   :  { %2269 = vadd.xlane.f32.xlu0 %v2268_v16 }
 0xda1   :  { %v2267_v38 = vmul.f32 %v2265_v37, %v2265_v37 }
 0xda3   :  { %v2271_v39 = vsel %vm601_vm0, %v2267_v38, 0.0 }
 0xda4   :  { %2272 = vadd.xlane.f32.xlu0 %v2271_v39 }
 0xe29   :  { %v2270_v51 = vpop.xlane.xlu0 %2269 }
 0xe2a   :  { %v2274_v52 = vmul.f32 0.015625, %v2270_v51 }
 0xe2c   :  { %v2276_v53 = vadd.f32 1e-06, %v2274_v52 }
 0xe2d   :  { %v2273_v54 = vpop.xlane.xlu0 %2272 }
 0xe2e   :  { %5470 = vrsqrt.f32 %v2276_v53  ;;  %v2275_v55 = vmul.f32 0.015625, %v2273_v54 }
 0xe30   :  { %v2277_v56 = vadd.f32 1e-06, %v2275_v55 }
 0xe32   :  { %5472 = vrsqrt.f32 %v2277_v56 }
 0xe3b   :  { %v5471_v58 = vpop.eup %5470 }
 0xe3c   :  { %v2280_v61 = vmul.f32 %v5471_v58, %v2264_v11 }
 0xe3e   :  { %v2286_v4 = vmul.f32 %v2285_v63, %v2280_v61 }
 0xe3f   :  { %v5473_v1 = vpop.eup %5472 }
 0xe40   :  { %v2281_v3 = vmul.f32 %v5473_v1, %v2265_v37  ;;  %v2292_v8 = vadd.f32 %v2291_v5, %v2286_v4 }
 0xe42   :  { %v2287_v6 = vmul.f32 %v2285_v63, %v2281_v3 }
 0xe44   :  { %v2293_v34 = vadd.f32 %v2291_v5, %v2287_v6 }
 0xe46   :  { %v2294_v9 = vpack.c.bf16 %v2293_v34, %v2292_v8 }
 0xe48   :  { %5139 = vmatmul.mubr.msk.bf16.vlgmr.msra.gmra.mxu1 %vm601_vm0, %v2294_v9 }
 0xe49   :  { %2675 = vmatprep.mubr.bf16.mxu1 %v5556_v36  ;;  %v5405_v36 = vld [vmem:[%s6532_s4 + $0x20] sm:$0xff]  }
 0xe4a   :  { %5149 = vmatpush3.bf16.msra.mxu0 %v5405_v36 }
 0xe4b   :  { %5150 = vmatprep.subr.bf16.mxu0 %v5557_v59 }
 0xe4e   :  { %5151 = vmatpush3.bf16.msra.mxu0 %v5406_v14 }
 0xe4f   :  { %5152 = vmatprep.subr.bf16.mxu0 %v5557_v59 }
 0xe52   :  { %5153 = vmatpush3.bf16.msra.mxu0 %v5407_v32 }
 0xe53   :  { %5154 = vmatprep.subr.bf16.mxu0 %v5557_v59 }
 0xe56   :  { %5155 = vmatpush3.bf16.msra.mxu0 %v5408_v15 }
 0xe57   :  { %5156 = vmatprep.subr.bf16.mxu0 %v5557_v59 }
 0xe5a   :  { %5157 = vmatpush3.bf16.msra.mxu0 %v5409_v17 }
 0xe5b   :  { %5167 = vmatprep.subr.mxu0 %v5557_v59 }
 0xf08   :  { %v2360_v62 = vpop.f32.mrf.mxu1 }
 0xf09   :  { %v2361_v20 = vadd.f32 %v2360_v62, %v2298_v19 }
 0xf0a   :  { %v5140_v42 = vpop.f32.mrf.mxu1 }
 0xf0b   :  { %v2369_v0 = vmul.f32 0.70710677, %v2361_v20  ;;  %v2367_v62 = vmul.f32 0.5, %v2361_v20 }
 0xf0c   :  { %v2363_v21 = vpop.f32.mrf.mxu1 }
 0xf0d   :  { %v2371_v22 = vand.u32 2147483647, %v2369_v0  ;;  %v2364_v24 = vadd.f32 %v2363_v21, %v2298_v19  ;;  %vm2411_vm5 = vcmp.ge.f32.partialorder %v2369_v0, 0.0 }
 0xf0e   :  { %v5141_v25 = vpop.f32.mrf.mxu1 }
 0xf0f   :  { %v2373_v26 = vmul.f32 0.3275911, %v2371_v22  ;;  %v2370_v27 = vmul.f32 0.70710677, %v2364_v24  ;;  %v2399_v31 = vsub.f32 0.0, %v2371_v22  ;;  %v2368_v42 = vmul.f32 0.5, %v2364_v24 }
 0xf11   :  { %v2375_v47 = vadd.f32 1.0, %v2373_v26  ;;  %v2372_v29 = vand.u32 2147483647, %v2370_v27  ;;  %v2401_v33 = vmul.f32 %v2399_v31, %v2371_v22  ;;  %vm2412_vm6 = vcmp.ge.f32.partialorder %v2370_v27, 0.0 }
 0xf13   :  { %5474 = vrcp.f32 %v2375_v47  ;;  %v2374_v28 = vmul.f32 0.3275911, %v2372_v29  ;;  %v2400_v35 = vsub.f32 0.0, %v2372_v29  ;;  %v2403_v38 = vmul.f32 1.442695, %v2401_v33 }
 0xf14   :  { %v2440_v47 = vsub.s32 7, %v5835_v44 }
 0xf15   :  { %v2376_v11 = vadd.f32 1.0, %v2374_v28  ;;  %v2402_v39 = vmul.f32 %v2400_v35, %v2372_v29 }
 0xf16   :  { %v2441_v0 = vrot.slane %v5841_v46, %v2440_v47 }
 0xf17   :  { %5476 = vrcp.f32 %v2376_v11  ;;  %v2405_v51 = vmul.f32 1.442695, %v2402_v39 }
 0xf18   :  { %5478 = vpow2.f32 %v2403_v38 }
 0xf19   :  { %5480 = vpow2.f32 %v2405_v51  ;;  %v6154_v51 = vld [vmem:[%s6531_s3 + $0xac] ss:$12 sps:$4 sm:$0xff]  }
 0xf1a   :  { %2651 = vmatprep.subr.bf16.mxu1 %v6154_v51 }
 0xf20   :  { %v5475_v37 = vpop.eup %5474 }
 0xf21   :  { %v2381_v16 = vmul.f32 1.0614054, %v5475_v37 }
 0xf23   :  { %v2383_v41 = vadd.f32 -1.4531521, %v2381_v16 }
 0xf24   :  { %v5477_v43 = vpop.eup %5476 }
 0xf25   :  { %v2385_v48 = vmul.f32 %v5475_v37, %v2383_v41  ;;  %v2382_v49 = vmul.f32 1.0614054, %v5477_v43  ;;  %v5479_v6 = vpop.eup %5478 }
 0xf26   :  { %v5481_v2 = vpop.eup %5480 }
 0xf27   :  { %v2387_v52 = vadd.f32 1.4214138, %v2385_v48  ;;  %v2384_v53 = vadd.f32 -1.4531521, %v2382_v49 }
 0xf29   :  { %v2389_v54 = vmul.f32 %v5475_v37, %v2387_v52  ;;  %v2386_v55 = vmul.f32 %v5477_v43, %v2384_v53  ;;  %v5410_v52 = vld [vmem:[%s6531_s3 + $0xa8] ss:$12 sps:$4 sm:$0xff]  }
 0xf2a   :  { %2652 = vmatpush1.bf16.msra.mxu1 %v5410_v52  ;;  %v6163_v53 = vld [vmem:[%s6531_s3 + $0x94] ss:$12 sps:$4 sm:$0xff]  }
 0xf2b   :  { %v2391_v56 = vadd.f32 -0.28449672, %v2389_v54  ;;  %v2388_v58 = vadd.f32 1.4214138, %v2386_v55  ;;  %v5413_v54 = vld [vmem:[%s6531_s3 + $0x90] ss:$12 sps:$4 sm:$0xff]   ;;  %2653 = vmatprep.subr.bf16.mxu1 %v6163_v53 }
 0xf2c   :  { %v6172_v55 = vld [vmem:[%s6531_s3 + $0x7c] ss:$12 sps:$4 sm:$0xff]  }
 0xf2d   :  { %v2393_v61 = vmul.f32 %v5475_v37, %v2391_v56  ;;  %v2390_v63 = vmul.f32 %v5477_v43, %v2388_v58  ;;  %v5416_v56 = vld [vmem:[%s6531_s3 + $0x78] ss:$12 sps:$4 sm:$0xff]  }
 0xf2e   :  { %2654 = vmatpush1.bf16.msra.mxu1 %v5413_v54  ;;  %v6180_v58 = vld [vmem:[%s6531_s3 + $0x64] ss:$12 sps:$4 sm:$0xff]  }
 0xf2f   :  { %v2395_v1 = vadd.f32 0.2548296, %v2393_v61  ;;  %v2392_v3 = vadd.f32 -0.28449672, %v2390_v63  ;;  %2655 = vmatprep.subr.bf16.mxu1 %v6172_v55  ;;  %v5419_v61 = vld [vmem:[%s6531_s3 + $0x60] ss:$12 sps:$4 sm:$0xff]  }
 0xf31   :  { %v2397_v4 = vmul.f32 %v5475_v37, %v2395_v1  ;;  %v2394_v5 = vmul.f32 %v5477_v43, %v2392_v3 }
 0xf32   :  { %2656 = vmatpush1.bf16.msra.mxu1 %v5416_v56 }
 0xf33   :  { %v2407_v8 = vmul.f32 %v5479_v6, %v2397_v4  ;;  %v2396_v34 = vadd.f32 0.2548296, %v2394_v5  ;;  %2657 = vmatprep.subr.bf16.mxu1 %v6180_v58 }
 0xf35   :  { %v2409_v9 = vsub.f32 1.0, %v2407_v8  ;;  %v2398_v12 = vmul.f32 %v5477_v43, %v2396_v34  ;;  %v6191_v8 = vld [vmem:[%s6533_s5 + $0x10] sm:$0xff] }
 0xf36   :  { %2658 = vmatpush1.bf16.msra.mxu1 %v5419_v61 }
 0xf37   :  { %v2413_v13 = vsub.f32 0.0, %v2409_v9  ;;  %v2408_v36 = vmul.f32 %v5481_v2, %v2398_v12  ;;  %5162 = vmatprep.subr.mxu1 %v5557_v59  ;;  %v2582_v12 = vrot.slane %v6191_v8, %v631_v45 }
 0xf39   :  { %v2415_v14 = vsel %vm2411_vm5, %v2409_v9, %v2413_v13  ;;  %v2410_v32 = vsub.f32 1.0, %v2408_v36 }
 0xf3a   :  { %v2417_v17 = vadd.f32 1.0, %v2415_v14  ;;  %v2588_v14 = vrot.slane %v6191_v8, %v637_v50 }
 0xf3b   :  { %v2414_v15 = vsub.f32 0.0, %v2410_v32 }
 0xf3c   :  { %v2419_v22 = vmul.f32 %v2417_v17, %v2367_v62  ;;  %v2595_v62 = vrot.slane %v6191_v8, %v5858_v60 }
 0xf3d   :  { %v2416_v19 = vsel %vm2412_vm6, %v2410_v32, %v2414_v15 }
 0xf3e   :  { %v2418_v21 = vadd.f32 1.0, %v2416_v19 }
 0xf40   :  { %v2420_v25 = vmul.f32 %v2418_v21, %v2368_v42 }
 0xf42   :  { %v2421_v26 = vpack.c.bf16 %v2420_v25, %v2419_v22  ;;  %v4771_v25 = vld [vmem:[%s6533_s5 + $0x18] sm:$0xff] }
 0xf44   :  { %5159 = vmatmul.mubr.bf16.vlgmr.msra.gmra.mxu0 %v2421_v26  ;;  %v2599_v26 = vrot.slane %v4771_v25, %v5858_v60 }
 0xf45   :  { %5169 = vmatprep.mubr.msk.f32.mxu0 %vm5558_vm1, %v5557_v59 }
0x1004   :  { %v2524_v29 = vpop.f32.mrf.mxu0 }
0x1005   :  { %v2525_v28 = vadd.f32 %v2524_v29, %v2441_v0 }
0x1006   :  { %v5160_v27 = vpop.f32.mrf.mxu0 }
0x1007   :  { %v6138_v20 = vadd.f32 %v2525_v28, %v6057_v23 }
0x1008   :  { %v2527_v24 = vpop.f32.mrf.mxu0 }
0x1009   :  { %v2528_v11 = vadd.f32 %v2527_v24, %v2441_v0  ;;  %v2553_v31 = vsel %vm601_vm0, %v6138_v20, 0.0 }
0x100a   :  { %2554 = vadd.xlane.f32.xlu0 %v2553_v31  ;;  %v5161_v33 = vpop.f32.mrf.mxu0 }
0x100b   :  { %v6143_v35 = vadd.f32 %v2528_v11, %v6062_v7 }
0x100d   :  { %v2556_v37 = vsel %vm601_vm0, %v6143_v35, 0.0 }
0x100e   :  { %2557 = vadd.xlane.f32.xlu1 %v2556_v37 }
0x1093   :  { %v2555_v46 = vpop.xlane.xlu0 %2554 }
0x1094   :  { %v2559_v16 = vmul.f32 0.015625, %v2555_v46 }
0x1096   :  { %v2561_v38 = vsub.f32 %v6138_v20, %v2559_v16 }
0x1097   :  { %v2558_v23 = vpop.xlane.xlu1 %2557 }
0x1098   :  { %v2560_v39 = vmul.f32 0.015625, %v2558_v23  ;;  %v2563_v41 = vmul.f32 %v2561_v38, %v2561_v38 }
0x109a   :  { %v2562_v43 = vsub.f32 %v6143_v35, %v2560_v39  ;;  %v2565_v48 = vsel %vm601_vm0, %v2563_v41, 0.0 }
0x109b   :  { %2566 = vadd.xlane.f32.xlu0 %v2565_v48 }
0x109c   :  { %v2564_v49 = vmul.f32 %v2562_v43, %v2562_v43 }
0x109e   :  { %v2568_v7 = vsel %vm601_vm0, %v2564_v49, 0.0 }
0x109f   :  { %2569 = vadd.xlane.f32.xlu1 %v2568_v7 }
0x1124   :  { %v2567_v63 = vpop.xlane.xlu0 %2566 }
0x1125   :  { %v2571_v1 = vmul.f32 0.015625, %v2567_v63 }
0x1127   :  { %v2573_v3 = vadd.f32 1e-06, %v2571_v1 }
0x1128   :  { %v2570_v4 = vpop.xlane.xlu1 %2569 }
0x1129   :  { %5482 = vrsqrt.f32 %v2573_v3  ;;  %v2572_v5 = vmul.f32 0.015625, %v2570_v4 }
0x112b   :  { %v2574_v6 = vadd.f32 1e-06, %v2572_v5 }
0x112d   :  { %5484 = vrsqrt.f32 %v2574_v6 }
0x1136   :  { %v5483_v34 = vpop.eup %5482 }
0x1137   :  { %v2577_v9 = vmul.f32 %v5483_v34, %v2561_v38 }
0x1139   :  { %v2583_v36 = vmul.f32 %v2582_v12, %v2577_v9 }
0x113a   :  { %v5485_v2 = vpop.eup %5484 }
0x113b   :  { %v2578_v13 = vmul.f32 %v5485_v2, %v2562_v43  ;;  %v2589_v15 = vadd.f32 %v2588_v14, %v2583_v36 }
0x113d   :  { %v2584_v32 = vmul.f32 %v2582_v12, %v2578_v13 }
0x113f   :  { %v2590_v17 = vadd.f32 %v2588_v14, %v2584_v32 }
0x1141   :  { %v2591_v19 = vpack.c.bf16 %v2590_v17, %v2589_v15 }
0x1143   :  { %4780 = vmatmul.mubr.msk.bf16.vlgmr.msra.gmra.mxu1 %vm601_vm0, %v2591_v19 }
0x1144   :  { %5164 = vmatprep.mubr.msk.f32.mxu1 %vm5558_vm1, %v5557_v59 }
0x1203   :  { %v2677_v45 = vpop.f32.mrf.mxu1 }
0x1204   :  { %v6204_v42 = vadd.f32 %v2677_v45, %v2595_v62 }
0x1205   :  { %v2679_v21 = vpop.f32.mrf.mxu1 }
0x1206   :  { %2687 = vrot.lane.b32.xlu0 %v6204_v42, %s5559_s10  ;;  %v6218_v29 = vadd.f32 %v2679_v21, %v2599_v26 }
0x1207   :  { %v2681_v50 = vpop.f32.mrf.mxu1 }
0x1208   :  { %v6208_v22 = vadd.f32 %v2681_v50, %v2595_v62 }
0x1209   :  { %v2683_v28 = vpop.f32.mrf.mxu1 }
0x120a   :  { %2764 = vrot.lane.b32.xlu1 %v6208_v22, %s5559_s10  ;;  %v6227_v60 = vadd.f32 %v2683_v28, %v2599_v26 }
0x1278   :  { %v2688_v0 = vpop.permute.xlu0 %2687 }
0x1279   :  { %5163 = vmatpush3.xpose.msk.msra.mxu1 %vm739_vm2, %v2688_v0 }
0x127a   :  { %5172 = vmatprep.subr.mxu1 %v5557_v59 }
0x127c   :  { %v2765_v27 = vpop.permute.xlu1 %2764  ;;  %5165 = vmatmul.mubr.msk.f32.vlgmr.msra.gmra.mxu1 %vm739_vm2, %v6204_v42 }
0x127d   :  { %5168 = vmatpush3.xpose.msk.msra.mxu0 %vm739_vm2, %v2765_v27  ;;  %5173 = vmatpush3.msra.mxu1 %v6218_v29 }
0x127e   :  { %5177 = vmatprep.subr.mxu0 %v5557_v59  ;;  %5174 = vmatprep.mubr.msk.f32.mxu1 %vm5558_vm1, %v5557_v59 }
0x127f   :  { %5182 = vmatprep.subr.mxu1 %v5557_v59 }
0x1280   :  { %5170 = vmatmul.mubr.msk.f32.vlgmr.msra.gmra.mxu0 %vm739_vm2, %v6208_v22 }
0x1281   :  { %5178 = vmatpush3.msra.mxu0 %v6227_v60  ;;  %5179 = vmatprep.mubr.msk.f32.mxu0 %vm5558_vm1, %v5557_v59 }
0x1282   :  { %5187 = vmatprep.subr.mxu0 %v5557_v59 }
0x133c   :  { %v2759_v24 = vpop.f32.mrf.mxu1 }
0x133d   :  { %v2760_v11 = vadd.f32 %v2759_v24, %v5890_v10 }
0x133e   :  { %v5166_v31 = vpop.f32.mrf.mxu1 }
0x133f   :  { %v2840_v33 = vsel %vm891_vm4, %v2760_v11, -inf }
0x1340   :  { %v2836_v37 = vpop.f32.mrf.mxu0  ;;  %2841 = vmax.xlane.f32.xlu1 %v2840_v33 }
0x1341   :  { %v2837_v46 = vadd.f32 %v2836_v37, %v5890_v10 }
0x1342   :  { %v5171_v16 = vpop.f32.mrf.mxu0 }
0x1343   :  { %v2843_v38 = vsel %vm891_vm4, %v2837_v46, -inf }
0x1344   :  { %2844 = vmax.xlane.f32.xlu0 %v2843_v38 }
0x1351   :  { %3089 = vrot.lane.b32.xlu1 %v6208_v22, %s5561_s13 }
0x1355   :  { %3009 = vrot.lane.b32.xlu1 %v6204_v42, %s5562_s1 }
0x13c9   :  { %v2842_v23 = vpop.xlane.xlu1 %2841 }
0x13ca   :  { %v2846_v39 = vsub.f32 %v2760_v11, %v2842_v23 }
0x13cc   :  { %v2848_v41 = vmul.f32 1.442695, %v2846_v39 }
0x13cd   :  { %v2845_v43 = vpop.xlane.xlu0 %2844  ;;  %v3090_v61 = vpop.permute.xlu1 %3089 }
0x13ce   :  { %5486 = vpow2.f32 %v2848_v41  ;;  %v2847_v48 = vsub.f32 %v2837_v46, %v2845_v43 }
0x13d0   :  { %v2850_v49 = vmul.f32 1.442695, %v2847_v48 }
0x13d1   :  { %v3010_v63 = vpop.permute.xlu1 %3009 }
0x13d2   :  { %5488 = vpow2.f32 %v2850_v49 }
0x13db   :  { %v5487_v7 = vpop.eup %5486 }
0x13dc   :  { %v2852_v52 = vsel %vm891_vm4, %v5487_v7, 0.0 }
0x13dd   :  { %2853 = vadd.xlane.f32.xlu0 %v2852_v52 }
0x13df   :  { %v5489_v54 = vpop.eup %5488 }
0x13e0   :  { %v2855_v56 = vsel %vm891_vm4, %v5489_v54, 0.0 }
0x13e1   :  { %2856 = vadd.xlane.f32.xlu1 %v2855_v56 }
0x13f2   :  { %3087 = vrot.lane.b32.xlu1 %v6208_v22, %s5562_s1 }
0x13f3   :  { %3011 = vrot.lane.b32.xlu0 %v6204_v42, %s5561_s13 }
0x1466   :  { %v2854_v1 = vpop.xlane.xlu0 %2853 }
0x1467   :  { %5490 = vrcp.f32 %v2854_v1 }
0x146a   :  { %v2857_v3 = vpop.xlane.xlu1 %2856  ;;  %v3012_v6 = vpop.permute.xlu0 %3011 }
0x146b   :  { %5492 = vrcp.f32 %v2857_v3 }
0x146e   :  { %v3088_v12 = vpop.permute.xlu1 %3087 }
0x1474   :  { %v5491_v4 = vpop.eup %5490 }
0x1475   :  { %v2859_v5 = vmul.f32 %v5491_v4, %v5487_v7 }
0x1477   :  { %5175 = vmatmul.mubr.msk.f32.vlgmr.msra.gmra.mxu1 %vm891_vm4, %v2859_v5 }
0x1478   :  { %v5493_v34 = vpop.eup %5492  ;;  %5183 = vmatpush3.xpose.msk.msra.mxu1 %vm739_vm2, %v3012_v6  ;;  %5184 = vmatprep.mubr.msk.f32.mxu1 %vm5558_vm1, %v5557_v59 }
0x1479   :  { %v2861_v9 = vmul.f32 %v5493_v34, %v5489_v54  ;;  %5192 = vmatprep.subr.mxu1 %v5557_v59 }
0x147b   :  { %5180 = vmatmul.mubr.msk.f32.vlgmr.msra.gmra.mxu0 %vm891_vm4, %v2861_v9  ;;  %5185 = vmatmul.mubr.msk.f32.vlgmr.msra.gmra.mxu1 %vm739_vm2, %v3010_v63 }
0x147c   :  { %5188 = vmatpush3.xpose.msk.msra.mxu0 %vm739_vm2, %v3090_v61  ;;  %5189 = vmatprep.mubr.msk.f32.mxu0 %vm5558_vm1, %v5557_v59 }
0x147d   :  { %5197 = vmatprep.subr.mxu0 %v5557_v59  ;;  %5194 = vmatprep.mubr.msk.f32.mxu1 %vm5558_vm1, %v5557_v59 }
0x147f   :  { %5190 = vmatmul.mubr.msk.f32.vlgmr.msra.gmra.mxu0 %vm739_vm2, %v3088_v12 }
0x1480   :  { %5199 = vmatprep.mubr.msk.f32.mxu0 %vm5558_vm1, %v5557_v59 }
0x1537   :  { %v6266_v2 = vpop.f32.mrf.mxu1 }
0x1539   :  { %v5176_v13 = vpop.f32.mrf.mxu1 }
0x153b   :  { %v3004_v36 = vpop.f32.mrf.mxu0  ;;  %v3083_v14 = vpop.f32.mrf.mxu1 }
0x153c   :  { %v3008_v32 = vpack.c.bf16 %v3004_v36, %v6266_v2  ;;  %v3084_v15 = vadd.f32 %v3083_v14, %v5890_v10 }
0x153d   :  { %v5181_v17 = vpop.f32.mrf.mxu0  ;;  %v5186_v19 = vpop.f32.mrf.mxu1 }
0x153e   :  { %v3165_v62 = vsel %vm891_vm4, %v3084_v15, -inf }
0x153f   :  { %v3161_v45 = vpop.f32.mrf.mxu0  ;;  %3166 = vmax.xlane.f32.xlu0 %v3165_v62 }
0x1540   :  { %v3162_v21 = vadd.f32 %v3161_v45, %v5890_v10 }
0x1541   :  { %v5191_v50 = vpop.f32.mrf.mxu0 }
0x1542   :  { %v3168_v25 = vsel %vm891_vm4, %v3162_v21, -inf }
0x1543   :  { %3169 = vmax.xlane.f32.xlu1 %v3168_v25 }
0x1554   :  { %3265 = vrot.lane.b32.xlu1 %v6227_v60, %s5562_s1 }
0x1558   :  { %3389 = vrot.lane.b32.xlu1 %v6180_v58, %s5559_s10 }
0x155c   :  { %3516 = vrot.lane.b32.xlu1 %v6208_v22, %s5563_s0 }
0x1560   :  { %3342 = vrot.lane.b32.xlu1 %v6172_v55, %s5559_s10 }
0x1564   :  { %3436 = vrot.lane.b32.xlu1 %v6204_v42, %s5564_s2 }
0x1568   :  { %3818 = vrot.lane.b32.xlu1 %v6204_v42, %s5565_s14 }
0x15c8   :  { %v3167_v26 = vpop.xlane.xlu0 %3166 }
0x15c9   :  { %v3171_v0 = vsub.f32 %v3084_v15, %v3167_v26 }
0x15cb   :  { %v3173_v28 = vmul.f32 1.442695, %v3171_v0 }
0x15cc   :  { %v3170_v27 = vpop.xlane.xlu1 %3169 }
0x15cd   :  { %5494 = vpow2.f32 %v3173_v28  ;;  %v3172_v24 = vsub.f32 %v3162_v21, %v3170_v27 }
0x15cf   :  { %v3175_v11 = vmul.f32 1.442695, %v3172_v24 }
0x15d0   :  { %v3266_v58 = vpop.permute.xlu1 %3265 }
0x15d1   :  { %5496 = vpow2.f32 %v3175_v11  ;;  %5198 = vmatpush3.msra.mxu0 %v3266_v58 }
0x15d2   :  { %5208 = vmatprep.subr.bf16.mxu0 %v5557_v59 }
0x15d4   :  { %v3390_v38 = vpop.permute.xlu1 %3389 }
0x15d8   :  { %v3517_v39 = vpop.permute.xlu1 %3516 }
0x15da   :  { %v5495_v31 = vpop.eup %5494 }
0x15db   :  { %v3177_v55 = vsel %vm891_vm4, %v5495_v31, 0.0 }
0x15dc   :  { %3178 = vadd.xlane.f32.xlu0 %v3177_v55  ;;  %v3343_v48 = vpop.permute.xlu1 %3342 }
0x15de   :  { %v5497_v33 = vpop.eup %5496 }
0x15df   :  { %v3180_v37 = vsel %vm891_vm4, %v5497_v33, 0.0 }
0x15e0   :  { %3181 = vadd.xlane.f32.xlu0 %v3180_v37  ;;  %v3437_v34 = vpop.permute.xlu1 %3436 }
0x15e4   :  { %v3819_v27 = vpop.permute.xlu1 %3818 }
0x15f6   :  { %3188 = vrot.lane.b32.xlu0 %v6218_v29, %s5562_s1 }
0x15fa   :  { %3514 = vrot.lane.b32.xlu0 %v6208_v22, %s5564_s2 }
0x15fe   :  { %3438 = vrot.lane.b32.xlu0 %v6204_v42, %s5563_s0 }
0x1665   :  { %v3179_v46 = vpop.xlane.xlu0 %3178 }
0x1666   :  { %5498 = vrcp.f32 %v3179_v46 }
0x1669   :  { %v3182_v16 = vpop.xlane.xlu0 %3181 }
0x166a   :  { %5500 = vrcp.f32 %v3182_v16 }
0x166d   :  { %v3189_v23 = vpop.permute.xlu0 %3188 }
0x166e   :  { %5193 = vmatpush3.msra.mxu1 %v3189_v23 }
0x166f   :  { %5202 = vmatprep.subr.bf16.mxu1 %v5557_v59 }
0x1671   :  { %v3515_v52 = vpop.permute.xlu0 %3514 }
0x1673   :  { %v5499_v41 = vpop.eup %5498 }
0x1674   :  { %v3184_v43 = vmul.f32 %v5499_v41, %v5495_v31 }
0x1675   :  { %v3439_v3 = vpop.permute.xlu0 %3438 }
0x1676   :  { %5195 = vmatmul.mubr.msk.f32.vlgmr.msra.gmra.mxu1 %vm891_vm4, %v3184_v43 }
0x1677   :  { %v5501_v49 = vpop.eup %5500  ;;  %5203 = vmatpush3.bf16.msra.mxu1 %v3343_v48  ;;  %5204 = vmatprep.mubr.msk.bf16.mxu1 %vm5558_vm1, %v5557_v59 }
0x1678   :  { %v3186_v7 = vmul.f32 %v5501_v49, %v5497_v33  ;;  %5214 = vmatprep.subr.mxu1 %v5557_v59 }
0x167a   :  { %5200 = vmatmul.mubr.msk.f32.vlgmr.msra.gmra.mxu0 %vm891_vm4, %v3186_v7 }
0x167b   :  { %5209 = vmatpush3.bf16.msra.mxu0 %v3390_v38  ;;  %5210 = vmatprep.mubr.msk.bf16.mxu0 %vm5558_vm1, %v5557_v59 }
0x167c   :  { %5219 = vmatprep.subr.mxu0 %v5557_v59 }
0x167e   :  { %5211 = vmatmul.mubr.msk.bf16.vlgmr.msra.gmra.mxu0 %vm739_vm2, %v3008_v32 }
0x167f   :  { %5220 = vmatpush3.xpose.msk.msra.mxu0 %vm739_vm2, %v3517_v39  ;;  %5221 = vmatprep.mubr.msk.f32.mxu0 %vm5558_vm1, %v5557_v59 }
0x1680   :  { %5229 = vmatprep.subr.mxu0 %v5557_v59 }
0x1686   :  { %5222 = vmatmul.mubr.msk.f32.vlgmr.msra.gmra.mxu0 %vm739_vm2, %v3515_v52 }
0x1687   :  { %5231 = vmatprep.mubr.msk.f32.mxu0 %vm5558_vm1, %v5557_v59 }
0x1736   :  { %v3260_v54 = vpop.f32.mrf.mxu1 }
0x1738   :  { %v5196_v56 = vpop.f32.mrf.mxu1 }
0x173a   :  { %v3337_v61 = vpop.f32.mrf.mxu0 }
0x173b   :  { %v3341_v63 = vpack.c.bf16 %v3337_v61, %v3260_v54 }
0x173c   :  { %v5201_v1 = vpop.f32.mrf.mxu0 }
0x173d   :  { %5205 = vmatmul.mubr.msk.bf16.vlgmr.msra.gmra.mxu1 %vm739_vm2, %v3341_v63 }
0x173e   :  { %5215 = vmatpush3.xpose.msk.msra.mxu1 %vm739_vm2, %v3439_v3  ;;  %v6313_v4 = vpop.f32.mrf.mxu0  ;;  %5216 = vmatprep.mubr.msk.f32.mxu1 %vm5558_vm1, %v5557_v59 }
0x173f   :  { %5224 = vmatprep.subr.mxu1 %v5557_v59 }
0x1740   :  { %v5212_v5 = vpop.f32.mrf.mxu0 }
0x1742   :  { %v6318_v6 = vpop.f32.mrf.mxu0 }
0x1744   :  { %v5213_v9 = vpop.f32.mrf.mxu0 }
0x1745   :  { %5217 = vmatmul.mubr.msk.f32.vlgmr.msra.gmra.mxu1 %vm739_vm2, %v3437_v34 }
0x1746   :  { %v3588_v12 = vpop.f32.mrf.mxu0  ;;  %5226 = vmatprep.mubr.msk.f32.mxu1 %vm5558_vm1, %v5557_v59 }
0x1747   :  { %v3589_v2 = vadd.f32 %v3588_v12, %v5890_v10 }
0x1748   :  { %v5223_v13 = vpop.f32.mrf.mxu0 }
0x1749   :  { %v3595_v36 = vsel %vm891_vm4, %v3589_v2, -inf }
0x174a   :  { %3596 = vmax.xlane.f32.xlu0 %v3595_v36 }
0x1760   :  { %3690 = vrot.lane.b32.xlu0 %v6227_v60, %s5564_s2 }
0x1764   :  { %3816 = vrot.lane.b32.xlu0 %v6204_v42, %s5566_s15 }
0x1768   :  { %3894 = vrot.lane.b32.xlu0 %v6208_v22, %s5566_s15 }
0x17d3   :  { %v3597_v14 = vpop.xlane.xlu0 %3596 }
0x17d4   :  { %v3599_v32 = vsub.f32 %v3589_v2, %v3597_v14 }
0x17d6   :  { %v3602_v15 = vmul.f32 1.442695, %v3599_v32 }
0x17d7   :  { %v3691_v17 = vpop.permute.xlu0 %3690 }
0x17d8   :  { %5502 = vpow2.f32 %v3602_v15  ;;  %5230 = vmatpush3.msra.mxu0 %v3691_v17 }
0x17d9   :  { %5240 = vmatprep.subr.mxu0 %v5557_v59 }
0x17e5   :  { %v5503_v19 = vpop.eup %5502 }
0x17e6   :  { %v3607_v62 = vsel %vm891_vm4, %v5503_v19, 0.0 }
0x17e7   :  { %3608 = vadd.xlane.f32.xlu1 %v3607_v62 }
0x17f8   :  { %3896 = vrot.lane.b32.xlu1 %v6208_v22, %s5565_s14  ;;  %v3817_v22 = vpop.permute.xlu0 %3816 }
0x17fc   :  { %v3895_v55 = vpop.permute.xlu0 %3894 }
0x17fd   :  { %v6335_v45 = vpop.f32.mrf.mxu1 }
0x17ff   :  { %v5206_v42 = vpop.f32.mrf.mxu1 }
0x1801   :  { %v6337_v21 = vpop.f32.mrf.mxu1 }
0x1803   :  { %v5207_v50 = vpop.f32.mrf.mxu1 }
0x1805   :  { %v3510_v25 = vpop.f32.mrf.mxu1 }
0x1806   :  { %v3511_v0 = vadd.f32 %v3510_v25, %v5890_v10 }
0x1807   :  { %v5218_v26 = vpop.f32.mrf.mxu1 }
0x1808   :  { %v3592_v28 = vsel %vm891_vm4, %v3511_v0, -inf }
0x181c   :  { %3593 = vmax.xlane.f32.xlu1 %v3592_v28  ;;  %v3430_v28 = vadd.f32 %v6313_v4, %v6335_v45 }
0x1870   :  { %v3609_v24 = vpop.xlane.xlu1 %3608 }
0x1871   :  { %5504 = vrcp.f32 %v3609_v24 }
0x1874   :  { %v3897_v31 = vpop.permute.xlu1 %3896 }
0x187e   :  { %v5505_v11 = vpop.eup %5504 }
0x187f   :  { %v3613_v58 = vmul.f32 %v5505_v11, %v5503_v19 }
0x1881   :  { %5232 = vmatmul.mubr.msk.f32.vlgmr.msra.gmra.mxu0 %vm891_vm4, %v3613_v58  ;;  %v3433_v58 = vadd.f32 %v6318_v6, %v6337_v21 }
0x1882   :  { %5241 = vmatpush3.xpose.msk.msra.mxu0 %vm739_vm2, %v3819_v27  ;;  %5242 = vmatprep.mubr.msk.f32.mxu0 %vm5558_vm1, %v5557_v59 }
0x1883   :  { %5245 = vmatprep.subr.mxu0 %v5557_v59 }
0x1885   :  { %5243 = vmatmul.mubr.msk.f32.vlgmr.msra.gmra.mxu0 %vm739_vm2, %v3817_v22 }
0x1886   :  { %5246 = vmatpush3.xpose.msk.msra.mxu0 %vm739_vm2, %v3897_v31  ;;  %5247 = vmatprep.mubr.msk.f32.mxu0 %vm5558_vm1, %v5557_v59 }
0x1887   :  { %5255 = vmatprep.subr.mxu0 %v5557_v59 }
0x1889   :  { %5248 = vmatmul.mubr.msk.f32.vlgmr.msra.gmra.mxu0 %vm739_vm2, %v3895_v55 }
0x188a   :  { %5257 = vmatprep.mubr.msk.f32.mxu0 %vm5558_vm1, %v5557_v59 }
0x18a5   :  { %v3594_v33 = vpop.xlane.xlu1 %3593 }
0x18a6   :  { %v3598_v37 = vsub.f32 %v3511_v0, %v3594_v33 }
0x18a8   :  { %v3600_v46 = vmul.f32 1.442695, %v3598_v37 }
0x18aa   :  { %5506 = vpow2.f32 %v3600_v46 }
0x18b7   :  { %v5507_v16 = vpop.eup %5506 }
0x18b8   :  { %v3604_v38 = vsel %vm891_vm4, %v5507_v16, 0.0 }
0x18b9   :  { %3605 = vadd.xlane.f32.xlu0 %v3604_v38 }
0x18cf   :  { %3614 = vrot.lane.b32.xlu0 %v6218_v29, %s5564_s2 }
0x18d3   :  { %3994 = vrot.lane.b32.xlu0 %v6218_v29, %s5566_s15 }
0x18d7   :  { %4070 = vrot.lane.b32.xlu0 %v6227_v60, %s5566_s15 }
0x18db   :  { %4147 = vrot.lane.b32.xlu0 %v6154_v51, %s5559_s10 }
0x1941   :  { %v3762_v23 = vpop.f32.mrf.mxu0 }
0x1942   :  { %v3606_v39 = vpop.xlane.xlu0 %3605 }
0x1943   :  { %5508 = vrcp.f32 %v3606_v39  ;;  %v5233_v41 = vpop.f32.mrf.mxu0 }
0x1945   :  { %v3890_v43 = vpop.f32.mrf.mxu0 }
0x1946   :  { %v3891_v48 = vadd.f32 %v3890_v43, %v5890_v10  ;;  %v3615_v49 = vpop.permute.xlu0 %3614 }
0x1947   :  { %5225 = vmatpush3.msra.mxu1 %v3615_v49  ;;  %v5244_v7 = vpop.f32.mrf.mxu0 }
0x1948   :  { %v3972_v52 = vsel %vm891_vm4, %v3891_v48, -inf  ;;  %5234 = vmatprep.subr.bf16.mxu1 %v5557_v59 }
0x1949   :  { %v3968_v29 = vpop.f32.mrf.mxu0  ;;  %3973 = vmax.xlane.f32.xlu1 %v3972_v52 }
0x194a   :  { %v3969_v60 = vadd.f32 %v3968_v29, %v5890_v10  ;;  %v3995_v54 = vpop.permute.xlu0 %3994 }
0x194b   :  { %v5249_v51 = vpop.f32.mrf.mxu0 }
0x194c   :  { %v3975_v56 = vsel %vm891_vm4, %v3969_v60, -inf }
0x194d   :  { %3976 = vmax.xlane.f32.xlu1 %v3975_v56 }
0x194e   :  { %v4071_v61 = vpop.permute.xlu0 %4070 }
0x194f   :  { %5256 = vmatpush3.msra.mxu0 %v4071_v61 }
0x1950   :  { %v5509_v63 = vpop.eup %5508  ;;  %5266 = vmatprep.subr.bf16.mxu0 %v5557_v59 }
0x1951   :  { %v3611_v1 = vmul.f32 %v5509_v63, %v5507_v16 }
0x1952   :  { %v4148_v0 = vpop.permute.xlu0 %4147 }
0x1953   :  { %5227 = vmatmul.mubr.msk.f32.vlgmr.msra.gmra.mxu1 %vm891_vm4, %v3611_v1 }
0x1954   :  { %5236 = vmatprep.mubr.msk.bf16.mxu1 %vm5558_vm1, %v5557_v59 }
0x19d2   :  { %v3974_v3 = vpop.xlane.xlu1 %3973 }
0x19d3   :  { %v3978_v5 = vsub.f32 %v3891_v48, %v3974_v3  ;;  %v5422_v3 = vld [vmem:[%s6531_s3 + $0xb0] ss:$12 sps:$4 sm:$0xff]  }
0x19d5   :  { %v3980_v34 = vmul.f32 1.442695, %v3978_v5  ;;  %v5423_v5 = vld [vmem:[%s6531_s3 + $0x98] ss:$12 sps:$4 sm:$0xff]  }
0x19d6   :  { %v3977_v10 = vpop.xlane.xlu1 %3976 }
0x19d7   :  { %5510 = vpow2.f32 %v3980_v34  ;;  %v3979_v9 = vsub.f32 %v3969_v60, %v3977_v10  ;;  %v5424_v34 = vld [vmem:[%s6531_s3 + $0x80] ss:$12 sps:$4 sm:$0xff]   ;;  %v5425_v10 = vld [vmem:[%s6531_s3 + $0x68] ss:$12 sps:$4 sm:$0xff]  }
0x19d9   :  { %v3982_v12 = vmul.f32 1.442695, %v3979_v9 }
0x19db   :  { %5512 = vpow2.f32 %v3982_v12 }
0x19e4   :  { %v5511_v2 = vpop.eup %5510 }
0x19e5   :  { %v3984_v13 = vsel %vm891_vm4, %v5511_v2, 0.0 }
0x19e6   :  { %3985 = vadd.xlane.f32.xlu1 %v3984_v13 }
0x19e8   :  { %v5513_v36 = vpop.eup %5512 }
0x19e9   :  { %v3987_v14 = vsel %vm891_vm4, %v5513_v36, 0.0 }
0x19ea   :  { %3988 = vadd.xlane.f32.xlu1 %v3987_v14 }
0x19fb   :  { %3767 = vrot.lane.b32.xlu1 %v6163_v53, %s5559_s10 }
0x1a13   :  { %v3686_v32 = vpop.f32.mrf.mxu1 }
0x1a14   :  { %v3766_v42 = vpack.c.bf16 %v3762_v23, %v3686_v32  ;;  %v4201_v23 = vrot.slane %v6191_v8, %v2252_v40 }
0x1a15   :  { %v5228_v15 = vpop.f32.mrf.mxu1 }
0x1a6f   :  { %v3986_v17 = vpop.xlane.xlu1 %3985 }
0x1a70   :  { %5514 = vrcp.f32 %v3986_v17  ;;  %v4233_v17 = vrot.slane %v6191_v8, %v2284_v57  ;;  %v5426_v57 = vld [vmem:[%s6532_s4 + $0x78] sm:$0xff]  }
0x1a73   :  { %v3989_v19 = vpop.xlane.xlu1 %3988 }
0x1a74   :  { %5516 = vrcp.f32 %v3989_v19 }
0x1a77   :  { %v3768_v62 = vpop.permute.xlu1 %3767 }
0x1a78   :  { %5235 = vmatpush3.bf16.msra.mxu1 %v3768_v62 }
0x1a79   :  { %5250 = vmatprep.subr.mxu1 %v5557_v59 }
0x1a7b   :  { %5237 = vmatmul.mubr.msk.bf16.vlgmr.msra.gmra.mxu1 %vm739_vm2, %v3766_v42 }
0x1a7c   :  { %5251 = vmatpush3.msra.mxu1 %v3995_v54  ;;  %5252 = vmatprep.mubr.msk.f32.mxu1 %vm5558_vm1, %v5557_v59 }
0x1a7d   :  { %5260 = vmatprep.subr.bf16.mxu1 %v5557_v59  ;;  %v5515_v53 = vpop.eup %5514 }
0x1a7e   :  { %v3991_v25 = vmul.f32 %v5515_v53, %v5511_v2  ;;  %v4239_v53 = vrot.slane %v6191_v8, %v2290_v30  ;;  %v5427_v30 = vld [vmem:[%s6532_s4 + $0x70] sm:$0xff]  }
0x1a81   :  { %v5517_v50 = vpop.eup %5516 }
0x1a82   :  { %v3993_v26 = vmul.f32 %v5517_v50, %v5513_v36 }
0x1a83   :  { %5253 = vmatmul.mubr.msk.f32.vlgmr.msra.gmra.mxu1 %vm891_vm4, %v3991_v25 }
0x1a84   :  { %5258 = vmatmul.mubr.msk.f32.vlgmr.msra.gmra.mxu0 %vm891_vm4, %v3993_v26  ;;  %5262 = vmatprep.mubr.msk.bf16.mxu1 %vm5558_vm1, %v5557_v59 }
0x1a85   :  { %5274 = vmatprep.mubr.msk.bf16.mxu0 %vm5558_vm1, %v5557_v59  ;;  %5261 = vmatpush3.bf16.msra.mxu1 %v4148_v0 }
0x1a86   :  { %5278 = vmatprep.subr.bf16.mxu1 %v5557_v59  ;;  %5267 = vmatpush3.bf16.msra.mxu0 %v5422_v3 }
0x1a87   :  { %5268 = vmatprep.subr.bf16.mxu0 %v5557_v59 }
0x1a8a   :  { %5269 = vmatpush3.bf16.msra.mxu0 %v5423_v5 }
0x1a8b   :  { %5270 = vmatprep.subr.bf16.mxu0 %v5557_v59 }
0x1a8e   :  { %5271 = vmatpush3.bf16.msra.mxu0 %v5424_v34 }
0x1a8f   :  { %5272 = vmatprep.subr.bf16.mxu0 %v5557_v59 }
0x1a92   :  { %5273 = vmatpush3.bf16.msra.mxu0 %v5425_v10 }
0x1a93   :  { %5298 = vmatprep.subr.mxu0 %v5557_v59 }
0x1b3b   :  { %v3807_v27 = vpop.f32.mrf.mxu1 }
0x1b3c   :  { %v3814_v24 = vadd.f32 %v3807_v27, %v3430_v28  ;;  %v5428_v28 = vld [vmem:[%s6532_s4 + $0x68] sm:$0xff]   ;;  %v5429_v27 = vld [vmem:[%s6532_s4 + $0x60] sm:$0xff]  }
0x1b3d   :  { %v5238_v11 = vpop.f32.mrf.mxu1 }
0x1b3e   :  { %v5431_v11 = vld [vmem:[%s6532_s4 + $0x50] sm:$0xff]  }
0x1b3f   :  { %v3810_v22 = vpop.f32.mrf.mxu1 }
0x1b40   :  { %v3815_v31 = vadd.f32 %v3810_v22, %v3433_v58  ;;  %v5432_v58 = vld [vmem:[%s6532_s4 + $0x48] sm:$0xff]   ;;  %v5433_v22 = vld [vmem:[%s6532_s4 + $0x40] sm:$0xff]  }
0x1b41   :  { %v5239_v55 = vpop.f32.mrf.mxu1 }
0x1b43   :  { %v4066_v33 = vpop.f32.mrf.mxu1 }
0x1b44   :  { %v4142_v37 = vpop.f32.mrf.mxu0 }
0x1b45   :  { %v4146_v46 = vpack.c.bf16 %v4142_v37, %v4066_v33  ;;  %v5254_v16 = vpop.f32.mrf.mxu1 }
0x1b46   :  { %v5259_v38 = vpop.f32.mrf.mxu0 }
0x1b47   :  { %5263 = vmatmul.mubr.msk.bf16.vlgmr.msra.gmra.mxu1 %vm739_vm2, %v4146_v46 }
0x1b48   :  { %5294 = vmatprep.mubr.msk.bf16.mxu1 %vm5558_vm1, %v5557_v59  ;;  %5279 = vmatpush3.bf16.msra.mxu1 %v5426_v57 }
0x1b49   :  { %5280 = vmatprep.subr.bf16.mxu1 %v5557_v59 }
0x1b4c   :  { %5281 = vmatpush3.bf16.msra.mxu1 %v5427_v30 }
0x1b4d   :  { %5282 = vmatprep.subr.bf16.mxu1 %v5557_v59 }
0x1b50   :  { %5283 = vmatpush3.bf16.msra.mxu1 %v5428_v28 }
0x1b51   :  { %5284 = vmatprep.subr.bf16.mxu1 %v5557_v59 }
0x1b54   :  { %5285 = vmatpush3.bf16.msra.mxu1 %v5429_v27 }
0x1b55   :  { %5286 = vmatprep.subr.bf16.mxu1 %v5557_v59 }
0x1c07   :  { %v4187_v4 = vpop.f32.mrf.mxu1 }
0x1c08   :  { %v4194_v45 = vadd.f32 %v4187_v4, %v3814_v24  ;;  %v5430_v24 = vld [vmem:[%s6532_s4 + $0x58] sm:$0xff]  }
0x1c09   :  { %v5264_v6 = vpop.f32.mrf.mxu1  ;;  %5287 = vmatpush3.bf16.msra.mxu1 %v5430_v24 }
0x1c0a   :  { %v4196_v21 = vadd.f32 %v4194_v45, %v6138_v20  ;;  %5288 = vmatprep.subr.bf16.mxu1 %v5557_v59 }
0x1c0b   :  { %v4190_v39 = vpop.f32.mrf.mxu1 }
0x1c0c   :  { %v6399_v41 = vadd.f32 %v4201_v23, %v4196_v21  ;;  %v4195_v43 = vadd.f32 %v4190_v39, %v3815_v31  ;;  %v4246_v31 = vrot.slane %v6191_v8, %v2297_v18 }
0x1c0d   :  { %v5265_v48 = vpop.f32.mrf.mxu1  ;;  %5289 = vmatpush3.bf16.msra.mxu1 %v5431_v11 }
0x1c0e   :  { %v4197_v49 = vadd.f32 %v4195_v43, %v6143_v35  ;;  %v4204_v7 = vsel %vm601_vm0, %v6399_v41, 0.0  ;;  %5290 = vmatprep.subr.bf16.mxu1 %v5557_v59 }
0x1c0f   :  { %4205 = vadd.xlane.f32.xlu0 %v4204_v7 }
0x1c10   :  { %v6404_v52 = vadd.f32 %v4201_v23, %v4197_v49 }
0x1c11   :  { %5291 = vmatpush3.bf16.msra.mxu1 %v5432_v58 }
0x1c12   :  { %v4207_v29 = vsel %vm601_vm0, %v6404_v52, 0.0  ;;  %5292 = vmatprep.subr.bf16.mxu1 %v5557_v59 }
0x1c13   :  { %4208 = vadd.xlane.f32.xlu1 %v4207_v29 }
0x1c15   :  { %5293 = vmatpush3.bf16.msra.mxu1 %v5433_v22 }
0x1c98   :  { %v4206_v40 = vpop.xlane.xlu0 %4205 }
0x1c99   :  { %v4210_v60 = vmul.f32 0.015625, %v4206_v40 }
0x1c9b   :  { %v4212_v20 = vsub.f32 %v6399_v41, %v4210_v60 }
0x1c9c   :  { %v4209_v54 = vpop.xlane.xlu1 %4208 }
0x1c9d   :  { %v4211_v51 = vmul.f32 0.015625, %v4209_v54  ;;  %v4214_v56 = vmul.f32 %v4212_v20, %v4212_v20 }
0x1c9f   :  { %v4213_v61 = vsub.f32 %v6404_v52, %v4211_v51  ;;  %v4216_v35 = vsel %vm601_vm0, %v4214_v56, 0.0 }
0x1ca0   :  { %4217 = vadd.xlane.f32.xlu0 %v4216_v35 }
0x1ca1   :  { %v4215_v63 = vmul.f32 %v4213_v61, %v4213_v61 }
0x1ca3   :  { %v4219_v1 = vsel %vm601_vm0, %v4215_v63, 0.0 }
0x1ca4   :  { %4220 = vadd.xlane.f32.xlu0 %v4219_v1 }
0x1d29   :  { %v4218_v9 = vpop.xlane.xlu0 %4217 }
0x1d2a   :  { %v4222_v12 = vmul.f32 0.015625, %v4218_v9 }
0x1d2c   :  { %v4224_v2 = vadd.f32 1e-06, %v4222_v12 }
0x1d2d   :  { %v4221_v13 = vpop.xlane.xlu0 %4220 }
0x1d2e   :  { %5518 = vrsqrt.f32 %v4224_v2  ;;  %v4223_v36 = vmul.f32 0.015625, %v4221_v13 }
0x1d30   :  { %v4225_v14 = vadd.f32 1e-06, %v4223_v36 }
0x1d32   :  { %5520 = vrsqrt.f32 %v4225_v14 }
0x1d3b   :  { %v5519_v32 = vpop.eup %5518 }
0x1d3c   :  { %v4228_v15 = vmul.f32 %v5519_v32, %v4212_v20 }
0x1d3e   :  { %v4234_v42 = vmul.f32 %v4233_v17, %v4228_v15 }
0x1d3f   :  { %v5521_v19 = vpop.eup %5520 }
0x1d40   :  { %v4229_v62 = vmul.f32 %v5521_v19, %v4213_v61  ;;  %v4240_v25 = vadd.f32 %v4239_v53, %v4234_v42 }
0x1d42   :  { %v4235_v50 = vmul.f32 %v4233_v17, %v4229_v62 }
0x1d44   :  { %v4241_v26 = vadd.f32 %v4239_v53, %v4235_v50 }
0x1d46   :  { %v4242_v0 = vpack.c.bf16 %v4241_v26, %v4240_v25 }
0x1d48   :  { %5275 = vmatmul.mubr.msk.bf16.vlgmr.msra.gmra.mxu0 %vm601_vm0, %v4242_v0 }
0x1d49   :  { %5314 = vmatprep.mubr.msk.f32.mxu0 %vm5558_vm1, %v5557_v59 }
0x1e08   :  { %v4308_v55 = vpop.f32.mrf.mxu0 }
0x1e09   :  { %v4309_v33 = vadd.f32 %v4308_v55, %v4246_v31 }
0x1e0a   :  { %v5276_v37 = vpop.f32.mrf.mxu0 }
0x1e0b   :  { %v4317_v46 = vmul.f32 0.70710677, %v4309_v33  ;;  %v4315_v28 = vmul.f32 0.5, %v4309_v33 }
0x1e0c   :  { %v4311_v16 = vpop.f32.mrf.mxu0 }
0x1e0d   :  { %v4319_v38 = vand.u32 2147483647, %v4317_v46  ;;  %v4312_v4 = vadd.f32 %v4311_v16, %v4246_v31  ;;  %vm4359_vm7 = vcmp.ge.f32.partialorder %v4317_v46, 0.0  ;;  %v4390_v31 = vrot.slane %v6191_v8, %v2440_v47 }
0x1e0e   :  { %v5277_v45 = vpop.f32.mrf.mxu0 }
0x1e0f   :  { %v4321_v23 = vmul.f32 0.3275911, %v4319_v38  ;;  %v4318_v6 = vmul.f32 0.70710677, %v4312_v4  ;;  %v4347_v49 = vsub.f32 0.0, %v4319_v38  ;;  %v4316_v27 = vmul.f32 0.5, %v4312_v4 }
0x1e11   :  { %v4323_v21 = vadd.f32 1.0, %v4321_v23  ;;  %v4320_v39 = vand.u32 2147483647, %v4318_v6  ;;  %v4349_v7 = vmul.f32 %v4347_v49, %v4319_v38  ;;  %vm4360_vm8 = vcmp.ge.f32.partialorder %v4318_v6, 0.0 }
0x1e13   :  { %5522 = vrcp.f32 %v4323_v21  ;;  %v4322_v43 = vmul.f32 0.3275911, %v4320_v39  ;;  %v4348_v29 = vsub.f32 0.0, %v4320_v39  ;;  %v4351_v60 = vmul.f32 1.442695, %v4349_v7 }
0x1e15   :  { %v4324_v48 = vadd.f32 1.0, %v4322_v43  ;;  %v4350_v20 = vmul.f32 %v4348_v29, %v4320_v39 }
0x1e17   :  { %5524 = vrcp.f32 %v4324_v48  ;;  %v4353_v35 = vmul.f32 1.442695, %v4350_v20  ;;  %v4546_v20 = vld [vmem:[%s6535_s7 + $0x18] sm:$0xff] }
0x1e18   :  { %5526 = vpow2.f32 %v4351_v60  ;;  %v4547_v60 = vld [vmem:[%s6535_s7 + $0x20] sm:$0xff] }
0x1e19   :  { %5528 = vpow2.f32 %v4353_v35 }
0x1e20   :  { %v5523_v18 = vpop.eup %5522 }
0x1e21   :  { %v4329_v40 = vmul.f32 1.0614054, %v5523_v18 }
0x1e23   :  { %v4331_v54 = vadd.f32 -1.4531521, %v4329_v40  ;;  %v4548_v40 = vld [vmem:[%s6535_s7 + $0x28] sm:$0xff] }
0x1e24   :  { %v5525_v51 = vpop.eup %5524 }
0x1e25   :  { %v4333_v56 = vmul.f32 %v5523_v18, %v4331_v54  ;;  %v4330_v61 = vmul.f32 1.0614054, %v5525_v51  ;;  %v5527_v32 = vpop.eup %5526  ;;  %v4545_v54 = vld [vmem:[%s6535_s7 + $0x10] sm:$0xff] }
0x1e26   :  { %v5529_v42 = vpop.eup %5528 }
0x1e27   :  { %v4335_v63 = vadd.f32 1.4214138, %v4333_v56  ;;  %v4332_v1 = vadd.f32 -1.4531521, %v4330_v61  ;;  %v4543_v56 = vld [vmem:[%s6535_s7] sm:$0xff] }
0x1e29   :  { %v4337_v3 = vmul.f32 %v5523_v18, %v4335_v63  ;;  %v4334_v5 = vmul.f32 %v5525_v51, %v4332_v1 }
0x1e2b   :  { %v4339_v34 = vadd.f32 -0.28449672, %v4337_v3  ;;  %v4336_v10 = vadd.f32 1.4214138, %v4334_v5 }
0x1e2d   :  { %v4341_v9 = vmul.f32 %v5523_v18, %v4339_v34  ;;  %v4338_v12 = vmul.f32 %v5525_v51, %v4336_v10  ;;  %v4838_v10 = vld [vmem:[%s6534_s6] ss:$0 sm:$0xff] }
0x1e2f   :  { %v4343_v2 = vadd.f32 0.2548296, %v4341_v9  ;;  %v4340_v13 = vadd.f32 -0.28449672, %v4338_v12  ;;  %v4839_v12 = vld [vmem:[%s6534_s6 + $0x1] ss:$0 sm:$0xff] }
0x1e31   :  { %v4345_v36 = vmul.f32 %v5523_v18, %v4343_v2  ;;  %v4342_v14 = vmul.f32 %v5525_v51, %v4340_v13  ;;  %v4549_v18 = vld [vmem:[%s6535_s7 + $0x30] sm:$0xff] }
0x1e33   :  { %v4355_v15 = vmul.f32 %v5527_v32, %v4345_v36  ;;  %v4344_v17 = vadd.f32 0.2548296, %v4342_v14  ;;  %v4840_v36 = vsel %vm4524_vm9, 1.0, %v5557_v59 }
0x1e35   :  { %v4357_v19 = vsub.f32 1.0, %v4355_v15  ;;  %v4346_v62 = vmul.f32 %v5525_v51, %v4344_v17  ;;  %v4544_v51 = vld [vmem:[%s6535_s7 + $0x8] sm:$0xff] }
0x1e37   :  { %v4361_v53 = vsub.f32 0.0, %v4357_v19  ;;  %v4356_v50 = vmul.f32 %v5529_v42, %v4346_v62 }
0x1e39   :  { %v4363_v25 = vsel %vm4359_vm7, %v4357_v19, %v4361_v53  ;;  %v4358_v26 = vsub.f32 1.0, %v4356_v50 }
0x1e3a   :  { %v4365_v57 = vadd.f32 1.0, %v4363_v25 }
0x1e3b   :  { %v4362_v0 = vsub.f32 0.0, %v4358_v26 }
0x1e3c   :  { %v4367_v11 = vmul.f32 %v4365_v57, %v4315_v28 }
0x1e3d   :  { %v4364_v30 = vsel %vm4360_vm8, %v4358_v26, %v4362_v0 }
0x1e3e   :  { %v4366_v24 = vadd.f32 1.0, %v4364_v30 }
0x1e40   :  { %v4368_v58 = vmul.f32 %v4366_v24, %v4316_v27 }
0x1e42   :  { %v4369_v22 = vpack.c.bf16 %v4368_v58, %v4367_v11 }
0x1e44   :  { %5295 = vmatmul.mubr.bf16.vlgmr.msra.gmra.mxu1 %v4369_v22  ;;  %v4841_v22 = vld [vmem:[%s6536_s8] ss:$0 sm:$0xff] }
0x1f04   :  { %v4473_v55 = vpop.f32.mrf.mxu1 }
0x1f05   :  { %v4474_v37 = vadd.f32 %v4473_v55, %v4390_v31 }
0x1f06   :  { %v5296_v46 = vpop.f32.mrf.mxu1 }
0x1f07   :  { %v4480_v16 = vadd.f32 %v4474_v37, %v6399_v41 }
0x1f08   :  { %v4476_v38 = vpop.f32.mrf.mxu1 }
0x1f09   :  { %v4477_v45 = vadd.f32 %v4476_v38, %v4390_v31  ;;  %v4484_v23 = vsel %vm601_vm0, %v4480_v16, 0.0 }
0x1f0a   :  { %4485 = vadd.xlane.f32.xlu0 %v4484_v23  ;;  %v5297_v33 = vpop.f32.mrf.mxu1 }
0x1f0b   :  { %v4481_v4 = vadd.f32 %v4477_v45, %v6404_v52  ;;  %v4550_v52 = vld [vmem:[%s6535_s7 + $0x38] sm:$0xff] }
0x1f0c   :  { %5299 = vmatpush3.msra.mxu0 %v4550_v52 }
0x1f0d   :  { %v4487_v6 = vsel %vm601_vm0, %v4481_v4, 0.0  ;;  %5300 = vmatprep.subr.mxu0 %v5557_v59 }
0x1f0e   :  { %4488 = vadd.xlane.f32.xlu1 %v4487_v6  ;;  %5301 = vmatpush3.msra.mxu0 %v4549_v18 }
0x1f0f   :  { %5302 = vmatprep.subr.mxu0 %v5557_v59 }
0x1f10   :  { %5303 = vmatpush3.msra.mxu0 %v4548_v40 }
0x1f11   :  { %5304 = vmatprep.subr.mxu0 %v5557_v59 }
0x1f12   :  { %5305 = vmatpush3.msra.mxu0 %v4547_v60 }
0x1f13   :  { %5306 = vmatprep.subr.mxu0 %v5557_v59 }
0x1f14   :  { %5307 = vmatpush3.msra.mxu0 %v4546_v20 }
0x1f15   :  { %5308 = vmatprep.subr.mxu0 %v5557_v59 }
0x1f16   :  { %5309 = vmatpush3.msra.mxu0 %v4545_v54 }
0x1f17   :  { %5310 = vmatprep.subr.mxu0 %v5557_v59 }
0x1f18   :  { %5311 = vmatpush3.msra.mxu0 %v4544_v51 }
0x1f19   :  { %5312 = vmatprep.subr.mxu0 %v5557_v59 }
0x1f1a   :  { %5313 = vmatpush3.msra.mxu0 %v4543_v56 }
0x1f93   :  { %v4486_v21 = vpop.xlane.xlu0 %4485 }
0x1f94   :  { %v4490_v39 = vmul.f32 0.015625, %v4486_v21 }
0x1f96   :  { %v4492_v43 = vsub.f32 %v4480_v16, %v4490_v39 }
0x1f97   :  { %v4489_v47 = vpop.xlane.xlu1 %4488 }
0x1f98   :  { %v4491_v8 = vmul.f32 0.015625, %v4489_v47  ;;  %v4494_v48 = vmul.f32 %v4492_v43, %v4492_v43 }
0x1f9a   :  { %v4493_v49 = vsub.f32 %v4481_v4, %v4491_v8  ;;  %v4496_v41 = vsel %vm601_vm0, %v4494_v48, 0.0 }
0x1f9b   :  { %4497 = vadd.xlane.f32.xlu0 %v4496_v41 }
0x1f9c   :  { %v4495_v7 = vmul.f32 %v4493_v49, %v4493_v49 }
0x1f9e   :  { %v4499_v29 = vsel %vm601_vm0, %v4495_v7, 0.0 }
0x1f9f   :  { %4500 = vadd.xlane.f32.xlu1 %v4499_v29 }
0x2024   :  { %v4498_v61 = vpop.xlane.xlu0 %4497 }
0x2025   :  { %v4502_v35 = vmul.f32 0.015625, %v4498_v61 }
0x2027   :  { %v4504_v63 = vadd.f32 1e-06, %v4502_v35 }
0x2028   :  { %v4501_v1 = vpop.xlane.xlu1 %4500 }
0x2029   :  { %5530 = vrsqrt.f32 %v4504_v63  ;;  %v4503_v3 = vmul.f32 0.015625, %v4501_v1 }
0x202b   :  { %v4505_v5 = vadd.f32 1e-06, %v4503_v3 }
0x202d   :  { %5532 = vrsqrt.f32 %v4505_v5 }
0x2036   :  { %v5531_v34 = vpop.eup %5530 }
0x2037   :  { %v4508_v9 = vmul.f32 %v5531_v34, %v4492_v43 }
0x2039   :  { %v4514_v2 = vmul.f32 %v4838_v10, %v4508_v9 }
0x203a   :  { %v5533_v13 = vpop.eup %5532 }
0x203b   :  { %v4520_v14 = vadd.f32 %v4839_v12, %v4514_v2  ;;  %v4509_v32 = vmul.f32 %v5533_v13, %v4493_v49 }
0x203d   :  { %v4515_v15 = vmul.f32 %v4838_v10, %v4509_v32  ;;  %v4527_v17 = vmul.f32 %v4840_v36, %v4520_v14 }
0x203f   :  { %v4521_v19 = vadd.f32 %v4839_v12, %v4515_v15  ;;  %v4529_v62 = vsel %vm601_vm0, %v4527_v17, 0.0 }
0x2040   :  { %v4530_v42 = vrot.slane %v4529_v62, 4 }
0x2041   :  { %v4528_v53 = vmul.f32 %v4840_v36, %v4521_v19 }
0x2042   :  { %v4531_v50 = vadd.f32 %v4530_v42, %v4529_v62 }
0x2043   :  { %v4536_v44 = vsel %vm601_vm0, %v4528_v53, 0.0 }
0x2044   :  { %v4532_v25 = vrot.slane %v4531_v50, 2  ;;  %v4537_v26 = vrot.slane %v4536_v44, 4 }
0x2046   :  { %v4533_v0 = vadd.f32 %v4532_v25, %v4531_v50  ;;  %v4538_v57 = vadd.f32 %v4537_v26, %v4536_v44 }
0x2048   :  { %v4539_v30 = vrot.slane %v4538_v57, 2  ;;  %v4534_v28 = vrot.slane %v4533_v0, 1 }
0x204a   :  { %v4540_v27 = vadd.f32 %v4539_v30, %v4538_v57  ;;  %v4535_v24 = vadd.f32 %v4534_v28, %v4533_v0 }
0x204c   :  { %v4541_v59 = vrot.slane %v4540_v27, 1 }
0x204e   :  { %v4542_v11 = vadd.f32 %v4541_v59, %v4540_v27 }
0x2050   :  { %v4561_v58 = vsel %vm4560_vm10, %v4542_v11, %v4535_v24 }
0x2051   :  { %5315 = vmatmul.mubr.msk.f32.vlgmr.msra.gmra.mxu0 %vm601_vm0, %v4561_v58 }
0x2111   :  { %v4630_v31 = vpop.f32.mrf.mxu0 }
0x2112   :  { %v4631_v55 = vadd.f32 %v4841_v22, %v4630_v31 }
0x2113   :  { %v5316_v37 = vpop.f32.mrf.mxu0 }
0x2114   :  { %4635 = vst.msk [vmem:[#allocation2] sm:$0x3] %vm4634_vm11, %v4631_v55 }
0x2115   :  { %5545 = shalt.err (!%p5542_p4)
}
0x2116   :  { %4645 = dma.vmem_to_hbm [thread:$0]  %s4643_s18, 32, %s6537_s9, [#allocation3]  }
0x2117   :  { %5554 = dma.done.wait [#allocation3], 32  }
0x2118   :  { %5555 = vsyncadd [#allocation3], 4294967264 }
0x2119   :  { %4649 = vsyncpa [#allocation3], 1 }

</bundles_post_ra>
